<compile_context>
chip_gen: v5e
topology: v5e:2x2
jax: 0.10.0
libtpu: 0.0.40
codegen_flags: <defaults>
</compile_context>

<pallas_src>
import functools

import jax
import jax.numpy as jnp
from jax.experimental import pallas as pl
from jax.experimental.pallas import tpu as pltpu


def _group_feature_kernel(xq_ref, xyz_t_ref, aug_ref, out_ref, sel_ref, *,
                          group_size, tile_q):
    K = group_size
    TQ = tile_q
    N = aug_ref.shape[1]

    # --- Exact pairwise squared distances (TQ queries vs all N points), VPU only. ---
    xq = xq_ref[0].astype(jnp.float32)        # (TQ, 3)
    xa = xyz_t_ref[0].astype(jnp.float32)     # (3, N), lane-dense rows
    d = jnp.zeros((TQ, N), jnp.float32)
    for dim in range(3):                      # D == 3, static
        q_col = xq[:, dim:dim + 1]            # (TQ, 1)
        a_row = xa[dim:dim + 1, :]            # (1, N)
        diff = q_col - a_row                  # (TQ, N)
        d = d + diff * diff

    col_ids = jax.lax.broadcasted_iota(jnp.int32, (TQ, N), 1)
    BIG = jnp.float32(1e30)

    # --- Iterative top-K (smallest, ties -> lowest index).  Each one-hot selection row is
    #     written directly into the (K*TQ, N) VMEM scratch in the gather dtype. ---
    for k in range(K):                        # static, small
        minval = jnp.min(d, axis=-1, keepdims=True)                     # (TQ, 1)
        is_min = d <= minval
        min_idx = jnp.min(jnp.where(is_min, col_ids, N), axis=-1, keepdims=True)
        sel = col_ids == min_idx                                        # exact one-hot
        sel_ref[pl.ds(k * TQ, TQ), :] = sel.astype(sel_ref.dtype)
        d = jnp.where(sel, BIG, d)                                      # mask for next round

    # --- Fused gather of [xyz | feat] with one MXU matmul; row layout = k*TQ + q. ---
    g = jnp.dot(sel_ref[...], aug_ref[0], preferred_element_type=jnp.float32)
    out_ref[0] = g.astype(out_ref.dtype)


def _pick_tile_q(N, max_tile=256):
    """Largest divisor of N that is <= max_tile and keeps blocks (8,128)-friendly."""
    if N <= max_tile:
        return N
    for tq in range(max_tile, 7, -1):
        if N % tq == 0 and tq % 8 == 0:
            return tq
    return N  # no suitable divisor: fall back to a single query tile


def _vmem_limit_bytes(N, C, K, TQ, itemsize):
    F = 3 + C
    lanes = lambda n: -(-n // 128) * 128
    est = (
        K * TQ * lanes(N) * itemsize          # sel scratch
        + 3 * TQ * lanes(N) * 4               # distance matrix + temporaries (f32)
        + 2 * N * lanes(F) * itemsize         # aug block, double-buffered
        + 2 * 8 * lanes(N) * 4                # xyz_t block, double-buffered
        + 2 * TQ * 128 * 4                    # query block, double-buffered (3 -> 128 lanes)
        + 2 * K * TQ * lanes(F) * itemsize    # output block, double-buffered
    )
    try:
        cap = pltpu.get_tpu_info().vmem_capacity_bytes
    except Exception:
        cap = 64 * 1024 * 1024                # conservative (v7x physical VMEM)
    return int(min(max(2 * est, 32 * 1024 * 1024), int(cap * 0.9)))


def group_feature(xyz, feat, group_size, tile_q=None):
    """xyz: (B, N, 3), feat: (B, N, C) -> (neighborhood (B,N,K,3), feature (B,N,K,C))."""
    B, N, D = xyz.shape
    assert D == 3
    C = feat.shape[-1]
    K = group_size
    assert 1 <= K <= N

    if tile_q is None:
        tile_q = _pick_tile_q(N)
    TQ = tile_q
    assert N % TQ == 0
    NQ = N // TQ
    assert NQ == 1 or (TQ % 8 == 0 and (K * TQ) % 8 == 0)

    F = 3 + C
    aug_dtype = jnp.promote_types(xyz.dtype, feat.dtype)
    # Pre-concatenated gather payload [xyz | feat] and lane-dense transposed coords.
    aug = jnp.concatenate([xyz.astype(aug_dtype), feat.astype(aug_dtype)], axis=-1)
    xyz_t = jnp.swapaxes(xyz, 1, 2)           # (B, 3, N)

    kernel = functools.partial(_group_feature_kernel, group_size=K, tile_q=TQ)

    grid_spec = pltpu.PrefetchScalarGridSpec(
        num_scalar_prefetch=0,
        grid=(B, NQ),
        in_specs=[
            pl.BlockSpec((1, TQ, 3), lambda b, qi: (b, qi, 0)),   # query points
            pl.BlockSpec((1, 3, N), lambda b, qi: (b, 0, 0)),     # all points, transposed
            pl.BlockSpec((1, N, F), lambda b, qi: (b, 0, 0)),     # [xyz | feat]
        ],
        out_specs=pl.BlockSpec((1, K * TQ, F), lambda b, qi: (b, qi, 0)),
        scratch_shapes=[pltpu.VMEM((K * TQ, N), aug_dtype)],
    )

    out_flat = pl.pallas_call(
        kernel,
        out_shape=jax.ShapeDtypeStruct((B, K * N, F), aug_dtype),
        grid_spec=grid_spec,
        compiler_params=pltpu.CompilerParams(
            dimension_semantics=("parallel", "parallel"),
            vmem_limit_bytes=_vmem_limit_bytes(
                N, C, K, TQ, jnp.dtype(aug_dtype).itemsize),
        ),
    )(xyz, xyz_t, aug)

    # (B, NQ*K*TQ, F) -> (B, N, K, F): pure layout plumbing outside the kernel.
    out = out_flat.reshape(B, NQ, K, TQ, F).transpose(0, 1, 3, 2, 4).reshape(B, N, K, F)
    neighborhood = out[..., :3].astype(xyz.dtype) - xyz[:, :, None, :]
    feature = out[..., 3:].astype(feat.dtype)
    return neighborhood, feature


def _reference(xyz, feat, group_size):
    """Plain-JAX reference mirroring the PyTorch module (exact squared distances)."""
    diff = xyz[:, :, None, :] - xyz[:, None, :, :]
    dist = jnp.sum(diff * diff, axis=-1)                                 # (B, N, N)
    _, idx = jax.lax.top_k(-dist, group_size)                            # (B, N, K)
    nbr = jnp.take_along_axis(xyz[:, None, :, :], idx[..., None], axis=2)    # (B, N, K, 3)
    nbrf = jnp.take_along_axis(feat[:, None, :, :], idx[..., None], axis=2)  # (B, N, K, C)
    nbr = nbr - xyz[:, :, None, :]
    return nbr, nbrf


if __name__ == "__main__":
    B, N, C, K = 2, 64, 32, 8
    key = jax.random.PRNGKey(0)
    k1, k2 = jax.random.split(key)
    xyz = jax.random.normal(k1, (B, N, 3), dtype=jnp.float32)
    feat = jax.random.normal(k2, (B, N, C), dtype=jnp.float32)

    nbr, nbrf = group_feature(xyz, feat, K)
    jax.block_until_ready((nbr, nbrf))

    ref_nbr, ref_nbrf = _reference(xyz, feat, K)
    assert nbr.shape == (B, N, K, 3) and nbrf.shape == (B, N, K, C)
    assert jnp.allclose(nbr, ref_nbr, atol=1e-4, rtol=1e-4)
    assert jnp.allclose(nbrf, ref_nbrf, atol=1e-4, rtol=1e-4)

    print("KERNEL_OK")
</pallas_src>

<mosaic_0001>
module attributes {stable_mosaic.version = 11 : i64} {
  func.func @_group_feature_kernel(%arg0: i32, %arg1: i32, %arg2: memref<1x64x3xf32, #tpu.memory_space<vmem>>, %arg3: memref<1x3x64xf32, #tpu.memory_space<vmem>>, %arg4: memref<1x64x35xf32, #tpu.memory_space<vmem>>, %arg5: memref<1x512x35xf32, #tpu.memory_space<vmem>>, %arg6: memref<512x64xf32, #tpu.memory_space<vmem>>) attributes {dimension_semantics = [#tpu.dimension_semantics<parallel>, #tpu.dimension_semantics<parallel>], iteration_bounds = array<i64: 2, 1>, scalar_prefetch = 0 : i64, scratch_operands = 1 : i64, tpu.core_type = #tpu.core_type<tc>, window_params = [{transform_indices = @transform_0, window_bounds = array<i64: 1, 64, 3>}, {transform_indices = @transform_1, window_bounds = array<i64: 1, 3, 64>}, {transform_indices = @transform_2, window_bounds = array<i64: 1, 64, 35>}, {transform_indices = @transform_3, window_bounds = array<i64: 1, 512, 35>}]} {
    %c0 = arith.constant 0 : index
    %c0_0 = arith.constant 0 : index
    %c0_1 = arith.constant 0 : index
    %0 = vector.load %arg2[%c0, %c0_0, %c0_1] : memref<1x64x3xf32, #tpu.memory_space<vmem>>, vector<1x64x3xf32>
    %1 = vector.shape_cast %0 : vector<1x64x3xf32> to vector<64x3xf32>
    %c0_2 = arith.constant 0 : index
    %c0_3 = arith.constant 0 : index
    %c0_4 = arith.constant 0 : index
    %2 = vector.load %arg3[%c0_2, %c0_3, %c0_4] : memref<1x3x64xf32, #tpu.memory_space<vmem>>, vector<1x3x64xf32>
    %3 = vector.shape_cast %2 : vector<1x3x64xf32> to vector<3x64xf32>
    %cst = arith.constant 0.000000e+00 : f32
    %4 = vector.broadcast %cst : f32 to vector<64x64xf32>
    %5 = vector.extract_strided_slice %1 {offsets = [0, 0], sizes = [64, 1], strides = [1, 1]} : vector<64x3xf32> to vector<64x1xf32>
    %6 = vector.extract_strided_slice %3 {offsets = [0, 0], sizes = [1, 64], strides = [1, 1]} : vector<3x64xf32> to vector<1x64xf32>
    %7 = vector.broadcast %5 : vector<64x1xf32> to vector<64x64xf32>
    %8 = vector.broadcast %6 : vector<1x64xf32> to vector<64x64xf32>
    %9 = arith.subf %7, %8 : vector<64x64xf32>
    %10 = arith.mulf %9, %9 : vector<64x64xf32>
    %11 = arith.addf %4, %10 : vector<64x64xf32>
    %12 = vector.extract_strided_slice %1 {offsets = [0, 1], sizes = [64, 1], strides = [1, 1]} : vector<64x3xf32> to vector<64x1xf32>
    %13 = vector.extract_strided_slice %3 {offsets = [1, 0], sizes = [1, 64], strides = [1, 1]} : vector<3x64xf32> to vector<1x64xf32>
    %14 = vector.broadcast %12 : vector<64x1xf32> to vector<64x64xf32>
    %15 = vector.broadcast %13 : vector<1x64xf32> to vector<64x64xf32>
    %16 = arith.subf %14, %15 : vector<64x64xf32>
    %17 = arith.mulf %16, %16 : vector<64x64xf32>
    %18 = arith.addf %11, %17 : vector<64x64xf32>
    %19 = vector.extract_strided_slice %1 {offsets = [0, 2], sizes = [64, 1], strides = [1, 1]} : vector<64x3xf32> to vector<64x1xf32>
    %20 = vector.extract_strided_slice %3 {offsets = [2, 0], sizes = [1, 64], strides = [1, 1]} : vector<3x64xf32> to vector<1x64xf32>
    %21 = vector.broadcast %19 : vector<64x1xf32> to vector<64x64xf32>
    %22 = vector.broadcast %20 : vector<1x64xf32> to vector<64x64xf32>
    %23 = arith.subf %21, %22 : vector<64x64xf32>
    %24 = arith.mulf %23, %23 : vector<64x64xf32>
    %25 = arith.addf %18, %24 : vector<64x64xf32>
    %26 = tpu.iota {dimensions = array<i32: 1>} : vector<64x64xi32>
    %cst_5 = arith.constant dense<0x7F800000> : vector<64xf32>
    %27 = vector.multi_reduction <minimumf>, %25, %cst_5 [1] : vector<64x64xf32> to vector<64xf32>
    %28 = vector.shape_cast %27 : vector<64xf32> to vector<64x1xf32>
    %29 = vector.broadcast %28 : vector<64x1xf32> to vector<64x64xf32>
    %30 = arith.cmpf ole, %25, %29 : vector<64x64xf32>
    %c64_i32 = arith.constant 64 : i32
    %31 = vector.broadcast %c64_i32 : i32 to vector<64x64xi32>
    %32 = arith.select %30, %26, %31 : vector<64x64xi1>, vector<64x64xi32>
    %cst_6 = arith.constant dense<2147483647> : vector<64xi32>
    %33 = vector.multi_reduction <minsi>, %32, %cst_6 [1] : vector<64x64xi32> to vector<64xi32>
    %34 = vector.shape_cast %33 : vector<64xi32> to vector<64x1xi32>
    %35 = vector.broadcast %34 : vector<64x1xi32> to vector<64x64xi32>
    %36 = arith.cmpi eq, %26, %35 : vector<64x64xi32>
    %37 = arith.extui %36 : vector<64x64xi1> to vector<64x64xi32>
    %38 = arith.sitofp %37 : vector<64x64xi32> to vector<64x64xf32>
    %c0_7 = arith.constant 0 : index
    %c0_8 = arith.constant 0 : index
    %39 = vector.load %arg6[%c0_7, %c0_8] : memref<512x64xf32, #tpu.memory_space<vmem>>, vector<64x64xf32>
    tpu.vector_store %arg6[%c0_7, %c0_8], %38 {strides = array<i32>} : memref<512x64xf32, #tpu.memory_space<vmem>>, vector<64x64xf32>,
    %cst_9 = arith.constant 1.000000e+30 : f32
    %40 = vector.broadcast %cst_9 : f32 to vector<64x64xf32>
    %41 = arith.select %36, %40, %25 : vector<64x64xi1>, vector<64x64xf32>
    %cst_10 = arith.constant dense<0x7F800000> : vector<64xf32>
    %42 = vector.multi_reduction <minimumf>, %41, %cst_10 [1] : vector<64x64xf32> to vector<64xf32>
    %43 = vector.shape_cast %42 : vector<64xf32> to vector<64x1xf32>
    %44 = vector.broadcast %43 : vector<64x1xf32> to vector<64x64xf32>
    %45 = arith.cmpf ole, %41, %44 : vector<64x64xf32>
    %c64_i32_11 = arith.constant 64 : i32
    %46 = vector.broadcast %c64_i32_11 : i32 to vector<64x64xi32>
    %47 = arith.select %45, %26, %46 : vector<64x64xi1>, vector<64x64xi32>
    %cst_12 = arith.constant dense<2147483647> : vector<64xi32>
    %48 = vector.multi_reduction <minsi>, %47, %cst_12 [1] : vector<64x64xi32> to vector<64xi32>
    %49 = vector.shape_cast %48 : vector<64xi32> to vector<64x1xi32>
    %50 = vector.broadcast %49 : vector<64x1xi32> to vector<64x64xi32>
    %51 = arith.cmpi eq, %26, %50 : vector<64x64xi32>
    %52 = arith.extui %51 : vector<64x64xi1> to vector<64x64xi32>
    %53 = arith.sitofp %52 : vector<64x64xi32> to vector<64x64xf32>
    %c64 = arith.constant 64 : index
    %c0_13 = arith.constant 0 : index
    %54 = vector.load %arg6[%c64, %c0_13] : memref<512x64xf32, #tpu.memory_space<vmem>>, vector<64x64xf32>
    tpu.vector_store %arg6[%c64, %c0_13], %53 {strides = array<i32>} : memref<512x64xf32, #tpu.memory_space<vmem>>, vector<64x64xf32>,
    %cst_14 = arith.constant 1.000000e+30 : f32
    %55 = vector.broadcast %cst_14 : f32 to vector<64x64xf32>
    %56 = arith.select %51, %55, %41 : vector<64x64xi1>, vector<64x64xf32>
    %cst_15 = arith.constant dense<0x7F800000> : vector<64xf32>
    %57 = vector.multi_reduction <minimumf>, %56, %cst_15 [1] : vector<64x64xf32> to vector<64xf32>
    %58 = vector.shape_cast %57 : vector<64xf32> to vector<64x1xf32>
    %59 = vector.broadcast %58 : vector<64x1xf32> to vector<64x64xf32>
    %60 = arith.cmpf ole, %56, %59 : vector<64x64xf32>
    %c64_i32_16 = arith.constant 64 : i32
    %61 = vector.broadcast %c64_i32_16 : i32 to vector<64x64xi32>
    %62 = arith.select %60, %26, %61 : vector<64x64xi1>, vector<64x64xi32>
    %cst_17 = arith.constant dense<2147483647> : vector<64xi32>
    %63 = vector.multi_reduction <minsi>, %62, %cst_17 [1] : vector<64x64xi32> to vector<64xi32>
    %64 = vector.shape_cast %63 : vector<64xi32> to vector<64x1xi32>
    %65 = vector.broadcast %64 : vector<64x1xi32> to vector<64x64xi32>
    %66 = arith.cmpi eq, %26, %65 : vector<64x64xi32>
    %67 = arith.extui %66 : vector<64x64xi1> to vector<64x64xi32>
    %68 = arith.sitofp %67 : vector<64x64xi32> to vector<64x64xf32>
    %c128 = arith.constant 128 : index
    %c0_18 = arith.constant 0 : index
    %69 = vector.load %arg6[%c128, %c0_18] : memref<512x64xf32, #tpu.memory_space<vmem>>, vector<64x64xf32>
    tpu.vector_store %arg6[%c128, %c0_18], %68 {strides = array<i32>} : memref<512x64xf32, #tpu.memory_space<vmem>>, vector<64x64xf32>,
    %cst_19 = arith.constant 1.000000e+30 : f32
    %70 = vector.broadcast %cst_19 : f32 to vector<64x64xf32>
    %71 = arith.select %66, %70, %56 : vector<64x64xi1>, vector<64x64xf32>
    %cst_20 = arith.constant dense<0x7F800000> : vector<64xf32>
    %72 = vector.multi_reduction <minimumf>, %71, %cst_20 [1] : vector<64x64xf32> to vector<64xf32>
    %73 = vector.shape_cast %72 : vector<64xf32> to vector<64x1xf32>
    %74 = vector.broadcast %73 : vector<64x1xf32> to vector<64x64xf32>
    %75 = arith.cmpf ole, %71, %74 : vector<64x64xf32>
    %c64_i32_21 = arith.constant 64 : i32
    %76 = vector.broadcast %c64_i32_21 : i32 to vector<64x64xi32>
    %77 = arith.select %75, %26, %76 : vector<64x64xi1>, vector<64x64xi32>
    %cst_22 = arith.constant dense<2147483647> : vector<64xi32>
    %78 = vector.multi_reduction <minsi>, %77, %cst_22 [1] : vector<64x64xi32> to vector<64xi32>
    %79 = vector.shape_cast %78 : vector<64xi32> to vector<64x1xi32>
    %80 = vector.broadcast %79 : vector<64x1xi32> to vector<64x64xi32>
    %81 = arith.cmpi eq, %26, %80 : vector<64x64xi32>
    %82 = arith.extui %81 : vector<64x64xi1> to vector<64x64xi32>
    %83 = arith.sitofp %82 : vector<64x64xi32> to vector<64x64xf32>
    %c192 = arith.constant 192 : index
    %c0_23 = arith.constant 0 : index
    %84 = vector.load %arg6[%c192, %c0_23] : memref<512x64xf32, #tpu.memory_space<vmem>>, vector<64x64xf32>
    tpu.vector_store %arg6[%c192, %c0_23], %83 {strides = array<i32>} : memref<512x64xf32, #tpu.memory_space<vmem>>, vector<64x64xf32>,
    %cst_24 = arith.constant 1.000000e+30 : f32
    %85 = vector.broadcast %cst_24 : f32 to vector<64x64xf32>
    %86 = arith.select %81, %85, %71 : vector<64x64xi1>, vector<64x64xf32>
    %cst_25 = arith.constant dense<0x7F800000> : vector<64xf32>
    %87 = vector.multi_reduction <minimumf>, %86, %cst_25 [1] : vector<64x64xf32> to vector<64xf32>
    %88 = vector.shape_cast %87 : vector<64xf32> to vector<64x1xf32>
    %89 = vector.broadcast %88 : vector<64x1xf32> to vector<64x64xf32>
    %90 = arith.cmpf ole, %86, %89 : vector<64x64xf32>
    %c64_i32_26 = arith.constant 64 : i32
    %91 = vector.broadcast %c64_i32_26 : i32 to vector<64x64xi32>
    %92 = arith.select %90, %26, %91 : vector<64x64xi1>, vector<64x64xi32>
    %cst_27 = arith.constant dense<2147483647> : vector<64xi32>
    %93 = vector.multi_reduction <minsi>, %92, %cst_27 [1] : vector<64x64xi32> to vector<64xi32>
    %94 = vector.shape_cast %93 : vector<64xi32> to vector<64x1xi32>
    %95 = vector.broadcast %94 : vector<64x1xi32> to vector<64x64xi32>
    %96 = arith.cmpi eq, %26, %95 : vector<64x64xi32>
    %97 = arith.extui %96 : vector<64x64xi1> to vector<64x64xi32>
    %98 = arith.sitofp %97 : vector<64x64xi32> to vector<64x64xf32>
    %c256 = arith.constant 256 : index
    %c0_28 = arith.constant 0 : index
    %99 = vector.load %arg6[%c256, %c0_28] : memref<512x64xf32, #tpu.memory_space<vmem>>, vector<64x64xf32>
    tpu.vector_store %arg6[%c256, %c0_28], %98 {strides = array<i32>} : memref<512x64xf32, #tpu.memory_space<vmem>>, vector<64x64xf32>,
    %cst_29 = arith.constant 1.000000e+30 : f32
    %100 = vector.broadcast %cst_29 : f32 to vector<64x64xf32>
    %101 = arith.select %96, %100, %86 : vector<64x64xi1>, vector<64x64xf32>
    %cst_30 = arith.constant dense<0x7F800000> : vector<64xf32>
    %102 = vector.multi_reduction <minimumf>, %101, %cst_30 [1] : vector<64x64xf32> to vector<64xf32>
    %103 = vector.shape_cast %102 : vector<64xf32> to vector<64x1xf32>
    %104 = vector.broadcast %103 : vector<64x1xf32> to vector<64x64xf32>
    %105 = arith.cmpf ole, %101, %104 : vector<64x64xf32>
    %c64_i32_31 = arith.constant 64 : i32
    %106 = vector.broadcast %c64_i32_31 : i32 to vector<64x64xi32>
    %107 = arith.select %105, %26, %106 : vector<64x64xi1>, vector<64x64xi32>
    %cst_32 = arith.constant dense<2147483647> : vector<64xi32>
    %108 = vector.multi_reduction <minsi>, %107, %cst_32 [1] : vector<64x64xi32> to vector<64xi32>
    %109 = vector.shape_cast %108 : vector<64xi32> to vector<64x1xi32>
    %110 = vector.broadcast %109 : vector<64x1xi32> to vector<64x64xi32>
    %111 = arith.cmpi eq, %26, %110 : vector<64x64xi32>
    %112 = arith.extui %111 : vector<64x64xi1> to vector<64x64xi32>
    %113 = arith.sitofp %112 : vector<64x64xi32> to vector<64x64xf32>
    %c320 = arith.constant 320 : index
    %c0_33 = arith.constant 0 : index
    %114 = vector.load %arg6[%c320, %c0_33] : memref<512x64xf32, #tpu.memory_space<vmem>>, vector<64x64xf32>
    tpu.vector_store %arg6[%c320, %c0_33], %113 {strides = array<i32>} : memref<512x64xf32, #tpu.memory_space<vmem>>, vector<64x64xf32>,
    %cst_34 = arith.constant 1.000000e+30 : f32
    %115 = vector.broadcast %cst_34 : f32 to vector<64x64xf32>
    %116 = arith.select %111, %115, %101 : vector<64x64xi1>, vector<64x64xf32>
    %cst_35 = arith.constant dense<0x7F800000> : vector<64xf32>
    %117 = vector.multi_reduction <minimumf>, %116, %cst_35 [1] : vector<64x64xf32> to vector<64xf32>
    %118 = vector.shape_cast %117 : vector<64xf32> to vector<64x1xf32>
    %119 = vector.broadcast %118 : vector<64x1xf32> to vector<64x64xf32>
    %120 = arith.cmpf ole, %116, %119 : vector<64x64xf32>
    %c64_i32_36 = arith.constant 64 : i32
    %121 = vector.broadcast %c64_i32_36 : i32 to vector<64x64xi32>
    %122 = arith.select %120, %26, %121 : vector<64x64xi1>, vector<64x64xi32>
    %cst_37 = arith.constant dense<2147483647> : vector<64xi32>
    %123 = vector.multi_reduction <minsi>, %122, %cst_37 [1] : vector<64x64xi32> to vector<64xi32>
    %124 = vector.shape_cast %123 : vector<64xi32> to vector<64x1xi32>
    %125 = vector.broadcast %124 : vector<64x1xi32> to vector<64x64xi32>
    %126 = arith.cmpi eq, %26, %125 : vector<64x64xi32>
    %127 = arith.extui %126 : vector<64x64xi1> to vector<64x64xi32>
    %128 = arith.sitofp %127 : vector<64x64xi32> to vector<64x64xf32>
    %c384 = arith.constant 384 : index
    %c0_38 = arith.constant 0 : index
    %129 = vector.load %arg6[%c384, %c0_38] : memref<512x64xf32, #tpu.memory_space<vmem>>, vector<64x64xf32>
    tpu.vector_store %arg6[%c384, %c0_38], %128 {strides = array<i32>} : memref<512x64xf32, #tpu.memory_space<vmem>>, vector<64x64xf32>,
    %cst_39 = arith.constant 1.000000e+30 : f32
    %130 = vector.broadcast %cst_39 : f32 to vector<64x64xf32>
    %131 = arith.select %126, %130, %116 : vector<64x64xi1>, vector<64x64xf32>
    %cst_40 = arith.constant dense<0x7F800000> : vector<64xf32>
    %132 = vector.multi_reduction <minimumf>, %131, %cst_40 [1] : vector<64x64xf32> to vector<64xf32>
    %133 = vector.shape_cast %132 : vector<64xf32> to vector<64x1xf32>
    %134 = vector.broadcast %133 : vector<64x1xf32> to vector<64x64xf32>
    %135 = arith.cmpf ole, %131, %134 : vector<64x64xf32>
    %c64_i32_41 = arith.constant 64 : i32
    %136 = vector.broadcast %c64_i32_41 : i32 to vector<64x64xi32>
    %137 = arith.select %135, %26, %136 : vector<64x64xi1>, vector<64x64xi32>
    %cst_42 = arith.constant dense<2147483647> : vector<64xi32>
    %138 = vector.multi_reduction <minsi>, %137, %cst_42 [1] : vector<64x64xi32> to vector<64xi32>
    %139 = vector.shape_cast %138 : vector<64xi32> to vector<64x1xi32>
    %140 = vector.broadcast %139 : vector<64x1xi32> to vector<64x64xi32>
    %141 = arith.cmpi eq, %26, %140 : vector<64x64xi32>
    %142 = arith.extui %141 : vector<64x64xi1> to vector<64x64xi32>
    %143 = arith.sitofp %142 : vector<64x64xi32> to vector<64x64xf32>
    %c448 = arith.constant 448 : index
    %c0_43 = arith.constant 0 : index
    %144 = vector.load %arg6[%c448, %c0_43] : memref<512x64xf32, #tpu.memory_space<vmem>>, vector<64x64xf32>
    tpu.vector_store %arg6[%c448, %c0_43], %143 {strides = array<i32>} : memref<512x64xf32, #tpu.memory_space<vmem>>, vector<64x64xf32>,
    %c0_44 = arith.constant 0 : index
    %c0_45 = arith.constant 0 : index
    %145 = vector.load %arg6[%c0_44, %c0_45] : memref<512x64xf32, #tpu.memory_space<vmem>>, vector<512x64xf32>
    %c0_46 = arith.constant 0 : index
    %c0_47 = arith.constant 0 : index
    %c0_48 = arith.constant 0 : index
    %146 = vector.load %arg4[%c0_46, %c0_47, %c0_48] : memref<1x64x35xf32, #tpu.memory_space<vmem>>, vector<1x64x35xf32>
    %147 = vector.shape_cast %146 : vector<1x64x35xf32> to vector<64x35xf32>
    %cst_49 = arith.constant dense<0.000000e+00> : vector<512x35xf32>
    %148 = tpu.matmul %145, %147, %cst_49 {dimension_numbers = #tpu.dot_dimension_numbers<[1], [0], [0], [1], [0, 0, 1, 1], [], []>} : vector<512x64xf32>, vector<64x35xf32>, vector<512x35xf32> -> vector<512x35xf32>
    %c0_50 = arith.constant 0 : index
    %c0_51 = arith.constant 0 : index
    %c0_52 = arith.constant 0 : index
    %149 = vector.load %arg5[%c0_50, %c0_51, %c0_52] : memref<1x512x35xf32, #tpu.memory_space<vmem>>, vector<1x512x35xf32>
    %150 = vector.shape_cast %149 : vector<1x512x35xf32> to vector<512x35xf32>
    %151 = vector.shape_cast %148 : vector<512x35xf32> to vector<1x512x35xf32>
    tpu.vector_store %arg5[%c0_50, %c0_51, %c0_52], %151 {strides = array<i32>} : memref<1x512x35xf32, #tpu.memory_space<vmem>>, vector<1x512x35xf32>,
    return
  }
  func.func @transform_0(%arg0: i32, %arg1: i32) -> (i32, i32, i32) {
    %c0_i32 = arith.constant 0 : i32
    %c0_i32_0 = arith.constant 0 : i32
    return %arg0, %arg1, %c0_i32 : i32, i32, i32
  }
  func.func @transform_1(%arg0: i32, %arg1: i32) -> (i32, i32, i32) {
    %c0_i32 = arith.constant 0 : i32
    %c0_i32_0 = arith.constant 0 : i32
    %c0_i32_1 = arith.constant 0 : i32
    return %arg0, %c0_i32, %c0_i32_0 : i32, i32, i32
  }
  func.func @transform_2(%arg0: i32, %arg1: i32) -> (i32, i32, i32) {
    %c0_i32 = arith.constant 0 : i32
    %c0_i32_0 = arith.constant 0 : i32
    %c0_i32_1 = arith.constant 0 : i32
    return %arg0, %c0_i32, %c0_i32_0 : i32, i32, i32
  }
  func.func @transform_3(%arg0: i32, %arg1: i32) -> (i32, i32, i32) {
    %c0_i32 = arith.constant 0 : i32
    %c0_i32_0 = arith.constant 0 : i32
    return %arg0, %arg1, %c0_i32 : i32, i32, i32
  }
}

</mosaic_0001>

<bundles_post_ra>
// kernel: tpu_custom_call.1
= control target key start
LH: loop header
LB: loop body
LE: loop exit
PB: predicated region body
PF: predicated region fallthrough
CT: control target
= control target key end

     0   :  { %s2940_s12 = smov 0   ;;  %s2942_s13 = smov 0   ;;  %s4384_s0 = inlined_call_operand.vmem [shape: f32[2,64,3], index: 0, kind: input, shape index: {}]   ;;  %s4385_s1 = inlined_call_operand.vmem [shape: f32[2,3,64], index: 1, kind: input, shape index: {}]   ;;  %s4386_s2 = inlined_call_operand.vmem [shape: f32[2,64,35], index: 2, kind: input, shape index: {}]   ;;  %s4387_s3 = inlined_call_operand.vmem [shape: f32[2,512,35], index: 3, kind: output, shape index: {}]  }
   0x1   :  { %s2944_s14 = smov 0  }
   0x2 LB: > { %s25_s15 = sadd.s32 1, %s2910_s13  ;;  %p2683_p0 = scmp.ge.s32.totalorder %s2914_s14, 1  ;;  %s2914_s14 = sphi %s2944_s14, %s13_s14   ;;  %s2910_s13 = sphi %s2942_s13, %s4389_s13   ;;  %s2906_s12 = sphi %s2940_s12, %s4388_s12  }
   0x3   : > { %p27_p1 = scmp.ge.s32.totalorder %s25_s15, 2  ;;  %p177_p2 = scmp.lt.s32.totalorder %s2914_s14, 3 }
   0x5   : > { %s4391_s15 = smov (%p27_p1, %s25_s15), 0  ;;  %p178_p3 = pnand %p2683_p0, %p177_p2 }
   0x6   : > { %p219_p4 = scmp.lt.s32.totalorder (!%p178_p3), %s2906_s12, 1 }
   0x7   : > { %181 = sbr.rel (%p178_p3) target bundleno = 3349 (0xd15), region = 32 }
   0xc   : > { %v2916_v0 = vmov 2   ;;  %s4393_s12 = smov (!%p219_p4, %s2906_s12), 1  ;;  %v2917_v1 = vmov 1   ;;  %v2918_v5 = vmov 0   ;;  %vm437_vm0 = vcmask 523264  }
   0xd   : > { %2881 = vset.pattern.permute.xlu0 %v2916_v0  ;;  %2876 = vset.pattern.permute.xlu1 %v2916_v0  ;;  %s2821_s16 = sshll.u32 %s4393_s12, 6  ;;  %s2686_s20 = sshll.u32 %s4393_s12, 2 }
   0xe   : > { %2878 = vset.pattern.permute.xlu2 %v2917_v1  ;;  %s2966_s19 = scalar_lea.vmem %s4384_s0, %s2821_s16  ;;  %s231_s23 = scalar_lea.vmem %s4385_s1, %s2686_s20 }
   0xf   : > { %v249_v2 = vld [vmem:[%s2966_s19 + $0x10] sm:$0xff]  ;;  %v247_v3 = vld [vmem:[%s2966_s19] sm:$0xff]  ;;  %v248_v4 = vld [vmem:[%s2966_s19 + $0x8] sm:$0xff]  ;;  %s236_s26 = scalar_lea.vmem %s4386_s2, %s2821_s16  ;;  %s2823_s27 = sshll.u32 %s4393_s12, 9 }
  0x10   : > { %387 = vperm.xlu0 %2881, %v249_v2   ;;  %379 = vperm.xlu1 %2876, %v247_v3   ;;  %v251_v6 = vld [vmem:[%s2966_s19 + $0x20] sm:$0xff]  ;;  %v250_v7 = vld [vmem:[%s2966_s19 + $0x18] sm:$0xff]  ;;  %v253_v8 = vld [vmem:[%s2966_s19 + $0x30] sm:$0xff]  ;;  %s3214_s30 = scalar_lea.vmem %s4387_s3, %s2823_s27 }
  0x11   : > { %326 = vperm.xlu2 %2878, %v248_v4   ;;  %v254_v9 = vld [vmem:[%s2966_s19 + $0x38] sm:$0xff]  ;;  %v252_v10 = vld [vmem:[%s2966_s19 + $0x28] sm:$0xff]  ;;  %v255_v15 = vld [vmem:[%s231_s23] sm:$0x7] }
  0x12   : > { %v2980_v16 = vperm.slane %v255_v15, 1  ;;  %v2983_v18 = vperm.slane %v255_v15, 2  ;;  %v2985_v19 = vperm.slane %v255_v15, 0 }
  0x18   : > { %2882 = vset.pattern.permute.xlu0 %v2917_v1  ;;  %2877 = vset.pattern.permute.xlu1 %v2918_v5 }
  0x19   : > { %322 = vperm.xlu0 %2882, %v247_v3   ;;  %263 = vperm.xlu1 %2877, %v248_v4  }
  0x1a   : > { %2879 = vset.pattern.permute.xlu2 %v2916_v0 }
  0x1b   : > { %383 = vperm.xlu2 %2879, %v248_v4  }
  0x21   : > { %338 = vperm.xlu0 %2882, %v251_v6   ;;  %268 = vperm.xlu1 %2877, %v249_v2  }
  0x23   : > { %2880 = vset.pattern.permute.xlu2 %v2917_v1 }
  0x24   : > { %330 = vperm.xlu2 %2880, %v249_v2  }
  0x29   : > { %2885 = vset.pattern.permute.xlu0 %v2918_v5  ;;  %273 = vperm.xlu1 %2877, %v250_v7  }
  0x2a   : > { %258 = vperm.xlu0 %2885, %v247_v3  }
  0x2c   : > { %334 = vperm.xlu2 %2880, %v250_v7  }
  0x31   : > { %2883 = vset.pattern.permute.xlu1 %v2916_v0 }
  0x32   : > { %288 = vperm.xlu0 %2885, %v253_v8   ;;  %391 = vperm.xlu1 %2883, %v250_v7  }
  0x34   : > { %2884 = vset.pattern.permute.xlu2 %v2918_v5 }
  0x35   : > { %278 = vperm.xlu2 %2884, %v251_v6  }
  0x3a   : > { %293 = vperm.xlu0 %2885, %v254_v9   ;;  %395 = vperm.xlu1 %2883, %v251_v6  }
  0x3d   : > { %283 = vperm.xlu2 %2884, %v252_v10  }
  0x42   : > { %2886 = vset.pattern.permute.xlu1 %v2917_v1  ;;  %2891 = vset.pattern.permute.xlu0 %v2916_v0 }
  0x43   : > { %342 = vperm.xlu1 %2886, %v252_v10  }
  0x45   : > { %2887 = vset.pattern.permute.xlu2 %v2916_v0 }
  0x46   : > { %399 = vperm.xlu2 %2887, %v252_v10  }
  0x4b   : > { %346 = vperm.xlu1 %2886, %v253_v8  }
  0x53   : > { %2888 = vset.pattern.permute.xlu1 %v2916_v0 }
  0x54   : > { %403 = vperm.xlu1 %2888, %v253_v8  }
  0x5c   : > { %2889 = vset.pattern.permute.xlu1 %v2917_v1 }
  0x5d   : > { %350 = vperm.xlu1 %2889, %v254_v9  }
  0x65   : > { %2890 = vset.pattern.permute.xlu1 %v2916_v0 }
  0x66   : > { %407 = vperm.xlu1 %2890, %v254_v9  }
  0x6b   : > { %v327_v11 = vpop.permute.xlu2 %326 }
  0x6c   : > { %v355_v17 = vsub.f32 %v327_v11, %v2980_v16 }
  0x6e   : > { %v363_v24 = vmul.f32 %v355_v17, %v355_v17 }
  0x75   : > { %v384_v12 = vpop.permute.xlu2 %383 }
  0x76   : > { %v412_v20 = vsub.f32 %v384_v12, %v2983_v18 }
  0x78   : > { %v420_v26 = vmul.f32 %v412_v20, %v412_v20 }
  0x7e   : > { %v331_v21 = vpop.permute.xlu2 %330 }
  0x7f   : > { %v356_v28 = vsub.f32 %v331_v21, %v2980_v16 }
  0x81   : > { %v364_v34 = vmul.f32 %v356_v28, %v356_v28 }
  0x82   : > { %v388_v13 = vpop.permute.xlu0 %387  ;;  %v380_v14 = vpop.permute.xlu1 %379 }
  0x83   : > { %v413_v33 = vsub.f32 %v388_v13, %v2983_v18  ;;  %v411_v42 = vsub.f32 %v380_v14, %v2983_v18 }
  0x85   : > { %v421_v39 = vmul.f32 %v413_v33, %v413_v33  ;;  %v419_v50 = vmul.f32 %v411_v42, %v411_v42 }
  0x86   : > { %v335_v37 = vpop.permute.xlu2 %334 }
  0x87   : > { %v357_v47 = vsub.f32 %v335_v37, %v2980_v16 }
  0x89   : > { %v365_v54 = vmul.f32 %v357_v47, %v357_v47 }
  0x8b   : > { %v323_v22 = vpop.permute.xlu0 %322  ;;  %v264_v23 = vpop.permute.xlu1 %263 }
  0x8c   : > { %v298_v25 = vsub.f32 %v264_v23, %v2985_v19  ;;  %v354_v43 = vsub.f32 %v323_v22, %v2980_v16 }
  0x8e   : > { %v306_v27 = vmul.f32 %v298_v25, %v298_v25  ;;  %v362_v51 = vmul.f32 %v354_v43, %v354_v43 }
  0x8f   : > { %v279_v52 = vpop.permute.xlu2 %278 }
  0x90   : > { %v371_v29 = vadd.f32 %v363_v24, %v306_v27  ;;  %v301_v62 = vsub.f32 %v279_v52, %v2985_v19  ;;  %v435_v52 = vlaneseq }
  0x92   : > { %v2990_v30 = vadd.f32 %v420_v26, %v371_v29  ;;  %v309_v3 = vmul.f32 %v301_v62, %v301_v62 }
  0x93   : > { %v339_v31 = vpop.permute.xlu0 %338  ;;  %v269_v32 = vpop.permute.xlu1 %268 }
  0x94   : > { %v299_v35 = vsub.f32 %v269_v32, %v2985_v19  ;;  %v441_v36 = vsel %vm437_vm0, %v2990_v30, inf  ;;  %v358_v63 = vsub.f32 %v339_v31, %v2980_v16 }
  0x95   : > { %442 = vmin.xlane.f32.xlu0 %v441_v36 }
  0x96   : > { %v307_v38 = vmul.f32 %v299_v35, %v299_v35  ;;  %v366_v4 = vmul.f32 %v358_v63, %v358_v63 }
  0x97   : > { %v284_v1 = vpop.permute.xlu2 %283 }
  0x98   : > { %v372_v40 = vadd.f32 %v364_v34, %v307_v38  ;;  %v374_v8 = vadd.f32 %v366_v4, %v309_v3  ;;  %v302_v12 = vsub.f32 %v284_v1, %v2985_v19 }
  0x9a   : > { %v2996_v41 = vadd.f32 %v421_v39, %v372_v40  ;;  %v310_v17 = vmul.f32 %v302_v12, %v302_v12 }
  0x9b   : > { %v274_v44 = vpop.permute.xlu1 %273 }
  0x9c   : > { %v259_v45 = vpop.permute.xlu0 %258  ;;  %v444_v46 = vsel %vm437_vm0, %v2996_v41, inf  ;;  %v300_v49 = vsub.f32 %v274_v44, %v2985_v19 }
  0x9d   : > { %v297_v48 = vsub.f32 %v259_v45, %v2985_v19  ;;  %445 = vmin.xlane.f32.xlu1 %v444_v46 }
  0x9e   : > { %v308_v56 = vmul.f32 %v300_v49, %v300_v49 }
  0x9f   : > { %v305_v53 = vmul.f32 %v297_v48, %v297_v48 }
  0xa0   : > { %v373_v59 = vadd.f32 %v365_v54, %v308_v56  ;;  %v400_v11 = vpop.permute.xlu2 %399 }
  0xa1   : > { %v370_v55 = vadd.f32 %v362_v51, %v305_v53  ;;  %v416_v13 = vsub.f32 %v400_v11, %v2983_v18  ;;  %v3042_v53 = vand.u32 127, %v435_v52 }
  0xa3   : > { %v3005_v57 = vadd.f32 %v419_v50, %v370_v55  ;;  %v424_v22 = vmul.f32 %v416_v13, %v416_v13 }
  0xa4   : > { %v392_v58 = vpop.permute.xlu1 %391  ;;  %v289_v27 = vpop.permute.xlu0 %288 }
  0xa5   : > { %v414_v60 = vsub.f32 %v392_v58, %v2983_v18  ;;  %v438_v61 = vsel %vm437_vm0, %v3005_v57, inf  ;;  %v303_v29 = vsub.f32 %v289_v27, %v2985_v19 }
  0xa6   : > { %439 = vmin.xlane.f32.xlu2 %v438_v61 }
  0xa7   : > { %v422_v0 = vmul.f32 %v414_v60, %v414_v60  ;;  %v311_v33 = vmul.f32 %v303_v29, %v303_v29 }
  0xa9   : > { %v3012_v2 = vadd.f32 %v422_v0, %v373_v59 }
  0xab   : > { %v447_v5 = vsel %vm437_vm0, %v3012_v2, inf }
  0xac   : > { %v396_v6 = vpop.permute.xlu1 %395  ;;  %v294_v40 = vpop.permute.xlu0 %293 }
  0xad   : > { %v415_v7 = vsub.f32 %v396_v6, %v2983_v18  ;;  %v304_v43 = vsub.f32 %v294_v40, %v2985_v19 }
  0xae   : > { %448 = vmin.xlane.f32.xlu2 %v447_v5 }
  0xaf   : > { %v423_v9 = vmul.f32 %v415_v7, %v415_v7  ;;  %v312_v46 = vmul.f32 %v304_v43, %v304_v43 }
  0xb1   : > { %v3017_v10 = vadd.f32 %v423_v9, %v374_v8 }
  0xb3   : > { %v450_v15 = vsel %vm437_vm0, %v3017_v10, inf }
  0xb5   : > { %v343_v14 = vpop.permute.xlu1 %342 }
  0xb6   : > { %v359_v20 = vsub.f32 %v343_v14, %v2980_v16  ;;  %451 = vmin.xlane.f32.xlu2 %v450_v15 }
  0xb8   : > { %v367_v21 = vmul.f32 %v359_v20, %v359_v20 }
  0xba   : > { %v375_v23 = vadd.f32 %v367_v21, %v310_v17 }
  0xbc   : > { %v3024_v24 = vadd.f32 %v424_v22, %v375_v23 }
  0xbd   : > { %v347_v25 = vpop.permute.xlu1 %346 }
  0xbe   : > { %v453_v26 = vsel %vm437_vm0, %v3024_v24, inf  ;;  %v360_v28 = vsub.f32 %v347_v25, %v2980_v16 }
  0xbf   : > { %454 = vmin.xlane.f32.xlu2 %v453_v26 }
  0xc0   : > { %v368_v31 = vmul.f32 %v360_v28, %v360_v28 }
  0xc2   : > { %v376_v35 = vadd.f32 %v368_v31, %v311_v33 }
  0xc6   : > { %v404_v32 = vpop.permute.xlu1 %403 }
  0xc7   : > { %v417_v34 = vsub.f32 %v404_v32, %v2983_v18 }
  0xc9   : > { %v425_v36 = vmul.f32 %v417_v34, %v417_v34 }
  0xcb   : > { %v3031_v37 = vadd.f32 %v425_v36, %v376_v35 }
  0xcd   : > { %v456_v38 = vsel %vm437_vm0, %v3031_v37, inf }
  0xce   : > { %457 = vmin.xlane.f32.xlu0 %v456_v38 }
  0xcf   : > { %v351_v39 = vpop.permute.xlu1 %350 }
  0xd0   : > { %v361_v42 = vsub.f32 %v351_v39, %v2980_v16 }
  0xd2   : > { %v369_v44 = vmul.f32 %v361_v42, %v361_v42 }
  0xd4   : > { %v377_v48 = vadd.f32 %v369_v44, %v312_v46 }
  0xd8   : > { %v408_v45 = vpop.permute.xlu1 %407 }
  0xd9   : > { %v418_v47 = vsub.f32 %v408_v45, %v2983_v18 }
  0xdb   : > { %v426_v49 = vmul.f32 %v418_v47, %v418_v47 }
  0xdd   : > { %v3038_v50 = vadd.f32 %v426_v49, %v377_v48 }
  0xdf   : > { %v459_v51 = vsel %vm437_vm0, %v3038_v50, inf }
  0xe0   : > { %460 = vmin.xlane.f32.xlu0 %v459_v51 }
 0x108   : > { %v443_v56 = vpop.xlane.xlu0 %442 }
 0x109   : > { %vm463_vm2 = vcmp.le.f32.partialorder %v2990_v30, %v443_v56 }
 0x10a   : > { %v471_v61 = vsel %vm463_vm2, %v3042_v53, 64 }
 0x10b   : > { %v493_v0 = vsel %vm437_vm0, %v471_v61, 2147483647 }
 0x10c   : > { %v495_v3 = vshra.s32 %v493_v0, 16  ;;  %v494_v43 = vand.u32 65535, %v493_v0 }
 0x10e   : > { %v497_v5 = vcvt.s32.f32 %v495_v3  ;;  %v496_v46 = vcvt.s32.f32 %v494_v43  ;;  %v2100_v3 = vld [vmem:[%s236_s26 + $0x30] sm:$0xff] }
 0x110   : > { %v446_v54 = vpop.xlane.xlu1 %445 }
 0x111   : > { %vm464_vm1 = vcmp.le.f32.partialorder %v2996_v41, %v446_v54 }
 0x112   : > { %v472_v16 = vsel %vm464_vm1, %v3042_v53, 64 }
 0x113   : > { %v508_v19 = vsel %vm437_vm0, %v472_v16, 2147483647 }
 0x114   : > { %v510_v55 = vshra.s32 %v508_v19, 16  ;;  %v509_v29 = vand.u32 65535, %v508_v19 }
 0x116   : > { %v512_v18 = vcvt.s32.f32 %v510_v55  ;;  %v511_v32 = vcvt.s32.f32 %v509_v29 }
 0x118   : > { %513 = vmin.xlane.f32.xlu1 %v512_v18 }
 0x119   : > { %v440_v58 = vpop.xlane.xlu2 %439 }
 0x11a   : > { %vm462_vm3 = vcmp.le.f32.partialorder %v3005_v57, %v440_v58 }
 0x11b   : > { %v470_v59 = vsel %vm462_vm3, %v3042_v53, 64 }
 0x11c   : > { %v478_v60 = vsel %vm437_vm0, %v470_v59, 2147483647 }
 0x11d   : > { %v480_v62 = vshra.s32 %v478_v60, 16  ;;  %v479_v35 = vand.u32 65535, %v478_v60 }
 0x11f   : > { %v482_v63 = vcvt.s32.f32 %v480_v62  ;;  %v481_v39 = vcvt.s32.f32 %v479_v35 }
 0x121   : > { %v449_v1 = vpop.xlane.xlu2 %448  ;;  %483 = vmin.xlane.f32.xlu2 %v482_v63 }
 0x122   : > { %vm465_vm4 = vcmp.le.f32.partialorder %v3012_v2, %v449_v1  ;;  %v2101_v1 = vld [vmem:[%s236_s26 + $0x38] sm:$0xff] }
 0x123   : > { %v473_v4 = vsel %vm465_vm4, %v3042_v53, 64  ;;  %2302 = vmatpush.msra.mxu0 %v2101_v1  ;;  %2824 = vmatpush.msra.mxu1 %v2101_v1 }
 0x124   : > { %v523_v6 = vsel %vm437_vm0, %v473_v4, 2147483647  ;;  %2825 = vmatpush.msra.mxu2 %v2101_v1  ;;  %2826 = vmatpush.msra.mxu3 %v2101_v1  ;;  %v2099_v4 = vld [vmem:[%s236_s26 + $0x28] sm:$0xff] }
 0x125   : > { %v525_v9 = vshra.s32 %v523_v6, 16  ;;  %v524_v51 = vand.u32 65535, %v523_v6  ;;  %2303 = vmatpush.msra.mxu0 %v2100_v3  ;;  %2827 = vmatpush.msra.mxu1 %v2100_v3  ;;  %v2097_v6 = vld [vmem:[%s236_s26 + $0x18] sm:$0xff] }
 0x126   : > { %2828 = vmatpush.msra.mxu2 %v2100_v3  ;;  %2829 = vmatpush.msra.mxu3 %v2100_v3 }
 0x127   : > { %v527_v13 = vcvt.s32.f32 %v525_v9  ;;  %v526_v19 = vcvt.s32.f32 %v524_v51  ;;  %2304 = vmatpush.msra.mxu0 %v2099_v4  ;;  %2830 = vmatpush.msra.mxu1 %v2099_v4  ;;  %v2094_v9 = vld [vmem:[%s236_s26] sm:$0xff] }
 0x128   : > { %2831 = vmatpush.msra.mxu2 %v2099_v4  ;;  %2832 = vmatpush.msra.mxu3 %v2099_v4 }
 0x129   : > { %v452_v7 = vpop.xlane.xlu2 %451  ;;  %498 = vmin.xlane.f32.xlu2 %v497_v5 }
 0x12a   : > { %vm466_vm5 = vcmp.le.f32.partialorder %v3017_v10, %v452_v7  ;;  %v2096_v7 = vld [vmem:[%s236_s26 + $0x10] sm:$0xff] }
 0x12b   : > { %v474_v8 = vsel %vm466_vm5, %v3042_v53, 64 }
 0x12c   : > { %v538_v11 = vsel %vm437_vm0, %v474_v8, 2147483647  ;;  %v2095_v8 = vld [vmem:[%s236_s26 + $0x8] sm:$0xff] }
 0x12d   : > { %v540_v12 = vshra.s32 %v538_v11, 16  ;;  %v539_v49 = vand.u32 65535, %v538_v11 }
 0x12f   : > { %v542_v14 = vcvt.s32.f32 %v540_v12  ;;  %v541_v16 = vcvt.s32.f32 %v539_v49 }
 0x131   : > { %528 = vmin.xlane.f32.xlu2 %v527_v13  ;;  %543 = vmin.xlane.f32.xlu0 %v542_v14 }
 0x132   : > { %v455_v15 = vpop.xlane.xlu2 %454 }
 0x133   : > { %vm467_vm6 = vcmp.le.f32.partialorder %v3024_v24, %v455_v15 }
 0x134   : > { %v475_v17 = vsel %vm467_vm6, %v3042_v53, 64 }
 0x135   : > { %v553_v20 = vsel %vm437_vm0, %v475_v17, 2147483647 }
 0x136   : > { %v555_v21 = vshra.s32 %v553_v20, 16  ;;  %v554_v56 = vand.u32 65535, %v553_v20 }
 0x138   : > { %v557_v22 = vcvt.s32.f32 %v555_v21  ;;  %v556_v59 = vcvt.s32.f32 %v554_v56  ;;  %v2919_v21 = vmov 0.0  }
 0x13a   : > { %558 = vmin.xlane.f32.xlu1 %v557_v22 }
 0x141   : > { %v458_v23 = vpop.xlane.xlu0 %457 }
 0x142   : > { %vm468_vm7 = vcmp.le.f32.partialorder %v3031_v37, %v458_v23 }
 0x143   : > { %v476_v25 = vsel %vm468_vm7, %v3042_v53, 64 }
 0x144   : > { %v568_v26 = vsel %vm437_vm0, %v476_v25, 2147483647 }
 0x145   : > { %v570_v27 = vshra.s32 %v568_v26, 16  ;;  %v569_v61 = vand.u32 65535, %v568_v26 }
 0x147   : > { %v572_v28 = vcvt.s32.f32 %v570_v27 }
 0x149   : > { %573 = vmin.xlane.f32.xlu0 %v572_v28 }
 0x153   : > { %v461_v33 = vpop.xlane.xlu0 %460 }
 0x154   : > { %vm469_vm9 = vcmp.le.f32.partialorder %v3038_v50, %v461_v33 }
 0x155   : > { %v477_v36 = vsel %vm469_vm9, %v3042_v53, 64 }
 0x156   : > { %v3074_v42 = vsel %vm437_vm0, %v477_v36, 2147483647 }
 0x157   : > { %v585_v44 = vshra.s32 %v3074_v42, 16 }
 0x159   : > { %v3079_v47 = vcvt.s32.f32 %v585_v44 }
 0x18b   : > { %v3065_v31 = vpop.xlane.xlu1 %513 }
 0x18c   : > { %vm515_vm8 = vcmp.eq.f32.partialorder %v512_v18, %v3065_v31  ;;  %v520_v11 = vcvt.f32.s32 %v3065_v31 }
 0x18d   : > { %v516_v34 = vsel %vm515_vm8, %v511_v32, inf }
 0x18e   : > { %517 = vmin.xlane.f32.xlu0 %v516_v34 }
 0x194   : > { %v3070_v38 = vpop.xlane.xlu2 %483 }
 0x195   : > { %vm485_vm10 = vcmp.eq.f32.partialorder %v482_v63, %v3070_v38  ;;  %v571_v63 = vcvt.s32.f32 %v569_v61  ;;  %v490_v17 = vcvt.f32.s32 %v3070_v38  ;;  %v584_v38 = vand.u32 65535, %v3074_v42 }
 0x196   : > { %v486_v40 = vsel %vm485_vm10, %v481_v39, inf }
 0x197   : > { %487 = vmin.xlane.f32.xlu2 %v486_v40  ;;  %v491_v26 = vshll.u32 %v490_v17, 16  ;;  %v586_v43 = vcvt.s32.f32 %v584_v38 }
 0x19c   : > { %v3077_v45 = vpop.xlane.xlu2 %498 }
 0x19d   : > { %vm500_vm11 = vcmp.eq.f32.partialorder %v497_v5, %v3077_v45  ;;  %v2098_v5 = vld [vmem:[%s236_s26 + $0x20] sm:$0xff]  ;;  %v505_v29 = vcvt.f32.s32 %v3077_v45 }
 0x19e   : > { %v501_v48 = vsel %vm500_vm11, %v496_v46, inf  ;;  %2305 = vmatpush.msra.mxu0 %v2098_v5  ;;  %2833 = vmatpush.msra.mxu1 %v2098_v5 }
 0x19f   : > { %588 = vmin.xlane.f32.xlu2 %v3079_v47  ;;  %502 = vmin.xlane.f32.xlu1 %v501_v48  ;;  %v506_v35 = vshll.u32 %v505_v29, 16 }
 0x1a0   : > { %2834 = vmatpush.msra.mxu2 %v2098_v5  ;;  %2835 = vmatpush.msra.mxu3 %v2098_v5 }
 0x1a1   : > { %2306 = vmatpush.msra.mxu0 %v2097_v6  ;;  %2836 = vmatpush.msra.mxu1 %v2097_v6 }
 0x1a2   : > { %2837 = vmatpush.msra.mxu2 %v2097_v6  ;;  %2838 = vmatpush.msra.mxu3 %v2097_v6 }
 0x1a3   : > { %2307 = vmatpush.msra.mxu0 %v2096_v7  ;;  %2839 = vmatpush.msra.mxu1 %v2096_v7 }
 0x1a4   : > { %v3083_v52 = vpop.xlane.xlu2 %528  ;;  %v3085_v54 = vpop.xlane.xlu0 %543  ;;  %2840 = vmatpush.msra.mxu2 %v2096_v7  ;;  %2841 = vmatpush.msra.mxu3 %v2096_v7 }
 0x1a5   : > { %vm545_vm12 = vcmp.eq.f32.partialorder %v542_v14, %v3085_v54  ;;  %vm530_vm13 = vcmp.eq.f32.partialorder %v527_v13, %v3083_v52  ;;  %2308 = vmatpush.msra.mxu0 %v2095_v8  ;;  %2842 = vmatpush.msra.mxu1 %v2095_v8  ;;  %v521_v13 = vshll.u32 %v520_v11, 16  ;;  %v550_v40 = vcvt.f32.s32 %v3085_v54 }
 0x1a6   : > { %v546_v55 = vsel %vm545_vm12, %v541_v16, inf  ;;  %v531_v18 = vsel %vm530_vm13, %v526_v19, inf  ;;  %2843 = vmatpush.msra.mxu2 %v2095_v8  ;;  %2844 = vmatpush.msra.mxu3 %v2095_v8  ;;  %vm2503_vm13 = vcmask 285696  }
 0x1a7   : > { %547 = vmin.xlane.f32.xlu2 %v546_v55  ;;  %532 = vmin.xlane.f32.xlu1 %v531_v18 }
 0x1a8   : > { %2309 = vmatpush.msra.mxu0 %v2094_v9  ;;  %2845 = vmatpush.msra.mxu1 %v2094_v9 }
 0x1a9   : > { %2846 = vmatpush.msra.mxu2 %v2094_v9  ;;  %2847 = vmatpush.msra.mxu3 %v2094_v9 }
 0x1ad   : > { %v3089_v58 = vpop.xlane.xlu1 %558 }
 0x1ae   : > { %vm560_vm14 = vcmp.eq.f32.partialorder %v557_v22, %v3089_v58 }
 0x1af   : > { %v561_v60 = vsel %vm560_vm14, %v556_v59, inf }
 0x1b0   : > { %562 = vmin.xlane.f32.xlu0 %v561_v60 }
 0x1bc   : > { %v3092_v62 = vpop.xlane.xlu0 %573 }
 0x1bd   : > { %vm575_vm15 = vcmp.eq.f32.partialorder %v572_v28, %v3092_v62  ;;  %v580_v7 = vcvt.f32.s32 %v3092_v62 }
 0x1be   : > { %v576_v0 = vsel %vm575_vm15, %v571_v63, inf }
 0x1bf   : > { %577 = vmin.xlane.f32.xlu2 %v576_v0  ;;  %v581_v11 = vshll.u32 %v580_v7, 16 }
 0x201   : > { %v518_v12 = vpop.xlane.xlu0 %517 }
 0x202   : > { %v519_v14 = vcvt.f32.s32 %v518_v12 }
 0x204   : > { %v522_v15 = vadd.s32 %v521_v13, %v519_v14 }
 0x206   : > { %vm600_vm1 = vcmp.eq.s32.totalorder %v3042_v53, %v522_v15 }
 0x207   : > { %v3104_v20 = vsel %vm600_vm1, 1e+30, %v2996_v41  ;;  %v2693_v22 = vsel %vm600_vm1, 1.0, %v2919_v21 }
 0x208   : > { %v644_v23 = vsel %vm437_vm0, %v3104_v20, inf  ;;  %624 = vst.msk [vmem:[#allocation2 + $0x10] sm:$0xff] %vm437_vm0, %v2693_v22 }
 0x209   : > { %645 = vmin.xlane.f32.xlu2 %v644_v23 }
 0x20a   : > { %v488_v25 = vpop.xlane.xlu2 %487 }
 0x20b   : > { %v489_v27 = vcvt.f32.s32 %v488_v25 }
 0x20d   : > { %v492_v28 = vadd.s32 %v491_v26, %v489_v27 }
 0x20f   : > { %vm598_vm2 = vcmp.eq.s32.totalorder %v3042_v53, %v492_v28  ;;  %v2032_v4 = vld [vmem:[#allocation2 + $0x10] sm:$0xff] }
 0x210   : > { %v2691_v41 = vsel %vm598_vm2, 1.0, %v2919_v21  ;;  %v3114_v31 = vsel %vm598_vm2, 1e+30, %v3005_v57  ;;  %v535_v57 = vcvt.f32.s32 %v3083_v52  ;;  %v551_v52 = vshll.u32 %v550_v40, 16 }
 0x211   : > { %622 = vst.msk [vmem:[#allocation2] sm:$0xff] %vm437_vm0, %v2691_v41  ;;  %v638_v32 = vsel %vm437_vm0, %v3114_v31, inf }
 0x212   : > { %v3119_v33 = vpop.xlane.xlu2 %588  ;;  %639 = vmin.xlane.f32.xlu1 %v638_v32  ;;  %v503_v34 = vpop.xlane.xlu1 %502  ;;  %v536_v51 = vshll.u32 %v535_v57, 16 }
 0x213   : > { %v504_v36 = vcvt.f32.s32 %v503_v34  ;;  %vm590_vm3 = vcmp.eq.f32.partialorder %v3079_v47, %v3119_v33  ;;  %v595_v34 = vcvt.f32.s32 %v3119_v33 }
 0x214   : > { %v591_v42 = vsel %vm590_vm3, %v586_v43, inf }
 0x215   : > { %v507_v39 = vadd.s32 %v506_v35, %v504_v36 }
 0x217   : > { %vm599_vm4 = vcmp.eq.s32.totalorder %v3042_v53, %v507_v39  ;;  %v596_v39 = vshll.u32 %v595_v34, 16 }
 0x218   : > { %v2030_v44 = vld [vmem:[#allocation2] sm:$0xff]  ;;  %v2692_v45 = vsel %vm599_vm4, 1.0, %v2919_v21  ;;  %v3129_v46 = vsel %vm599_vm4, 1e+30, %v2990_v30  ;;  %v565_v30 = vcvt.f32.s32 %v3089_v58 }
 0x219   : > { %2755 = vmatmul.msk.f32.vlgmr.msra.gmra.mxu0 %vm437_vm0, %v2030_v44  ;;  %623 = vst.msk [vmem:[#allocation2 + $0x8] sm:$0xff] %vm437_vm0, %v2692_v45  ;;  %v641_v47 = vsel %vm437_vm0, %v3129_v46, inf }
 0x21a   : > { %v548_v48 = vpop.xlane.xlu2 %547  ;;  %592 = vmin.xlane.f32.xlu1 %v591_v42  ;;  %v533_v49 = vpop.xlane.xlu1 %532  ;;  %642 = vmin.xlane.f32.xlu0 %v641_v47  ;;  %v566_v0 = vshll.u32 %v565_v30, 16 }
 0x21b   : > { %v549_v54 = vcvt.f32.s32 %v548_v48  ;;  %v534_v16 = vcvt.f32.s32 %v533_v49 }
 0x21d   : > { %v552_v19 = vadd.s32 %v551_v52, %v549_v54  ;;  %v537_v55 = vadd.s32 %v536_v51, %v534_v16 }
 0x21f   : > { %vm602_vm5 = vcmp.eq.s32.totalorder %v3042_v53, %v552_v19  ;;  %vm601_vm6 = vcmp.eq.s32.totalorder %v3042_v53, %v537_v55 }
 0x220   : > { %v2031_v18 = vld [vmem:[#allocation2 + $0x8] sm:$0xff]  ;;  %v2695_v56 = vsel %vm602_vm5, 1.0, %v2919_v21  ;;  %v3140_v59 = vsel %vm602_vm5, 1e+30, %v3017_v10  ;;  %v2694_v60 = vsel %vm601_vm6, 1.0, %v2919_v21 }
 0x221   : > { %2756 = vmatmul.msk.f32.gmra.mxu0 %vm437_vm0, %v2031_v18  ;;  %626 = vst.msk [vmem:[#allocation2 + $0x20] sm:$0xff] %vm437_vm0, %v2695_v56  ;;  %v650_v61 = vsel %vm437_vm0, %v3140_v59, inf  ;;  %v3148_v63 = vsel %vm601_vm6, 1e+30, %v3012_v2 }
 0x222   : > { %651 = vmin.xlane.f32.xlu1 %v650_v61  ;;  %625 = vst.msk [vmem:[#allocation2 + $0x18] sm:$0xff] %vm437_vm0, %v2694_v60  ;;  %v647_v58 = vsel %vm437_vm0, %v3148_v63, inf }
 0x223   : > { %648 = vmin.xlane.f32.xlu0 %v647_v58  ;;  %v563_v10 = vpop.xlane.xlu0 %562 }
 0x224   : > { %v564_v1 = vcvt.f32.s32 %v563_v10 }
 0x226   : > { %v567_v3 = vadd.s32 %v566_v0, %v564_v1 }
 0x228   : > { %vm603_vm7 = vcmp.eq.s32.totalorder %v3042_v53, %v567_v3 }
 0x229   : > { %2757 = vmatmul.msk.f32.gmra.mxu0 %vm437_vm0, %v2032_v4  ;;  %v3156_v5 = vsel %vm603_vm7, 1e+30, %v3024_v24  ;;  %v2696_v2 = vsel %vm603_vm7, 1.0, %v2919_v21  ;;  %v2033_v8 = vld [vmem:[#allocation2 + $0x18] sm:$0xff]  ;;  %v2034_v24 = vld [vmem:[#allocation2 + $0x20] sm:$0xff] }
 0x22a   : > { %v653_v6 = vsel %vm437_vm0, %v3156_v5, inf  ;;  %627 = vst.msk [vmem:[#allocation2 + $0x28] sm:$0xff] %vm437_vm0, %v2696_v2 }
 0x22b   : > { %654 = vmin.xlane.f32.xlu2 %v653_v6 }
 0x231   : > { %2758 = vmatmul.msk.f32.gmra.mxu0 %vm437_vm0, %v2033_v8  ;;  %v2035_v17 = vld [vmem:[#allocation2 + $0x28] sm:$0xff] }
 0x232   : > { %v578_v9 = vpop.xlane.xlu2 %577 }
 0x233   : > { %v579_v12 = vcvt.f32.s32 %v578_v9 }
 0x235   : > { %v582_v13 = vadd.s32 %v581_v11, %v579_v12 }
 0x237   : > { %vm604_vm8 = vcmp.eq.s32.totalorder %v3042_v53, %v582_v13 }
 0x238   : > { %v2697_v14 = vsel %vm604_vm8, 1.0, %v2919_v21  ;;  %v3167_v15 = vsel %vm604_vm8, 1e+30, %v3031_v37 }
 0x239   : > { %2759 = vmatmul.msk.f32.gmra.mxu0 %vm437_vm0, %v2034_v24  ;;  %628 = vst.msk [vmem:[#allocation2 + $0x30] sm:$0xff] %vm437_vm0, %v2697_v14  ;;  %v656_v62 = vsel %vm437_vm0, %v3167_v15, inf }
 0x23a   : > { %657 = vmin.xlane.f32.xlu1 %v656_v62 }
 0x240   : > { %v2036_v22 = vld [vmem:[#allocation2 + $0x30] sm:$0xff] }
 0x241   : > { %2760 = vmatmul.msk.f32.gmra.mxu0 %vm437_vm0, %v2035_v17 }
 0x249   : > { %2761 = vmatmul.msk.f32.gmra.mxu0 %vm437_vm0, %v2036_v22 }
 0x27c   : > { %v646_v23 = vpop.xlane.xlu2 %645 }
 0x27d   : > { %vm664_vm9 = vcmp.le.f32.partialorder %v3104_v20, %v646_v23 }
 0x27e   : > { %v672_v37 = vsel %vm664_vm9, %v3042_v53, 64 }
 0x27f   : > { %v3178_v25 = vsel %vm437_vm0, %v672_v37, 2147483647 }
 0x280   : > { %v710_v26 = vshra.s32 %v3178_v25, 16  ;;  %v709_v14 = vand.u32 65535, %v3178_v25 }
 0x282   : > { %v3181_v27 = vcvt.s32.f32 %v710_v26  ;;  %v711_v17 = vcvt.s32.f32 %v709_v14 }
 0x284   : > { %713 = vmin.xlane.f32.xlu1 %v3181_v27 }
 0x285   : > { %v640_v28 = vpop.xlane.xlu1 %639 }
 0x286   : > { %vm662_vm10 = vcmp.le.f32.partialorder %v3114_v31, %v640_v28 }
 0x287   : > { %v670_v29 = vsel %vm662_vm10, %v3042_v53, 64 }
 0x288   : > { %v3187_v41 = vsel %vm437_vm0, %v670_v29, 2147483647 }
 0x289   : > { %v680_v32 = vshra.s32 %v3187_v41, 16  ;;  %v679_v23 = vand.u32 65535, %v3187_v41 }
 0x28b   : > { %v3191_v35 = vcvt.s32.f32 %v680_v32  ;;  %v681_v26 = vcvt.s32.f32 %v679_v23 }
 0x28d   : > { %v593_v36 = vpop.xlane.xlu1 %592  ;;  %683 = vmin.xlane.f32.xlu0 %v3191_v35  ;;  %v643_v38 = vpop.xlane.xlu0 %642 }
 0x28e   : > { %v594_v57 = vcvt.f32.s32 %v593_v36  ;;  %vm663_vm11 = vcmp.le.f32.partialorder %v3129_v46, %v643_v38 }
 0x28f   : > { %v671_v40 = vsel %vm663_vm11, %v3042_v53, 64 }
 0x290   : > { %v597_v43 = vadd.s32 %v596_v39, %v594_v57  ;;  %v3197_v44 = vsel %vm437_vm0, %v671_v40, 2147483647 }
 0x291   : > { %v695_v45 = vshra.s32 %v3197_v44, 16  ;;  %v694_v29 = vand.u32 65535, %v3197_v44 }
 0x292   : > { %vm605_vm12 = vcmp.eq.s32.totalorder %v3042_v53, %v597_v43 }
 0x293   : > { %v2698_v33 = vsel %vm605_vm12, 1.0, %v2919_v21  ;;  %v3204_v42 = vsel %vm605_vm12, 1e+30, %v3038_v50  ;;  %v3206_v47 = vcvt.s32.f32 %v695_v45  ;;  %v696_v36 = vcvt.s32.f32 %v694_v29 }
 0x294   : > { %629 = vst.msk [vmem:[#allocation2 + $0x38] sm:$0xff] %vm437_vm0, %v2698_v33  ;;  %v659_v48 = vsel %vm437_vm0, %v3204_v42, inf }
 0x295   : > { %v652_v49 = vpop.xlane.xlu1 %651  ;;  %660 = vmin.xlane.f32.xlu0 %v659_v48  ;;  %698 = vmin.xlane.f32.xlu2 %v3206_v47 }
 0x296   : > { %vm666_vm14 = vcmp.le.f32.partialorder %v3140_v59, %v652_v49  ;;  %v649_v50 = vpop.xlane.xlu0 %648  ;;  %v2311_v51 = vpop.f32.mrf.mxu0 }
 0x297   : > { %v674_v52 = vsel %vm666_vm14, %v3042_v53, 64  ;;  %vm665_vm15 = vcmp.le.f32.partialorder %v3148_v63, %v649_v50  ;;  %2504 = vst.msk [vmem:[%s3214_s30] sm:$0xff] %vm2503_vm13, %v2311_v51 }
 0x298   : > { %v673_v54 = vsel %vm665_vm15, %v3042_v53, 64  ;;  %v3224_v16 = vsel %vm437_vm0, %v674_v52, 2147483647 }
 0x299   : > { %v740_v19 = vshra.s32 %v3224_v16, 16  ;;  %v723_v55 = vsel %vm437_vm0, %v673_v54, 2147483647  ;;  %v739_v44 = vand.u32 65535, %v3224_v16 }
 0x29a   : > { %v725_v30 = vshra.s32 %v723_v55, 16  ;;  %v724_v39 = vand.u32 65535, %v723_v55 }
 0x29b   : > { %v2037_v18 = vld [vmem:[#allocation2 + $0x38] sm:$0xff]  ;;  %v3228_v56 = vcvt.s32.f32 %v740_v19  ;;  %v741_v33 = vcvt.s32.f32 %v739_v44 }
 0x29c   : > { %2762 = vmatmul.msk.f32.gmra.mxu0 %vm437_vm0, %v2037_v18  ;;  %v727_v60 = vcvt.s32.f32 %v725_v30  ;;  %v726_v43 = vcvt.s32.f32 %v724_v39 }
 0x29d   : > { %743 = vmin.xlane.f32.xlu0 %v3228_v56 }
 0x29e   : > { %728 = vmin.xlane.f32.xlu2 %v727_v60  ;;  %v2314_v61 = vpop.f32.mrf.mxu0  ;;  %v655_v58 = vpop.xlane.xlu2 %654 }
 0x29f   : > { %2505 = vst.msk [vmem:[%s3214_s30 + $0x8] sm:$0xff] %vm2503_vm13, %v2314_v61  ;;  %vm667_vm1 = vcmp.le.f32.partialorder %v3156_v5, %v655_v58 }
 0x2a0   : > { %v675_v10 = vsel %vm667_vm1, %v3042_v53, 64 }
 0x2a1   : > { %v753_v0 = vsel %vm437_vm0, %v675_v10, 2147483647 }
 0x2a2   : > { %v755_v1 = vshra.s32 %v753_v0, 16 }
 0x2a4   : > { %v3237_v3 = vcvt.s32.f32 %v755_v1 }
 0x2a6   : > { %v2317_v4 = vpop.f32.mrf.mxu0  ;;  %758 = vmin.xlane.f32.xlu1 %v3237_v3 }
 0x2a7   : > { %2506 = vst.msk [vmem:[%s3214_s30 + $0x10] sm:$0xff] %vm2503_vm13, %v2317_v4 }
 0x2ad   : > { %v658_v2 = vpop.xlane.xlu1 %657 }
 0x2ae   : > { %vm668_vm2 = vcmp.le.f32.partialorder %v3167_v15, %v658_v2  ;;  %v2320_v6 = vpop.f32.mrf.mxu0 }
 0x2af   : > { %v676_v7 = vsel %vm668_vm2, %v3042_v53, 64  ;;  %2507 = vst.msk [vmem:[%s3214_s30 + $0x18] sm:$0xff] %vm2503_vm13, %v2320_v6 }
 0x2b0   : > { %v768_v8 = vsel %vm437_vm0, %v676_v7, 2147483647 }
 0x2b1   : > { %v770_v9 = vshra.s32 %v768_v8, 16  ;;  %v769_v54 = vand.u32 65535, %v768_v8 }
 0x2b3   : > { %v772_v11 = vcvt.s32.f32 %v770_v9  ;;  %v771_v19 = vcvt.s32.f32 %v769_v54 }
 0x2b5   : > { %773 = vmin.xlane.f32.xlu0 %v772_v11 }
 0x2b6   : > { %v2323_v12 = vpop.f32.mrf.mxu0 }
 0x2b7   : > { %2508 = vst.msk [vmem:[%s3214_s30 + $0x20] sm:$0xff] %vm2503_vm13, %v2323_v12 }
 0x2be   : > { %v2326_v13 = vpop.f32.mrf.mxu0 }
 0x2bf   : > { %2509 = vst.msk [vmem:[%s3214_s30 + $0x28] sm:$0xff] %vm2503_vm13, %v2326_v13 }
 0x2c6   : > { %v2329_v24 = vpop.f32.mrf.mxu0 }
 0x2c7   : > { %2510 = vst.msk [vmem:[%s3214_s30 + $0x30] sm:$0xff] %vm2503_vm13, %v2329_v24 }
 0x2f7   : > { %v714_v62 = vpop.xlane.xlu1 %713 }
 0x2f8   : > { %vm715_vm3 = vcmp.eq.f32.partialorder %v3181_v27, %v714_v62  ;;  %v720_v30 = vcvt.f32.s32 %v714_v62 }
 0x2f9   : > { %v716_v22 = vsel %vm715_vm3, %v711_v17, inf }
 0x2fa   : > { %717 = vmin.xlane.f32.xlu0 %v716_v22 }
 0x300   : > { %v684_v37 = vpop.xlane.xlu0 %683 }
 0x301   : > { %vm685_vm4 = vcmp.eq.f32.partialorder %v3191_v35, %v684_v37  ;;  %v690_v58 = vcvt.f32.s32 %v684_v37 }
 0x302   : > { %v686_v28 = vsel %vm685_vm4, %v681_v26, inf }
 0x303   : > { %687 = vmin.xlane.f32.xlu2 %v686_v28  ;;  %v691_v4 = vshll.u32 %v690_v58, 16 }
 0x308   : > { %v699_v32 = vpop.xlane.xlu2 %698  ;;  %v661_v34 = vpop.xlane.xlu0 %660 }
 0x309   : > { %vm669_vm5 = vcmp.le.f32.partialorder %v3204_v42, %v661_v34  ;;  %vm700_vm6 = vcmp.eq.f32.partialorder %v3206_v47, %v699_v32  ;;  %v754_v47 = vand.u32 65535, %v753_v0  ;;  %v705_v7 = vcvt.f32.s32 %v699_v32 }
 0x30a   : > { %v677_v25 = vsel %vm669_vm5, %v3042_v53, 64  ;;  %v701_v27 = vsel %vm700_vm6, %v696_v36, inf }
 0x30b   : > { %702 = vmin.xlane.f32.xlu1 %v701_v27  ;;  %v783_v41 = vsel %vm437_vm0, %v677_v25, 2147483647  ;;  %v756_v51 = vcvt.s32.f32 %v754_v47  ;;  %v706_v12 = vshll.u32 %v705_v7, 16 }
 0x30c   : > { %v785_v38 = vshra.s32 %v783_v41, 16  ;;  %v784_v24 = vand.u32 65535, %v783_v41 }
 0x30e   : > { %v3262_v35 = vcvt.s32.f32 %v785_v38  ;;  %v786_v17 = vcvt.s32.f32 %v784_v24 }
 0x310   : > { %788 = vmin.xlane.f32.xlu2 %v3262_v35  ;;  %v3267_v40 = vpop.xlane.xlu0 %743 }
 0x311   : > { %v3265_v57 = vpop.xlane.xlu2 %728  ;;  %vm745_vm8 = vcmp.eq.f32.partialorder %v3228_v56, %v3267_v40  ;;  %v721_v56 = vshll.u32 %v720_v30, 16 }
 0x312   : > { %vm730_vm7 = vcmp.eq.f32.partialorder %v727_v60, %v3265_v57  ;;  %v746_v48 = vsel %vm745_vm8, %v741_v33, inf }
 0x313   : > { %v731_v45 = vsel %vm730_vm7, %v726_v43, inf }
 0x314   : > { %732 = vmin.xlane.f32.xlu1 %v731_v45 }
 0x318   : > { %747 = vmin.xlane.f32.xlu2 %v746_v48 }
 0x319   : > { %v3273_v49 = vpop.xlane.xlu1 %758  ;;  %v2332_v50 = vpop.f32.mrf.mxu0 }
 0x31a   : > { %2511 = vst.msk [vmem:[%s3214_s30 + $0x38] sm:$0xff] %vm2503_vm13, %v2332_v50  ;;  %vm760_vm9 = vcmp.eq.f32.partialorder %v3237_v3, %v3273_v49  ;;  %v765_v41 = vcvt.f32.s32 %v3273_v49 }
 0x31b   : > { %v761_v52 = vsel %vm760_vm9, %v756_v51, inf }
 0x31c   : > { %762 = vmin.xlane.f32.xlu0 %v761_v52  ;;  %v766_v45 = vshll.u32 %v765_v41, 16 }
 0x328   : > { %v3279_v16 = vpop.xlane.xlu0 %773 }
 0x329   : > { %vm775_vm10 = vcmp.eq.f32.partialorder %v772_v11, %v3279_v16  ;;  %v780_v54 = vcvt.f32.s32 %v3279_v16 }
 0x32a   : > { %v776_v55 = vsel %vm775_vm10, %v771_v19, inf }
 0x32b   : > { %777 = vmin.xlane.f32.xlu2 %v776_v55  ;;  %v781_v30 = vshll.u32 %v780_v54, 16 }
 0x36d   : > { %v718_v18 = vpop.xlane.xlu0 %717 }
 0x36e   : > { %v719_v60 = vcvt.f32.s32 %v718_v18 }
 0x370   : > { %v722_v61 = vadd.s32 %v721_v56, %v719_v60 }
 0x372   : > { %vm800_vm11 = vcmp.eq.s32.totalorder %v3042_v53, %v722_v61 }
 0x373   : > { %v3284_v10 = vsel %vm800_vm11, 1e+30, %v3104_v20  ;;  %v2701_v0 = vsel %vm800_vm11, 1.0, %v2919_v21 }
 0x374   : > { %v844_v1 = vsel %vm437_vm0, %v3284_v10, inf  ;;  %824 = vst.msk [vmem:[#allocation2 + $0x50] sm:$0xff] %vm437_vm0, %v2701_v0 }
 0x375   : > { %845 = vmin.xlane.f32.xlu2 %v844_v1 }
 0x376   : > { %v688_v3 = vpop.xlane.xlu2 %687 }
 0x377   : > { %v689_v2 = vcvt.f32.s32 %v688_v3 }
 0x379   : > { %v692_v6 = vadd.s32 %v691_v4, %v689_v2 }
 0x37b   : > { %vm798_vm12 = vcmp.eq.s32.totalorder %v3042_v53, %v692_v6  ;;  %v2040_v50 = vld [vmem:[#allocation2 + $0x50] sm:$0xff] }
 0x37c   : > { %v3292_v8 = vsel %vm798_vm12, 1e+30, %v3114_v31  ;;  %v2699_v20 = vsel %vm798_vm12, 1.0, %v2919_v21  ;;  %v735_v31 = vcvt.f32.s32 %v3265_v57 }
 0x37d   : > { %v838_v9 = vsel %vm437_vm0, %v3292_v8, inf  ;;  %822 = vst.msk [vmem:[#allocation2 + $0x40] sm:$0xff] %vm437_vm0, %v2699_v20 }
 0x37e   : > { %v703_v11 = vpop.xlane.xlu1 %702  ;;  %839 = vmin.xlane.f32.xlu1 %v838_v9  ;;  %v736_v32 = vshll.u32 %v735_v31, 16 }
 0x37f   : > { %v704_v13 = vcvt.f32.s32 %v703_v11 }
 0x381   : > { %v707_v14 = vadd.s32 %v706_v12, %v704_v13 }
 0x383   : > { %v3298_v62 = vpop.xlane.xlu2 %788  ;;  %vm799_vm14 = vcmp.eq.s32.totalorder %v3042_v53, %v707_v14 }
 0x384   : > { %v2038_v22 = vld [vmem:[#allocation2 + $0x40] sm:$0xff]  ;;  %v3303_v23 = vsel %vm799_vm14, 1e+30, %v3129_v46  ;;  %v2700_v37 = vsel %vm799_vm14, 1.0, %v2919_v21  ;;  %vm790_vm15 = vcmp.eq.f32.partialorder %v3262_v35, %v3298_v62  ;;  %v750_v46 = vcvt.f32.s32 %v3267_v40 }
 0x385   : > { %2763 = vmatmul.msk.f32.gmra.mxu0 %vm437_vm0, %v2038_v22  ;;  %v841_v26 = vsel %vm437_vm0, %v3303_v23, inf  ;;  %823 = vst.msk [vmem:[#allocation2 + $0x48] sm:$0xff] %vm437_vm0, %v2700_v37  ;;  %v791_v28 = vsel %vm790_vm15, %v786_v17, inf  ;;  %v795_v11 = vcvt.f32.s32 %v3298_v62 }
 0x386   : > { %842 = vmin.xlane.f32.xlu0 %v841_v26  ;;  %792 = vmin.xlane.f32.xlu1 %v791_v28  ;;  %v751_v27 = vshll.u32 %v750_v46, 16 }
 0x387   : > { %v733_v29 = vpop.xlane.xlu1 %732  ;;  %v796_v14 = vshll.u32 %v795_v11, 16 }
 0x388   : > { %v734_v34 = vcvt.f32.s32 %v733_v29 }
 0x38a   : > { %v737_v36 = vadd.s32 %v736_v32, %v734_v34 }
 0x38b   : > { %v748_v25 = vpop.xlane.xlu2 %747 }
 0x38c   : > { %v749_v38 = vcvt.f32.s32 %v748_v25  ;;  %v2039_v39 = vld [vmem:[#allocation2 + $0x48] sm:$0xff]  ;;  %vm801_vm1 = vcmp.eq.s32.totalorder %v3042_v53, %v737_v36 }
 0x38d   : > { %2764 = vmatmul.msk.f32.gmra.mxu0 %vm437_vm0, %v2039_v39  ;;  %v3317_v35 = vsel %vm801_vm1, 1e+30, %v3148_v63  ;;  %v2702_v57 = vsel %vm801_vm1, 1.0, %v2919_v21 }
 0x38e   : > { %v752_v43 = vadd.s32 %v751_v27, %v749_v38  ;;  %v847_v40 = vsel %vm437_vm0, %v3317_v35, inf  ;;  %825 = vst.msk [vmem:[#allocation2 + $0x58] sm:$0xff] %vm437_vm0, %v2702_v57 }
 0x38f   : > { %848 = vmin.xlane.f32.xlu0 %v847_v40  ;;  %v763_v44 = vpop.xlane.xlu0 %762 }
 0x390   : > { %v764_v33 = vcvt.f32.s32 %v763_v44  ;;  %vm802_vm2 = vcmp.eq.s32.totalorder %v3042_v53, %v752_v43 }
 0x391   : > { %v3325_v47 = vsel %vm802_vm2, 1e+30, %v3140_v59  ;;  %v2703_v63 = vsel %vm802_vm2, 1.0, %v2919_v21 }
 0x392   : > { %v767_v48 = vadd.s32 %v766_v45, %v764_v33  ;;  %v850_v49 = vsel %vm437_vm0, %v3325_v47, inf  ;;  %826 = vst.msk [vmem:[#allocation2 + $0x60] sm:$0xff] %vm437_vm0, %v2703_v63 }
 0x393   : > { %851 = vmin.xlane.f32.xlu1 %v850_v49 }
 0x394   : > { %vm803_vm3 = vcmp.eq.s32.totalorder %v3042_v53, %v767_v48 }
 0x395   : > { %2765 = vmatmul.msk.f32.gmra.mxu0 %vm437_vm0, %v2040_v50  ;;  %v3334_v51 = vsel %vm803_vm3, 1e+30, %v3156_v5  ;;  %v2704_v59 = vsel %vm803_vm3, 1.0, %v2919_v21  ;;  %v2041_v19 = vld [vmem:[#allocation2 + $0x58] sm:$0xff] }
 0x396   : > { %v853_v52 = vsel %vm437_vm0, %v3334_v51, inf  ;;  %827 = vst.msk [vmem:[#allocation2 + $0x68] sm:$0xff] %vm437_vm0, %v2704_v59 }
 0x397   : > { %854 = vmin.xlane.f32.xlu2 %v853_v52 }
 0x399   : > { %v2042_v5 = vld [vmem:[#allocation2 + $0x60] sm:$0xff] }
 0x39d   : > { %2766 = vmatmul.msk.f32.gmra.mxu0 %vm437_vm0, %v2041_v19  ;;  %v2043_v58 = vld [vmem:[#allocation2 + $0x68] sm:$0xff] }
 0x39e   : > { %v778_v55 = vpop.xlane.xlu2 %777 }
 0x39f   : > { %v779_v18 = vcvt.f32.s32 %v778_v55 }
 0x3a1   : > { %v782_v56 = vadd.s32 %v781_v30, %v779_v18 }
 0x3a3   : > { %vm804_vm4 = vcmp.eq.s32.totalorder %v3042_v53, %v782_v56 }
 0x3a4   : > { %v3344_v60 = vsel %vm804_vm4, 1e+30, %v3167_v15  ;;  %v2705_v61 = vsel %vm804_vm4, 1.0, %v2919_v21 }
 0x3a5   : > { %2767 = vmatmul.msk.f32.gmra.mxu0 %vm437_vm0, %v2042_v5  ;;  %v856_v16 = vsel %vm437_vm0, %v3344_v60, inf  ;;  %828 = vst.msk [vmem:[#allocation2 + $0x70] sm:$0xff] %vm437_vm0, %v2705_v61 }
 0x3a6   : > { %857 = vmin.xlane.f32.xlu1 %v856_v16 }
 0x3ac   : > { %v2044_v0 = vld [vmem:[#allocation2 + $0x70] sm:$0xff] }
 0x3ad   : > { %2768 = vmatmul.msk.f32.gmra.mxu0 %vm437_vm0, %v2043_v58 }
 0x3b5   : > { %2769 = vmatmul.msk.f32.gmra.mxu0 %vm437_vm0, %v2044_v0 }
 0x3e8   : > { %v846_v1 = vpop.xlane.xlu2 %845 }
 0x3e9   : > { %vm864_vm5 = vcmp.le.f32.partialorder %v3284_v10, %v846_v1 }
 0x3ea   : > { %v872_v15 = vsel %vm864_vm5, %v3042_v53, 64 }
 0x3eb   : > { %v3356_v3 = vsel %vm437_vm0, %v872_v15, 2147483647 }
 0x3ec   : > { %v910_v4 = vshra.s32 %v3356_v3, 16  ;;  %v909_v61 = vand.u32 65535, %v3356_v3 }
 0x3ee   : > { %v3359_v2 = vcvt.s32.f32 %v910_v4  ;;  %v911_v58 = vcvt.s32.f32 %v909_v61 }
 0x3f0   : > { %913 = vmin.xlane.f32.xlu1 %v3359_v2 }
 0x3f1   : > { %v840_v6 = vpop.xlane.xlu1 %839 }
 0x3f2   : > { %vm862_vm6 = vcmp.le.f32.partialorder %v3292_v8, %v840_v6 }
 0x3f3   : > { %v870_v7 = vsel %vm862_vm6, %v3042_v53, 64 }
 0x3f4   : > { %v3365_v20 = vsel %vm437_vm0, %v870_v7, 2147483647 }
 0x3f5   : > { %v880_v9 = vshra.s32 %v3365_v20, 16  ;;  %v879_v1 = vand.u32 65535, %v3365_v20 }
 0x3f7   : > { %v3369_v12 = vcvt.s32.f32 %v880_v9  ;;  %v881_v4 = vcvt.s32.f32 %v879_v1 }
 0x3f9   : > { %883 = vmin.xlane.f32.xlu0 %v3369_v12  ;;  %v793_v13 = vpop.xlane.xlu1 %792  ;;  %v843_v24 = vpop.xlane.xlu0 %842 }
 0x3fa   : > { %v794_v17 = vcvt.f32.s32 %v793_v13  ;;  %vm863_vm7 = vcmp.le.f32.partialorder %v3303_v23, %v843_v24 }
 0x3fb   : > { %v871_v31 = vsel %vm863_vm7, %v3042_v53, 64 }
 0x3fc   : > { %v797_v22 = vadd.s32 %v796_v14, %v794_v17  ;;  %v3375_v37 = vsel %vm437_vm0, %v871_v31, 2147483647 }
 0x3fd   : > { %v895_v26 = vshra.s32 %v3375_v37, 16  ;;  %v894_v7 = vand.u32 65535, %v3375_v37 }
 0x3fe   : > { %vm805_vm8 = vcmp.eq.s32.totalorder %v3042_v53, %v797_v22 }
 0x3ff   : > { %v3380_v62 = vsel %vm805_vm8, 1e+30, %v3204_v42  ;;  %v2706_v28 = vsel %vm805_vm8, 1.0, %v2919_v21  ;;  %v3383_v29 = vcvt.s32.f32 %v895_v26  ;;  %v896_v13 = vcvt.s32.f32 %v894_v7 }
 0x400   : > { %v859_v32 = vsel %vm437_vm0, %v3380_v62, inf  ;;  %829 = vst.msk [vmem:[#allocation2 + $0x78] sm:$0xff] %vm437_vm0, %v2706_v28 }
 0x401   : > { %860 = vmin.xlane.f32.xlu0 %v859_v32  ;;  %898 = vmin.xlane.f32.xlu2 %v3383_v29 }
 0x402   : > { %v849_v46 = vpop.xlane.xlu0 %848  ;;  %v2335_v34 = vpop.f32.mrf.mxu0 }
 0x403   : > { %vm865_vm9 = vcmp.le.f32.partialorder %v3317_v35, %v849_v46  ;;  %2512 = vst.msk [vmem:[%s3214_s30 + $0x40] sm:$0xff] %vm2503_vm13, %v2335_v34 }
 0x404   : > { %v873_v42 = vsel %vm865_vm9, %v3042_v53, 64 }
 0x405   : > { %v3394_v36 = vsel %vm437_vm0, %v873_v42, 2147483647 }
 0x406   : > { %v852_v25 = vpop.xlane.xlu1 %851  ;;  %v925_v27 = vshra.s32 %v3394_v36, 16 }
 0x407   : > { %vm866_vm10 = vcmp.le.f32.partialorder %v3325_v47, %v852_v25  ;;  %v2045_v41 = vld [vmem:[#allocation2 + $0x78] sm:$0xff] }
 0x408   : > { %v874_v38 = vsel %vm866_vm10, %v3042_v53, 64  ;;  %2770 = vmatmul.msk.f32.gmra.mxu0 %vm437_vm0, %v2045_v41  ;;  %v3400_v39 = vcvt.s32.f32 %v925_v27 }
 0x409   : > { %v3403_v57 = vsel %vm437_vm0, %v874_v38, 2147483647 }
 0x40a   : > { %928 = vmin.xlane.f32.xlu2 %v3400_v39  ;;  %v2338_v43 = vpop.f32.mrf.mxu0  ;;  %v855_v40 = vpop.xlane.xlu2 %854  ;;  %v940_v44 = vshra.s32 %v3403_v57, 16  ;;  %v939_v22 = vand.u32 65535, %v3403_v57 }
 0x40b   : > { %2513 = vst.msk [vmem:[%s3214_s30 + $0x48] sm:$0xff] %vm2503_vm13, %v2338_v43  ;;  %vm867_vm11 = vcmp.le.f32.partialorder %v3334_v51, %v855_v40 }
 0x40c   : > { %v875_v45 = vsel %vm867_vm11, %v3042_v53, 64  ;;  %v942_v33 = vcvt.s32.f32 %v940_v44  ;;  %v941_v28 = vcvt.s32.f32 %v939_v22 }
 0x40d   : > { %v953_v63 = vsel %vm437_vm0, %v875_v45, 2147483647 }
 0x40e   : > { %943 = vmin.xlane.f32.xlu0 %v942_v33  ;;  %v955_v48 = vshra.s32 %v953_v63, 16 }
 0x410   : > { %v3412_v49 = vcvt.s32.f32 %v955_v48 }
 0x412   : > { %v2341_v50 = vpop.f32.mrf.mxu0  ;;  %958 = vmin.xlane.f32.xlu1 %v3412_v49 }
 0x413   : > { %2514 = vst.msk [vmem:[%s3214_s30 + $0x50] sm:$0xff] %vm2503_vm13, %v2341_v50 }
 0x419   : > { %v858_v59 = vpop.xlane.xlu1 %857 }
 0x41a   : > { %vm868_vm12 = vcmp.le.f32.partialorder %v3344_v60, %v858_v59  ;;  %v2344_v52 = vpop.f32.mrf.mxu0 }
 0x41b   : > { %v876_v54 = vsel %vm868_vm12, %v3042_v53, 64  ;;  %2515 = vst.msk [vmem:[%s3214_s30 + $0x58] sm:$0xff] %vm2503_vm13, %v2344_v52 }
 0x41c   : > { %v968_v19 = vsel %vm437_vm0, %v876_v54, 2147483647 }
 0x41d   : > { %v970_v55 = vshra.s32 %v968_v19, 16  ;;  %v969_v25 = vand.u32 65535, %v968_v19 }
 0x41f   : > { %v972_v30 = vcvt.s32.f32 %v970_v55  ;;  %v971_v41 = vcvt.s32.f32 %v969_v25 }
 0x421   : > { %973 = vmin.xlane.f32.xlu0 %v972_v30 }
 0x422   : > { %v2347_v18 = vpop.f32.mrf.mxu0 }
 0x423   : > { %2516 = vst.msk [vmem:[%s3214_s30 + $0x60] sm:$0xff] %vm2503_vm13, %v2347_v18 }
 0x42a   : > { %v2350_v56 = vpop.f32.mrf.mxu0 }
 0x42b   : > { %2517 = vst.msk [vmem:[%s3214_s30 + $0x68] sm:$0xff] %vm2503_vm13, %v2350_v56 }
 0x432   : > { %v2353_v5 = vpop.f32.mrf.mxu0 }
 0x433   : > { %2518 = vst.msk [vmem:[%s3214_s30 + $0x70] sm:$0xff] %vm2503_vm13, %v2353_v5 }
 0x463   : > { %v914_v16 = vpop.xlane.xlu1 %913 }
 0x464   : > { %vm915_vm14 = vcmp.eq.f32.partialorder %v3359_v2, %v914_v16 }
 0x465   : > { %v916_v0 = vsel %vm915_vm14, %v911_v58, inf }
 0x466   : > { %917 = vmin.xlane.f32.xlu0 %v916_v0 }
 0x46c   : > { %v884_v15 = vpop.xlane.xlu0 %883 }
 0x46d   : > { %vm885_vm15 = vcmp.eq.f32.partialorder %v3369_v12, %v884_v15  ;;  %v924_v12 = vand.u32 65535, %v3394_v36  ;;  %v890_v45 = vcvt.f32.s32 %v884_v15 }
 0x46e   : > { %v886_v6 = vsel %vm885_vm15, %v881_v4, inf }
 0x46f   : > { %887 = vmin.xlane.f32.xlu2 %v886_v6  ;;  %v926_v31 = vcvt.s32.f32 %v924_v12  ;;  %v891_v50 = vshll.u32 %v890_v45, 16 }
 0x474   : > { %v899_v9 = vpop.xlane.xlu2 %898  ;;  %v861_v11 = vpop.xlane.xlu0 %860 }
 0x475   : > { %vm869_vm1 = vcmp.le.f32.partialorder %v3380_v62, %v861_v11  ;;  %vm900_vm2 = vcmp.eq.f32.partialorder %v3383_v29, %v899_v9  ;;  %v954_v29 = vand.u32 65535, %v953_v63  ;;  %v905_v54 = vcvt.f32.s32 %v899_v9 }
 0x476   : > { %v877_v3 = vsel %vm869_vm1, %v3042_v53, 64  ;;  %v901_v2 = vsel %vm900_vm2, %v896_v13, inf }
 0x477   : > { %v983_v20 = vsel %vm437_vm0, %v877_v3, 2147483647  ;;  %902 = vmin.xlane.f32.xlu1 %v901_v2  ;;  %v956_v42 = vcvt.s32.f32 %v954_v29  ;;  %v906_v18 = vshll.u32 %v905_v54, 16 }
 0x478   : > { %v985_v24 = vshra.s32 %v983_v20, 16  ;;  %v984_v5 = vand.u32 65535, %v983_v20 }
 0x47a   : > { %v3438_v14 = vcvt.s32.f32 %v985_v24  ;;  %v986_v58 = vcvt.s32.f32 %v984_v5 }
 0x47c   : > { %988 = vmin.xlane.f32.xlu2 %v3438_v14 }
 0x47d   : > { %v3441_v17 = vpop.xlane.xlu2 %928 }
 0x47e   : > { %vm930_vm3 = vcmp.eq.f32.partialorder %v3400_v39, %v3441_v17  ;;  %v920_v39 = vcvt.f32.s32 %v914_v16 }
 0x47f   : > { %v931_v37 = vsel %vm930_vm3, %v926_v31, inf }
 0x480   : > { %932 = vmin.xlane.f32.xlu1 %v931_v37  ;;  %v921_v43 = vshll.u32 %v920_v39, 16 }
 0x481   : > { %v3446_v26 = vpop.xlane.xlu0 %943 }
 0x482   : > { %vm945_vm4 = vcmp.eq.f32.partialorder %v942_v33, %v3446_v26 }
 0x483   : > { %v946_v32 = vsel %vm945_vm4, %v941_v28, inf }
 0x484   : > { %947 = vmin.xlane.f32.xlu2 %v946_v32 }
 0x485   : > { %v3449_v46 = vpop.xlane.xlu1 %958  ;;  %v2356_v34 = vpop.f32.mrf.mxu0 }
 0x486   : > { %2519 = vst.msk [vmem:[%s3214_s30 + $0x78] sm:$0xff] %vm2503_vm13, %v2356_v34  ;;  %vm960_vm5 = vcmp.eq.f32.partialorder %v3412_v49, %v3449_v46  ;;  %v965_v20 = vcvt.f32.s32 %v3449_v46 }
 0x487   : > { %v961_v36 = vsel %vm960_vm5, %v956_v42, inf }
 0x488   : > { %962 = vmin.xlane.f32.xlu0 %v961_v36 }
 0x494   : > { %v3455_v27 = vpop.xlane.xlu0 %973 }
 0x495   : > { %vm975_vm6 = vcmp.eq.f32.partialorder %v972_v30, %v3455_v27  ;;  %v980_v25 = vcvt.f32.s32 %v3455_v27 }
 0x496   : > { %v976_v38 = vsel %vm975_vm6, %v971_v41, inf }
 0x497   : > { %977 = vmin.xlane.f32.xlu2 %v976_v38  ;;  %v981_v39 = vshll.u32 %v980_v25, 16 }
 0x4d9   : > { %v918_v57 = vpop.xlane.xlu0 %917 }
 0x4da   : > { %v919_v40 = vcvt.f32.s32 %v918_v57 }
 0x4dc   : > { %v922_v44 = vadd.s32 %v921_v43, %v919_v40 }
 0x4de   : > { %vm1000_vm7 = vcmp.eq.s32.totalorder %v3042_v53, %v922_v44 }
 0x4df   : > { %v3460_v33 = vsel %vm1000_vm7, 1e+30, %v3284_v10  ;;  %v2709_v63 = vsel %vm1000_vm7, 1.0, %v2919_v21 }
 0x4e0   : > { %v1044_v48 = vsel %vm437_vm0, %v3460_v33, inf  ;;  %1024 = vst.msk [vmem:[#allocation2 + $0x90] sm:$0xff] %vm437_vm0, %v2709_v63 }
 0x4e1   : > { %1045 = vmin.xlane.f32.xlu2 %v1044_v48 }
 0x4e2   : > { %v888_v49 = vpop.xlane.xlu2 %887 }
 0x4e3   : > { %v889_v59 = vcvt.f32.s32 %v888_v49 }
 0x4e5   : > { %v892_v52 = vadd.s32 %v891_v50, %v889_v59 }
 0x4e7   : > { %vm998_vm8 = vcmp.eq.s32.totalorder %v3042_v53, %v892_v52  ;;  %v2048_v34 = vld [vmem:[#allocation2 + $0x90] sm:$0xff] }
 0x4e8   : > { %v3468_v19 = vsel %vm998_vm8, 1e+30, %v3292_v8  ;;  %v2707_v10 = vsel %vm998_vm8, 1.0, %v2919_v21  ;;  %v935_v8 = vcvt.f32.s32 %v3441_v17 }
 0x4e9   : > { %v1038_v55 = vsel %vm437_vm0, %v3468_v19, inf  ;;  %1022 = vst.msk [vmem:[#allocation2 + $0x80] sm:$0xff] %vm437_vm0, %v2707_v10 }
 0x4ea   : > { %v903_v30 = vpop.xlane.xlu1 %902  ;;  %1039 = vmin.xlane.f32.xlu1 %v1038_v55  ;;  %v936_v9 = vshll.u32 %v935_v8, 16 }
 0x4eb   : > { %v904_v56 = vcvt.f32.s32 %v903_v30 }
 0x4ed   : > { %v907_v61 = vadd.s32 %v906_v18, %v904_v56 }
 0x4ef   : > { %v3474_v16 = vpop.xlane.xlu2 %988  ;;  %vm999_vm9 = vcmp.eq.s32.totalorder %v3042_v53, %v907_v61 }
 0x4f0   : > { %v2046_v0 = vld [vmem:[#allocation2 + $0x80] sm:$0xff]  ;;  %v3479_v1 = vsel %vm999_vm9, 1e+30, %v3303_v23  ;;  %v2708_v15 = vsel %vm999_vm9, 1.0, %v2919_v21  ;;  %vm990_vm10 = vcmp.eq.f32.partialorder %v3438_v14, %v3474_v16  ;;  %v950_v23 = vcvt.f32.s32 %v3446_v26 }
 0x4f1   : > { %2771 = vmatmul.msk.f32.vlgmr.msra.gmra.mxu1 %vm437_vm0, %v2046_v0  ;;  %v1041_v4 = vsel %vm437_vm0, %v3479_v1, inf  ;;  %1023 = vst.msk [vmem:[#allocation2 + $0x88] sm:$0xff] %vm437_vm0, %v2708_v15  ;;  %v991_v6 = vsel %vm990_vm10, %v986_v58, inf  ;;  %v966_v26 = vshll.u32 %v965_v20, 16  ;;  %v995_v30 = vcvt.f32.s32 %v3474_v16 }
 0x4f2   : > { %1042 = vmin.xlane.f32.xlu0 %v1041_v4  ;;  %992 = vmin.xlane.f32.xlu1 %v991_v6  ;;  %v951_v2 = vshll.u32 %v950_v23, 16 }
 0x4f3   : > { %v933_v7 = vpop.xlane.xlu1 %932  ;;  %v996_v61 = vshll.u32 %v995_v30, 16 }
 0x4f4   : > { %v934_v11 = vcvt.f32.s32 %v933_v7 }
 0x4f6   : > { %v937_v13 = vadd.s32 %v936_v9, %v934_v11 }
 0x4f7   : > { %v948_v3 = vpop.xlane.xlu2 %947 }
 0x4f8   : > { %v949_v24 = vcvt.f32.s32 %v948_v3  ;;  %v2047_v12 = vld [vmem:[#allocation2 + $0x88] sm:$0xff]  ;;  %vm1001_vm11 = vcmp.eq.s32.totalorder %v3042_v53, %v937_v13 }
 0x4f9   : > { %2772 = vmatmul.msk.f32.gmra.mxu1 %vm437_vm0, %v2047_v12  ;;  %v3493_v14 = vsel %vm1001_vm11, 1e+30, %v3317_v35  ;;  %v2710_v17 = vsel %vm1001_vm11, 1.0, %v2919_v21 }
 0x4fa   : > { %v952_v31 = vadd.s32 %v951_v2, %v949_v24  ;;  %v1047_v22 = vsel %vm437_vm0, %v3493_v14, inf  ;;  %1025 = vst.msk [vmem:[#allocation2 + $0x98] sm:$0xff] %vm437_vm0, %v2710_v17 }
 0x4fb   : > { %1048 = vmin.xlane.f32.xlu0 %v1047_v22  ;;  %v963_v37 = vpop.xlane.xlu0 %962 }
 0x4fc   : > { %v964_v28 = vcvt.f32.s32 %v963_v37  ;;  %vm1002_vm12 = vcmp.eq.s32.totalorder %v3042_v53, %v952_v31 }
 0x4fd   : > { %v3501_v29 = vsel %vm1002_vm12, 1e+30, %v3325_v47  ;;  %v2711_v35 = vsel %vm1002_vm12, 1.0, %v2919_v21 }
 0x4fe   : > { %v967_v32 = vadd.s32 %v966_v26, %v964_v28  ;;  %v1050_v46 = vsel %vm437_vm0, %v3501_v29, inf  ;;  %1026 = vst.msk [vmem:[#allocation2 + $0xa0] sm:$0xff] %vm437_vm0, %v2711_v35 }
 0x4ff   : > { %1051 = vmin.xlane.f32.xlu1 %v1050_v46 }
 0x500   : > { %vm1003_vm14 = vcmp.eq.s32.totalorder %v3042_v53, %v967_v32 }
 0x501   : > { %2773 = vmatmul.msk.f32.gmra.mxu1 %vm437_vm0, %v2048_v34  ;;  %v3510_v42 = vsel %vm1003_vm14, 1e+30, %v3334_v51  ;;  %v2712_v47 = vsel %vm1003_vm14, 1.0, %v2919_v21  ;;  %v2049_v41 = vld [vmem:[#allocation2 + $0x98] sm:$0xff] }
 0x502   : > { %v1053_v36 = vsel %vm437_vm0, %v3510_v42, inf  ;;  %1027 = vst.msk [vmem:[#allocation2 + $0xa8] sm:$0xff] %vm437_vm0, %v2712_v47 }
 0x503   : > { %1054 = vmin.xlane.f32.xlu2 %v1053_v36 }
 0x505   : > { %v2050_v51 = vld [vmem:[#allocation2 + $0xa0] sm:$0xff] }
 0x509   : > { %2774 = vmatmul.msk.f32.gmra.mxu1 %vm437_vm0, %v2049_v41  ;;  %v2051_v45 = vld [vmem:[#allocation2 + $0xa8] sm:$0xff] }
 0x50a   : > { %v978_v38 = vpop.xlane.xlu2 %977 }
 0x50b   : > { %v979_v57 = vcvt.f32.s32 %v978_v38 }
 0x50d   : > { %v982_v43 = vadd.s32 %v981_v39, %v979_v57 }
 0x50f   : > { %vm1004_vm15 = vcmp.eq.s32.totalorder %v3042_v53, %v982_v43 }
 0x510   : > { %v3520_v40 = vsel %vm1004_vm15, 1e+30, %v3344_v60  ;;  %v2713_v44 = vsel %vm1004_vm15, 1.0, %v2919_v21 }
 0x511   : > { %2775 = vmatmul.msk.f32.gmra.mxu1 %vm437_vm0, %v2050_v51  ;;  %v1056_v27 = vsel %vm437_vm0, %v3520_v40, inf  ;;  %1028 = vst.msk [vmem:[#allocation2 + $0xb0] sm:$0xff] %vm437_vm0, %v2713_v44 }
 0x512   : > { %1057 = vmin.xlane.f32.xlu1 %v1056_v27 }
 0x518   : > { %v2052_v63 = vld [vmem:[#allocation2 + $0xb0] sm:$0xff] }
 0x519   : > { %2776 = vmatmul.msk.f32.gmra.mxu1 %vm437_vm0, %v2051_v45 }
 0x521   : > { %2777 = vmatmul.msk.f32.gmra.mxu1 %vm437_vm0, %v2052_v63 }
 0x554   : > { %v1046_v48 = vpop.xlane.xlu2 %1045 }
 0x555   : > { %vm1064_vm1 = vcmp.le.f32.partialorder %v3460_v33, %v1046_v48 }
 0x556   : > { %v1072_v60 = vsel %vm1064_vm1, %v3042_v53, 64 }
 0x557   : > { %v3532_v49 = vsel %vm437_vm0, %v1072_v60, 2147483647 }
 0x558   : > { %v1110_v50 = vshra.s32 %v3532_v49, 16  ;;  %v1109_v44 = vand.u32 65535, %v3532_v49 }
 0x55a   : > { %v3535_v59 = vcvt.s32.f32 %v1110_v50  ;;  %v1111_v45 = vcvt.s32.f32 %v1109_v44 }
 0x55c   : > { %1113 = vmin.xlane.f32.xlu1 %v3535_v59 }
 0x55d   : > { %v1040_v52 = vpop.xlane.xlu1 %1039 }
 0x55e   : > { %vm1062_vm2 = vcmp.le.f32.partialorder %v3468_v19, %v1040_v52 }
 0x55f   : > { %v1070_v54 = vsel %vm1062_vm2, %v3042_v53, 64 }
 0x560   : > { %v3541_v10 = vsel %vm437_vm0, %v1070_v54, 2147483647 }
 0x561   : > { %v1080_v55 = vshra.s32 %v3541_v10, 16  ;;  %v1079_v48 = vand.u32 65535, %v3541_v10 }
 0x563   : > { %v3545_v18 = vcvt.s32.f32 %v1080_v55  ;;  %v1081_v50 = vcvt.s32.f32 %v1079_v48 }
 0x565   : > { %1083 = vmin.xlane.f32.xlu0 %v3545_v18  ;;  %v993_v56 = vpop.xlane.xlu1 %992  ;;  %v1043_v5 = vpop.xlane.xlu0 %1042 }
 0x566   : > { %v994_v58 = vcvt.f32.s32 %v993_v56  ;;  %vm1063_vm3 = vcmp.le.f32.partialorder %v3479_v1, %v1043_v5 }
 0x567   : > { %v1071_v8 = vsel %vm1063_vm3, %v3042_v53, 64 }
 0x568   : > { %v997_v0 = vadd.s32 %v996_v61, %v994_v58  ;;  %v3551_v15 = vsel %vm437_vm0, %v1071_v8, 2147483647 }
 0x569   : > { %v1095_v4 = vshra.s32 %v3551_v15, 16  ;;  %v1094_v54 = vand.u32 65535, %v3551_v15 }
 0x56a   : > { %vm1005_vm4 = vcmp.eq.s32.totalorder %v3042_v53, %v997_v0 }
 0x56b   : > { %v3556_v16 = vsel %vm1005_vm4, 1e+30, %v3380_v62  ;;  %v2714_v6 = vsel %vm1005_vm4, 1.0, %v2919_v21  ;;  %v3559_v7 = vcvt.s32.f32 %v1095_v4  ;;  %v1096_v56 = vcvt.s32.f32 %v1094_v54 }
 0x56c   : > { %v1059_v9 = vsel %vm437_vm0, %v3556_v16, inf  ;;  %1029 = vst.msk [vmem:[#allocation2 + $0xb8] sm:$0xff] %vm437_vm0, %v2714_v6 }
 0x56d   : > { %1060 = vmin.xlane.f32.xlu0 %v1059_v9  ;;  %1098 = vmin.xlane.f32.xlu2 %v3559_v7 }
 0x56e   : > { %v1049_v23 = vpop.xlane.xlu0 %1048  ;;  %v2359_v11 = vpop.f32.mrf.mxu1 }
 0x56f   : > { %vm1065_vm5 = vcmp.le.f32.partialorder %v3493_v14, %v1049_v23  ;;  %2520 = vst.msk [vmem:[%s3214_s30 + $0x80] sm:$0xff] %vm2503_vm13, %v2359_v11 }
 0x570   : > { %v1073_v62 = vsel %vm1065_vm5, %v3042_v53, 64 }
 0x571   : > { %v3570_v13 = vsel %vm437_vm0, %v1073_v62, 2147483647 }
 0x572   : > { %v1052_v3 = vpop.xlane.xlu1 %1051  ;;  %v1125_v2 = vshra.s32 %v3570_v13, 16 }
 0x573   : > { %vm1066_vm6 = vcmp.le.f32.partialorder %v3501_v29, %v1052_v3  ;;  %v2053_v20 = vld [vmem:[#allocation2 + $0xb8] sm:$0xff] }
 0x574   : > { %v1074_v24 = vsel %vm1066_vm6, %v3042_v53, 64  ;;  %2778 = vmatmul.msk.f32.gmra.mxu1 %vm437_vm0, %v2053_v20  ;;  %v3576_v12 = vcvt.s32.f32 %v1125_v2 }
 0x575   : > { %v3579_v17 = vsel %vm437_vm0, %v1074_v24, 2147483647 }
 0x576   : > { %1128 = vmin.xlane.f32.xlu2 %v3576_v12  ;;  %v2362_v31 = vpop.f32.mrf.mxu1  ;;  %v1055_v22 = vpop.xlane.xlu2 %1054  ;;  %v1140_v37 = vshra.s32 %v3579_v17, 16  ;;  %v1139_v0 = vand.u32 65535, %v3579_v17 }
 0x577   : > { %2521 = vst.msk [vmem:[%s3214_s30 + $0x88] sm:$0xff] %vm2503_vm13, %v2362_v31  ;;  %vm1067_vm7 = vcmp.le.f32.partialorder %v3510_v42, %v1055_v22 }
 0x578   : > { %v1075_v26 = vsel %vm1067_vm7, %v3042_v53, 64  ;;  %v1142_v28 = vcvt.s32.f32 %v1140_v37  ;;  %v1141_v6 = vcvt.s32.f32 %v1139_v0 }
 0x579   : > { %v1153_v35 = vsel %vm437_vm0, %v1075_v26, 2147483647 }
 0x57a   : > { %1143 = vmin.xlane.f32.xlu0 %v1142_v28  ;;  %v1155_v32 = vshra.s32 %v1153_v35, 16 }
 0x57c   : > { %v3588_v46 = vcvt.s32.f32 %v1155_v32 }
 0x57e   : > { %v2365_v34 = vpop.f32.mrf.mxu1  ;;  %1158 = vmin.xlane.f32.xlu1 %v3588_v46 }
 0x57f   : > { %2522 = vst.msk [vmem:[%s3214_s30 + $0x90] sm:$0xff] %vm2503_vm13, %v2365_v34 }
 0x585   : > { %v1058_v47 = vpop.xlane.xlu1 %1057 }
 0x586   : > { %vm1068_vm8 = vcmp.le.f32.partialorder %v3520_v40, %v1058_v47  ;;  %v2368_v36 = vpop.f32.mrf.mxu1 }
 0x587   : > { %v1076_v25 = vsel %vm1068_vm8, %v3042_v53, 64  ;;  %2523 = vst.msk [vmem:[%s3214_s30 + $0x98] sm:$0xff] %vm2503_vm13, %v2368_v36 }
 0x588   : > { %v1168_v41 = vsel %vm437_vm0, %v1076_v25, 2147483647 }
 0x589   : > { %v1170_v38 = vshra.s32 %v1168_v41, 16  ;;  %v1169_v3 = vand.u32 65535, %v1168_v41 }
 0x58b   : > { %v1172_v39 = vcvt.s32.f32 %v1170_v38  ;;  %v1171_v20 = vcvt.s32.f32 %v1169_v3 }
 0x58d   : > { %1173 = vmin.xlane.f32.xlu0 %v1172_v39 }
 0x58e   : > { %v2371_v57 = vpop.f32.mrf.mxu1 }
 0x58f   : > { %2524 = vst.msk [vmem:[%s3214_s30 + $0xa0] sm:$0xff] %vm2503_vm13, %v2371_v57 }
 0x596   : > { %v2374_v43 = vpop.f32.mrf.mxu1 }
 0x597   : > { %2525 = vst.msk [vmem:[%s3214_s30 + $0xa8] sm:$0xff] %vm2503_vm13, %v2374_v43 }
 0x59e   : > { %v2377_v51 = vpop.f32.mrf.mxu1 }
 0x59f   : > { %2526 = vst.msk [vmem:[%s3214_s30 + $0xb0] sm:$0xff] %vm2503_vm13, %v2377_v51 }
 0x5cf   : > { %v1114_v27 = vpop.xlane.xlu1 %1113 }
 0x5d0   : > { %vm1115_vm9 = vcmp.eq.f32.partialorder %v3535_v59, %v1114_v27 }
 0x5d1   : > { %v1116_v63 = vsel %vm1115_vm9, %v1111_v45, inf }
 0x5d2   : > { %1117 = vmin.xlane.f32.xlu0 %v1116_v63 }
 0x5d8   : > { %v1084_v60 = vpop.xlane.xlu0 %1083 }
 0x5d9   : > { %vm1085_vm10 = vcmp.eq.f32.partialorder %v3545_v18, %v1084_v60  ;;  %v1124_v18 = vand.u32 65535, %v3570_v13  ;;  %v1090_v26 = vcvt.f32.s32 %v1084_v60 }
 0x5da   : > { %v1086_v52 = vsel %vm1085_vm10, %v1081_v50, inf }
 0x5db   : > { %1087 = vmin.xlane.f32.xlu2 %v1086_v52  ;;  %v1126_v8 = vcvt.s32.f32 %v1124_v18  ;;  %v1091_v34 = vshll.u32 %v1090_v26, 16 }
 0x5e0   : > { %v1099_v55 = vpop.xlane.xlu2 %1098  ;;  %v1061_v30 = vpop.xlane.xlu0 %1060 }
 0x5e1   : > { %vm1069_vm11 = vcmp.le.f32.partialorder %v3556_v16, %v1061_v30  ;;  %vm1100_vm12 = vcmp.eq.f32.partialorder %v3559_v7, %v1099_v55  ;;  %v1154_v7 = vand.u32 65535, %v1153_v35  ;;  %v1105_v25 = vcvt.f32.s32 %v1099_v55 }
 0x5e2   : > { %v1077_v49 = vsel %vm1069_vm11, %v3042_v53, 64  ;;  %v1101_v59 = vsel %vm1100_vm12, %v1096_v56, inf }
 0x5e3   : > { %v1183_v10 = vsel %vm437_vm0, %v1077_v49, 2147483647  ;;  %1102 = vmin.xlane.f32.xlu1 %v1101_v59  ;;  %v1156_v62 = vcvt.s32.f32 %v1154_v7  ;;  %v1106_v57 = vshll.u32 %v1105_v25, 16 }
 0x5e4   : > { %v1185_v5 = vshra.s32 %v1183_v10, 16  ;;  %v1184_v51 = vand.u32 65535, %v1183_v10 }
 0x5e6   : > { %v3614_v61 = vcvt.s32.f32 %v1185_v5  ;;  %v1186_v45 = vcvt.s32.f32 %v1184_v51 }
 0x5e8   : > { %1188 = vmin.xlane.f32.xlu2 %v3614_v61 }
 0x5e9   : > { %v3617_v58 = vpop.xlane.xlu2 %1128 }
 0x5ea   : > { %vm1130_vm14 = vcmp.eq.f32.partialorder %v3576_v12, %v3617_v58  ;;  %v1120_v12 = vcvt.f32.s32 %v1114_v27 }
 0x5eb   : > { %v1131_v15 = vsel %vm1130_vm14, %v1126_v8, inf }
 0x5ec   : > { %1132 = vmin.xlane.f32.xlu1 %v1131_v15  ;;  %v1121_v31 = vshll.u32 %v1120_v12, 16 }
 0x5ed   : > { %v3622_v4 = vpop.xlane.xlu0 %1143 }
 0x5ee   : > { %vm1145_vm15 = vcmp.eq.f32.partialorder %v1142_v28, %v3622_v4 }
 0x5ef   : > { %v1146_v9 = vsel %vm1145_vm15, %v1141_v6, inf }
 0x5f0   : > { %1147 = vmin.xlane.f32.xlu2 %v1146_v9 }
 0x5f1   : > { %v3625_v23 = vpop.xlane.xlu1 %1158  ;;  %v2380_v11 = vpop.f32.mrf.mxu1 }
 0x5f2   : > { %2527 = vst.msk [vmem:[%s3214_s30 + $0xb8] sm:$0xff] %vm2503_vm13, %v2380_v11  ;;  %vm1160_vm1 = vcmp.eq.f32.partialorder %v3588_v46, %v3625_v23  ;;  %v1165_v10 = vcvt.f32.s32 %v3625_v23 }
 0x5f3   : > { %v1161_v13 = vsel %vm1160_vm1, %v1156_v62, inf }
 0x5f4   : > { %1162 = vmin.xlane.f32.xlu0 %v1161_v13 }
 0x600   : > { %v3631_v2 = vpop.xlane.xlu0 %1173 }
 0x601   : > { %vm1175_vm2 = vcmp.eq.f32.partialorder %v1172_v39, %v3631_v2  ;;  %v1180_v3 = vcvt.f32.s32 %v3631_v2 }
 0x602   : > { %v1176_v24 = vsel %vm1175_vm2, %v1171_v20, inf }
 0x603   : > { %1177 = vmin.xlane.f32.xlu2 %v1176_v24  ;;  %v1181_v12 = vshll.u32 %v1180_v3, 16 }
 0x645   : > { %v1118_v17 = vpop.xlane.xlu0 %1117 }
 0x646   : > { %v1119_v22 = vcvt.f32.s32 %v1118_v17 }
 0x648   : > { %v1122_v37 = vadd.s32 %v1121_v31, %v1119_v22 }
 0x64a   : > { %vm1200_vm3 = vcmp.eq.s32.totalorder %v3042_v53, %v1122_v37 }
 0x64b   : > { %v3636_v28 = vsel %vm1200_vm3, 1e+30, %v3460_v33  ;;  %v2717_v35 = vsel %vm1200_vm3, 1.0, %v2919_v21 }
 0x64c   : > { %v1244_v32 = vsel %vm437_vm0, %v3636_v28, inf  ;;  %1224 = vst.msk [vmem:[#allocation2 + $0xd0] sm:$0xff] %vm437_vm0, %v2717_v35 }
 0x64d   : > { %1245 = vmin.xlane.f32.xlu2 %v1244_v32 }
 0x64e   : > { %v1088_v46 = vpop.xlane.xlu2 %1087 }
 0x64f   : > { %v1089_v47 = vcvt.f32.s32 %v1088_v46 }
 0x651   : > { %v1092_v36 = vadd.s32 %v1091_v34, %v1089_v47 }
 0x653   : > { %vm1198_vm4 = vcmp.eq.s32.totalorder %v3042_v53, %v1092_v36  ;;  %v2056_v11 = vld [vmem:[#allocation2 + $0xd0] sm:$0xff] }
 0x654   : > { %v3644_v41 = vsel %vm1198_vm4, 1e+30, %v3468_v19  ;;  %v2715_v33 = vsel %vm1198_vm4, 1.0, %v2919_v21  ;;  %v1135_v19 = vcvt.f32.s32 %v3617_v58 }
 0x655   : > { %v1238_v38 = vsel %vm437_vm0, %v3644_v41, inf  ;;  %1222 = vst.msk [vmem:[#allocation2 + $0xc0] sm:$0xff] %vm437_vm0, %v2715_v33 }
 0x656   : > { %v1103_v39 = vpop.xlane.xlu1 %1102  ;;  %1239 = vmin.xlane.f32.xlu1 %v1238_v38  ;;  %v1136_v55 = vshll.u32 %v1135_v19, 16 }
 0x657   : > { %v1104_v43 = vcvt.f32.s32 %v1103_v39 }
 0x659   : > { %v1107_v44 = vadd.s32 %v1106_v57, %v1104_v43 }
 0x65b   : > { %v3650_v27 = vpop.xlane.xlu2 %1188  ;;  %vm1199_vm5 = vcmp.eq.s32.totalorder %v3042_v53, %v1107_v44 }
 0x65c   : > { %v2054_v63 = vld [vmem:[#allocation2 + $0xc0] sm:$0xff]  ;;  %v3655_v48 = vsel %vm1199_vm5, 1e+30, %v3479_v1  ;;  %v2716_v60 = vsel %vm1199_vm5, 1.0, %v2919_v21  ;;  %vm1190_vm6 = vcmp.eq.f32.partialorder %v3614_v61, %v3650_v27  ;;  %v1150_v1 = vcvt.f32.s32 %v3622_v4 }
 0x65d   : > { %2779 = vmatmul.msk.f32.gmra.mxu1 %vm437_vm0, %v2054_v63  ;;  %v1241_v50 = vsel %vm437_vm0, %v3655_v48, inf  ;;  %1223 = vst.msk [vmem:[#allocation2 + $0xc8] sm:$0xff] %vm437_vm0, %v2716_v60  ;;  %v1191_v52 = vsel %vm1190_vm6, %v1186_v45, inf  ;;  %v1166_v4 = vshll.u32 %v1165_v10, 16  ;;  %v1195_v39 = vcvt.f32.s32 %v3650_v27 }
 0x65e   : > { %1242 = vmin.xlane.f32.xlu0 %v1241_v50  ;;  %1192 = vmin.xlane.f32.xlu1 %v1191_v52  ;;  %v1151_v59 = vshll.u32 %v1150_v1, 16 }
 0x65f   : > { %v1133_v54 = vpop.xlane.xlu1 %1132  ;;  %v1196_v44 = vshll.u32 %v1195_v39, 16 }
 0x660   : > { %v1134_v30 = vcvt.f32.s32 %v1133_v54 }
 0x662   : > { %v1137_v56 = vadd.s32 %v1136_v55, %v1134_v30 }
 0x663   : > { %v1148_v49 = vpop.xlane.xlu2 %1147 }
 0x664   : > { %v1149_v5 = vcvt.f32.s32 %v1148_v49  ;;  %v2055_v18 = vld [vmem:[#allocation2 + $0xc8] sm:$0xff]  ;;  %vm1201_vm7 = vcmp.eq.s32.totalorder %v3042_v53, %v1137_v56 }
 0x665   : > { %2780 = vmatmul.msk.f32.gmra.mxu1 %vm437_vm0, %v2055_v18  ;;  %v3669_v61 = vsel %vm1201_vm7, 1e+30, %v3493_v14  ;;  %v2718_v58 = vsel %vm1201_vm7, 1.0, %v2919_v21 }
 0x666   : > { %v1152_v8 = vadd.s32 %v1151_v59, %v1149_v5  ;;  %v1247_v0 = vsel %vm437_vm0, %v3669_v61, inf  ;;  %1225 = vst.msk [vmem:[#allocation2 + $0xd8] sm:$0xff] %vm437_vm0, %v2718_v58 }
 0x667   : > { %1248 = vmin.xlane.f32.xlu0 %v1247_v0  ;;  %v1163_v15 = vpop.xlane.xlu0 %1162 }
 0x668   : > { %v1164_v6 = vcvt.f32.s32 %v1163_v15  ;;  %vm1202_vm8 = vcmp.eq.s32.totalorder %v3042_v53, %v1152_v8 }
 0x669   : > { %v3677_v7 = vsel %vm1202_vm8, 1e+30, %v3501_v29  ;;  %v2719_v14 = vsel %vm1202_vm8, 1.0, %v2919_v21 }
 0x66a   : > { %v1167_v9 = vadd.s32 %v1166_v4, %v1164_v6  ;;  %v1250_v23 = vsel %vm437_vm0, %v3677_v7, inf  ;;  %1226 = vst.msk [vmem:[#allocation2 + $0xe0] sm:$0xff] %vm437_vm0, %v2719_v14 }
 0x66b   : > { %1251 = vmin.xlane.f32.xlu1 %v1250_v23 }
 0x66c   : > { %vm1203_vm9 = vcmp.eq.s32.totalorder %v3042_v53, %v1167_v9 }
 0x66d   : > { %2781 = vmatmul.msk.f32.gmra.mxu1 %vm437_vm0, %v2056_v11  ;;  %v3686_v62 = vsel %vm1203_vm9, 1e+30, %v3510_v42  ;;  %v2720_v29 = vsel %vm1203_vm9, 1.0, %v2919_v21  ;;  %v2057_v20 = vld [vmem:[#allocation2 + $0xd8] sm:$0xff] }
 0x66e   : > { %v1253_v13 = vsel %vm437_vm0, %v3686_v62, inf  ;;  %1227 = vst.msk [vmem:[#allocation2 + $0xe8] sm:$0xff] %vm437_vm0, %v2720_v29 }
 0x66f   : > { %1254 = vmin.xlane.f32.xlu2 %v1253_v13 }
 0x671   : > { %v2058_v42 = vld [vmem:[#allocation2 + $0xe0] sm:$0xff] }
 0x675   : > { %2782 = vmatmul.msk.f32.gmra.mxu1 %vm437_vm0, %v2057_v20  ;;  %v2059_v26 = vld [vmem:[#allocation2 + $0xe8] sm:$0xff] }
 0x676   : > { %v1178_v24 = vpop.xlane.xlu2 %1177 }
 0x677   : > { %v1179_v17 = vcvt.f32.s32 %v1178_v24 }
 0x679   : > { %v1182_v31 = vadd.s32 %v1181_v12, %v1179_v17 }
 0x67b   : > { %vm1204_vm10 = vcmp.eq.s32.totalorder %v3042_v53, %v1182_v31 }
 0x67c   : > { %v3696_v22 = vsel %vm1204_vm10, 1e+30, %v3520_v40  ;;  %v2721_v37 = vsel %vm1204_vm10, 1.0, %v2919_v21 }
 0x67d   : > { %2783 = vmatmul.msk.f32.gmra.mxu1 %vm437_vm0, %v2058_v42  ;;  %v1256_v2 = vsel %vm437_vm0, %v3696_v22, inf  ;;  %1228 = vst.msk [vmem:[#allocation2 + $0xf0] sm:$0xff] %vm437_vm0, %v2721_v37 }
 0x67e   : > { %1257 = vmin.xlane.f32.xlu1 %v1256_v2 }
 0x684   : > { %v2060_v35 = vld [vmem:[#allocation2 + $0xf0] sm:$0xff] }
 0x685   : > { %2784 = vmatmul.msk.f32.gmra.mxu1 %vm437_vm0, %v2059_v26 }
 0x68d   : > { %2785 = vmatmul.msk.f32.gmra.mxu1 %vm437_vm0, %v2060_v35 }
 0x6c0   : > { %v1246_v32 = vpop.xlane.xlu2 %1245 }
 0x6c1   : > { %vm1264_vm11 = vcmp.le.f32.partialorder %v3636_v28, %v1246_v32 }
 0x6c2   : > { %v1272_v40 = vsel %vm1264_vm11, %v3042_v53, 64 }
 0x6c3   : > { %v3708_v46 = vsel %vm437_vm0, %v1272_v40, 2147483647 }
 0x6c4   : > { %v1310_v34 = vshra.s32 %v3708_v46, 16  ;;  %v1309_v37 = vand.u32 65535, %v3708_v46 }
 0x6c6   : > { %v3711_v47 = vcvt.s32.f32 %v1310_v34  ;;  %v1311_v26 = vcvt.s32.f32 %v1309_v37 }
 0x6c8   : > { %1313 = vmin.xlane.f32.xlu1 %v3711_v47 }
 0x6c9   : > { %v1240_v36 = vpop.xlane.xlu1 %1239 }
 0x6ca   : > { %vm1262_vm12 = vcmp.le.f32.partialorder %v3644_v41, %v1240_v36 }
 0x6cb   : > { %v1270_v25 = vsel %vm1262_vm12, %v3042_v53, 64 }
 0x6cc   : > { %v3717_v33 = vsel %vm437_vm0, %v1270_v25, 2147483647 }
 0x6cd   : > { %v1280_v38 = vshra.s32 %v3717_v33, 16  ;;  %v1279_v32 = vand.u32 65535, %v3717_v33 }
 0x6cf   : > { %v3721_v57 = vcvt.s32.f32 %v1280_v38  ;;  %v1281_v34 = vcvt.s32.f32 %v1279_v32 }
 0x6d1   : > { %1283 = vmin.xlane.f32.xlu0 %v3721_v57  ;;  %v1193_v43 = vpop.xlane.xlu1 %1192  ;;  %v1243_v51 = vpop.xlane.xlu0 %1242 }
 0x6d2   : > { %v1194_v45 = vcvt.f32.s32 %v1193_v43  ;;  %vm1263_vm14 = vcmp.le.f32.partialorder %v3655_v48, %v1243_v51 }
 0x6d3   : > { %v1271_v19 = vsel %vm1263_vm14, %v3042_v53, 64 }
 0x6d4   : > { %v1197_v63 = vadd.s32 %v1196_v44, %v1194_v45  ;;  %v3727_v60 = vsel %vm437_vm0, %v1271_v19, 2147483647 }
 0x6d5   : > { %v1295_v50 = vshra.s32 %v3727_v60, 16  ;;  %v1294_v25 = vand.u32 65535, %v3727_v60 }
 0x6d6   : > { %vm1205_vm15 = vcmp.eq.s32.totalorder %v3042_v53, %v1197_v63 }
 0x6d7   : > { %v3732_v27 = vsel %vm1205_vm15, 1e+30, %v3556_v16  ;;  %v2722_v52 = vsel %vm1205_vm15, 1.0, %v2919_v21  ;;  %v3735_v54 = vcvt.s32.f32 %v1295_v50  ;;  %v1296_v43 = vcvt.s32.f32 %v1294_v25 }
 0x6d8   : > { %v1259_v55 = vsel %vm437_vm0, %v3732_v27, inf  ;;  %1229 = vst.msk [vmem:[#allocation2 + $0xf8] sm:$0xff] %vm437_vm0, %v2722_v52 }
 0x6d9   : > { %1260 = vmin.xlane.f32.xlu0 %v1259_v55  ;;  %1298 = vmin.xlane.f32.xlu2 %v3735_v54 }
 0x6da   : > { %v1249_v1 = vpop.xlane.xlu0 %1248  ;;  %v2383_v30 = vpop.f32.mrf.mxu1 }
 0x6db   : > { %vm1265_vm1 = vcmp.le.f32.partialorder %v3669_v61, %v1249_v1  ;;  %2528 = vst.msk [vmem:[%s3214_s30 + $0xc0] sm:$0xff] %vm2503_vm13, %v2383_v30 }
 0x6dc   : > { %v1273_v16 = vsel %vm1265_vm1, %v3042_v53, 64 }
 0x6dd   : > { %v3746_v56 = vsel %vm437_vm0, %v1273_v16, 2147483647 }
 0x6de   : > { %v1252_v49 = vpop.xlane.xlu1 %1251  ;;  %v1325_v59 = vshra.s32 %v3746_v56, 16 }
 0x6df   : > { %vm1266_vm2 = vcmp.le.f32.partialorder %v3677_v7, %v1252_v49  ;;  %v2061_v10 = vld [vmem:[#allocation2 + $0xf8] sm:$0xff] }
 0x6e0   : > { %v1274_v5 = vsel %vm1266_vm2, %v3042_v53, 64  ;;  %2786 = vmatmul.msk.f32.gmra.mxu1 %vm437_vm0, %v2061_v10  ;;  %v3752_v18 = vcvt.s32.f32 %v1325_v59 }
 0x6e1   : > { %v3755_v58 = vsel %vm437_vm0, %v1274_v5, 2147483647 }
 0x6e2   : > { %1328 = vmin.xlane.f32.xlu2 %v3752_v18  ;;  %v2386_v8 = vpop.f32.mrf.mxu1  ;;  %v1255_v0 = vpop.xlane.xlu2 %1254  ;;  %v1340_v15 = vshra.s32 %v3755_v58, 16  ;;  %v1339_v63 = vand.u32 65535, %v3755_v58 }
 0x6e3   : > { %2529 = vst.msk [vmem:[%s3214_s30 + $0xc8] sm:$0xff] %vm2503_vm13, %v2386_v8  ;;  %vm1267_vm3 = vcmp.le.f32.partialorder %v3686_v62, %v1255_v0 }
 0x6e4   : > { %v1275_v4 = vsel %vm1267_vm3, %v3042_v53, 64  ;;  %v1342_v6 = vcvt.s32.f32 %v1340_v15  ;;  %v1341_v52 = vcvt.s32.f32 %v1339_v63 }
 0x6e5   : > { %v1353_v14 = vsel %vm437_vm0, %v1275_v4, 2147483647 }
 0x6e6   : > { %1343 = vmin.xlane.f32.xlu0 %v1342_v6  ;;  %v1355_v9 = vshra.s32 %v1353_v14, 16 }
 0x6e8   : > { %v3764_v23 = vcvt.s32.f32 %v1355_v9 }
 0x6ea   : > { %v2389_v11 = vpop.f32.mrf.mxu1  ;;  %1358 = vmin.xlane.f32.xlu1 %v3764_v23 }
 0x6eb   : > { %2530 = vst.msk [vmem:[%s3214_s30 + $0xd0] sm:$0xff] %vm2503_vm13, %v2389_v11 }
 0x6f1   : > { %v1258_v29 = vpop.xlane.xlu1 %1257 }
 0x6f2   : > { %vm1268_vm4 = vcmp.le.f32.partialorder %v3696_v22, %v1258_v29  ;;  %v2392_v13 = vpop.f32.mrf.mxu1 }
 0x6f3   : > { %v1276_v3 = vsel %vm1268_vm4, %v3042_v53, 64  ;;  %2531 = vst.msk [vmem:[%s3214_s30 + $0xd8] sm:$0xff] %vm2503_vm13, %v2392_v13 }
 0x6f4   : > { %v1368_v20 = vsel %vm437_vm0, %v1276_v3, 2147483647 }
 0x6f5   : > { %v1370_v24 = vshra.s32 %v1368_v20, 16  ;;  %v1369_v49 = vand.u32 65535, %v1368_v20 }
 0x6f7   : > { %v1372_v12 = vcvt.s32.f32 %v1370_v24  ;;  %v1371_v10 = vcvt.s32.f32 %v1369_v49 }
 0x6f9   : > { %1373 = vmin.xlane.f32.xlu0 %v1372_v12 }
 0x6fa   : > { %v2395_v17 = vpop.f32.mrf.mxu1 }
 0x6fb   : > { %2532 = vst.msk [vmem:[%s3214_s30 + $0xe0] sm:$0xff] %vm2503_vm13, %v2395_v17 }
 0x702   : > { %v2398_v31 = vpop.f32.mrf.mxu1 }
 0x703   : > { %2533 = vst.msk [vmem:[%s3214_s30 + $0xe8] sm:$0xff] %vm2503_vm13, %v2398_v31 }
 0x70a   : > { %v2401_v42 = vpop.f32.mrf.mxu1 }
 0x70b   : > { %2534 = vst.msk [vmem:[%s3214_s30 + $0xf0] sm:$0xff] %vm2503_vm13, %v2401_v42 }
 0x73b   : > { %v1314_v2 = vpop.xlane.xlu1 %1313 }
 0x73c   : > { %vm1315_vm5 = vcmp.eq.f32.partialorder %v3711_v47, %v1314_v2 }
 0x73d   : > { %v1316_v35 = vsel %vm1315_vm5, %v1311_v26, inf }
 0x73e   : > { %1317 = vmin.xlane.f32.xlu0 %v1316_v35 }
 0x744   : > { %v1284_v40 = vpop.xlane.xlu0 %1283 }
 0x745   : > { %vm1285_vm6 = vcmp.eq.f32.partialorder %v3721_v57, %v1284_v40  ;;  %v1324_v57 = vand.u32 65535, %v3746_v56  ;;  %v1290_v4 = vcvt.f32.s32 %v1284_v40 }
 0x746   : > { %v1286_v36 = vsel %vm1285_vm6, %v1281_v34, inf }
 0x747   : > { %1287 = vmin.xlane.f32.xlu2 %v1286_v36  ;;  %v1326_v19 = vcvt.s32.f32 %v1324_v57  ;;  %v1291_v11 = vshll.u32 %v1290_v4, 16 }
 0x74c   : > { %v1299_v38 = vpop.xlane.xlu2 %1298  ;;  %v1261_v39 = vpop.xlane.xlu0 %1260 }
 0x74d   : > { %vm1269_vm7 = vcmp.le.f32.partialorder %v3732_v27, %v1261_v39  ;;  %vm1300_vm8 = vcmp.eq.f32.partialorder %v3735_v54, %v1299_v38  ;;  %v1354_v54 = vand.u32 65535, %v1353_v14  ;;  %v1305_v3 = vcvt.f32.s32 %v1299_v38 }
 0x74e   : > { %v1277_v46 = vsel %vm1269_vm7, %v3042_v53, 64  ;;  %v1301_v47 = vsel %vm1300_vm8, %v1296_v43, inf }
 0x74f   : > { %v1383_v33 = vsel %vm437_vm0, %v1277_v46, 2147483647  ;;  %1302 = vmin.xlane.f32.xlu1 %v1301_v47  ;;  %v1356_v16 = vcvt.s32.f32 %v1354_v54  ;;  %v1306_v17 = vshll.u32 %v1305_v3, 16 }
 0x750   : > { %v1385_v51 = vshra.s32 %v1383_v33, 16  ;;  %v1384_v31 = vand.u32 65535, %v1383_v33 }
 0x752   : > { %v3790_v44 = vcvt.s32.f32 %v1385_v51  ;;  %v1386_v26 = vcvt.s32.f32 %v1384_v31 }
 0x754   : > { %1388 = vmin.xlane.f32.xlu2 %v3790_v44 }
 0x755   : > { %v3793_v45 = vpop.xlane.xlu2 %1328 }
 0x756   : > { %vm1330_vm9 = vcmp.eq.f32.partialorder %v3752_v18, %v3793_v45  ;;  %v1320_v18 = vcvt.f32.s32 %v1314_v2 }
 0x757   : > { %v1331_v60 = vsel %vm1330_vm9, %v1326_v19, inf }
 0x758   : > { %1332 = vmin.xlane.f32.xlu1 %v1331_v60  ;;  %v1321_v8 = vshll.u32 %v1320_v18, 16 }
 0x759   : > { %v3798_v50 = vpop.xlane.xlu0 %1343 }
 0x75a   : > { %vm1345_vm10 = vcmp.eq.f32.partialorder %v1342_v6, %v3798_v50  ;;  %v1350_v39 = vcvt.f32.s32 %v3798_v50 }
 0x75b   : > { %v1346_v55 = vsel %vm1345_vm10, %v1341_v52, inf }
 0x75c   : > { %1347 = vmin.xlane.f32.xlu2 %v1346_v55  ;;  %v1351_v47 = vshll.u32 %v1350_v39, 16 }
 0x75d   : > { %v3801_v1 = vpop.xlane.xlu1 %1358  ;;  %v2404_v30 = vpop.f32.mrf.mxu1 }
 0x75e   : > { %2535 = vst.msk [vmem:[%s3214_s30 + $0xf8] sm:$0xff] %vm2503_vm13, %v2404_v30  ;;  %vm1360_vm11 = vcmp.eq.f32.partialorder %v3764_v23, %v3801_v1  ;;  %v1365_v33 = vcvt.f32.s32 %v3801_v1 }
 0x75f   : > { %v1361_v56 = vsel %vm1360_vm11, %v1356_v16, inf }
 0x760   : > { %1362 = vmin.xlane.f32.xlu0 %v1361_v56  ;;  %v1366_v50 = vshll.u32 %v1365_v33, 16 }
 0x76c   : > { %v3807_v59 = vpop.xlane.xlu0 %1373 }
 0x76d   : > { %vm1375_vm12 = vcmp.eq.f32.partialorder %v1372_v12, %v3807_v59  ;;  %v1380_v49 = vcvt.f32.s32 %v3807_v59 }
 0x76e   : > { %v1376_v5 = vsel %vm1375_vm12, %v1371_v10, inf }
 0x76f   : > { %1377 = vmin.xlane.f32.xlu2 %v1376_v5  ;;  %v1381_v18 = vshll.u32 %v1380_v49, 16 }
 0x7b1   : > { %v1318_v58 = vpop.xlane.xlu0 %1317 }
 0x7b2   : > { %v1319_v0 = vcvt.f32.s32 %v1318_v58 }
 0x7b4   : > { %v1322_v15 = vadd.s32 %v1321_v8, %v1319_v0 }
 0x7b6   : > { %vm1400_vm14 = vcmp.eq.s32.totalorder %v3042_v53, %v1322_v15 }
 0x7b7   : > { %v2725_v6 = vsel %vm1400_vm14, 1.0, %v2919_v21  ;;  %v3813_v14 = vsel %vm1400_vm14, 1e+30, %v3636_v28 }
 0x7b8   : > { %1424 = vst.msk [vmem:[#allocation2 + $0x110] sm:$0xff] %vm437_vm0, %v2725_v6  ;;  %v1444_v9 = vsel %vm437_vm0, %v3813_v14, inf }
 0x7b9   : > { %1445 = vmin.xlane.f32.xlu2 %v1444_v9 }
 0x7ba   : > { %v1288_v23 = vpop.xlane.xlu2 %1287 }
 0x7bb   : > { %v1289_v29 = vcvt.f32.s32 %v1288_v23 }
 0x7bd   : > { %v1292_v13 = vadd.s32 %v1291_v11, %v1289_v29 }
 0x7bf   : > { %vm1398_vm15 = vcmp.eq.s32.totalorder %v3042_v53, %v1292_v13  ;;  %v2064_v30 = vld [vmem:[#allocation2 + $0x110] sm:$0xff] }
 0x7c0   : > { %v3820_v20 = vsel %vm1398_vm15, 1e+30, %v3644_v41  ;;  %v2723_v24 = vsel %vm1398_vm15, 1.0, %v2919_v21  ;;  %v1335_v41 = vcvt.f32.s32 %v3793_v45 }
 0x7c1   : > { %v1438_v28 = vsel %vm437_vm0, %v3820_v20, inf  ;;  %1422 = vst.msk [vmem:[#allocation2 + $0x100] sm:$0xff] %vm437_vm0, %v2723_v24 }
 0x7c2   : > { %v1303_v12 = vpop.xlane.xlu1 %1302  ;;  %1439 = vmin.xlane.f32.xlu1 %v1438_v28  ;;  %v1336_v38 = vshll.u32 %v1335_v41, 16 }
 0x7c3   : > { %v1304_v42 = vcvt.f32.s32 %v1303_v12 }
 0x7c5   : > { %v1307_v37 = vadd.s32 %v1306_v17, %v1304_v42 }
 0x7c7   : > { %v3826_v2 = vpop.xlane.xlu2 %1388  ;;  %vm1399_vm1 = vcmp.eq.s32.totalorder %v3042_v53, %v1307_v37 }
 0x7c8   : > { %vm1390_vm2 = vcmp.eq.f32.partialorder %v3790_v44, %v3826_v2  ;;  %v2062_v35 = vld [vmem:[#allocation2 + $0x100] sm:$0xff]  ;;  %v3833_v32 = vsel %vm1399_vm1, 1e+30, %v3655_v48  ;;  %v2724_v40 = vsel %vm1399_vm1, 1.0, %v2919_v21  ;;  %v1395_v12 = vcvt.f32.s32 %v3826_v2 }
 0x7c9   : > { %2787 = vmatmul.msk.f32.vlgmr.msra.gmra.mxu2 %vm437_vm0, %v2062_v35  ;;  %v1441_v34 = vsel %vm437_vm0, %v3833_v32, inf  ;;  %1423 = vst.msk [vmem:[#allocation2 + $0x108] sm:$0xff] %vm437_vm0, %v2724_v40  ;;  %v1391_v36 = vsel %vm1390_vm2, %v1386_v26, inf }
 0x7ca   : > { %1442 = vmin.xlane.f32.xlu0 %v1441_v34  ;;  %1392 = vmin.xlane.f32.xlu1 %v1391_v36  ;;  %v1396_v37 = vshll.u32 %v1395_v12, 16 }
 0x7cb   : > { %v1333_v25 = vpop.xlane.xlu1 %1332 }
 0x7cc   : > { %v1334_v43 = vcvt.f32.s32 %v1333_v25 }
 0x7ce   : > { %v1337_v46 = vadd.s32 %v1336_v38, %v1334_v43 }
 0x7cf   : > { %v1348_v48 = vpop.xlane.xlu2 %1347 }
 0x7d0   : > { %v1349_v51 = vcvt.f32.s32 %v1348_v48  ;;  %v2063_v57 = vld [vmem:[#allocation2 + $0x108] sm:$0xff]  ;;  %vm1401_vm3 = vcmp.eq.s32.totalorder %v3042_v53, %v1337_v46 }
 0x7d1   : > { %2788 = vmatmul.msk.f32.gmra.mxu2 %vm437_vm0, %v2063_v57  ;;  %v3845_v44 = vsel %vm1401_vm3, 1e+30, %v3669_v61  ;;  %v2726_v45 = vsel %vm1401_vm3, 1.0, %v2919_v21 }
 0x7d2   : > { %v1352_v19 = vadd.s32 %v1351_v47, %v1349_v51  ;;  %v1447_v63 = vsel %vm437_vm0, %v3845_v44, inf  ;;  %1425 = vst.msk [vmem:[#allocation2 + $0x118] sm:$0xff] %vm437_vm0, %v2726_v45 }
 0x7d3   : > { %1448 = vmin.xlane.f32.xlu0 %v1447_v63  ;;  %v1363_v60 = vpop.xlane.xlu0 %1362 }
 0x7d4   : > { %vm1402_vm4 = vcmp.eq.s32.totalorder %v3042_v53, %v1352_v19  ;;  %v1364_v52 = vcvt.f32.s32 %v1363_v60 }
 0x7d5   : > { %v2727_v54 = vsel %vm1402_vm4, 1.0, %v2919_v21  ;;  %v3854_v55 = vsel %vm1402_vm4, 1e+30, %v3677_v7 }
 0x7d6   : > { %1426 = vst.msk [vmem:[#allocation2 + $0x120] sm:$0xff] %vm437_vm0, %v2727_v54  ;;  %v1367_v61 = vadd.s32 %v1366_v50, %v1364_v52  ;;  %v1450_v1 = vsel %vm437_vm0, %v3854_v55, inf }
 0x7d7   : > { %1451 = vmin.xlane.f32.xlu1 %v1450_v1 }
 0x7d8   : > { %vm1403_vm5 = vcmp.eq.s32.totalorder %v3042_v53, %v1367_v61 }
 0x7d9   : > { %v2728_v16 = vsel %vm1403_vm5, 1.0, %v2919_v21  ;;  %2789 = vmatmul.msk.f32.gmra.mxu2 %vm437_vm0, %v2064_v30  ;;  %v3863_v56 = vsel %vm1403_vm5, 1e+30, %v3686_v62  ;;  %v2065_v10 = vld [vmem:[#allocation2 + $0x118] sm:$0xff] }
 0x7da   : > { %1427 = vst.msk [vmem:[#allocation2 + $0x128] sm:$0xff] %vm437_vm0, %v2728_v16  ;;  %v1453_v7 = vsel %vm437_vm0, %v3863_v56, inf }
 0x7db   : > { %1454 = vmin.xlane.f32.xlu2 %v1453_v7 }
 0x7dd   : > { %v2066_v0 = vld [vmem:[#allocation2 + $0x120] sm:$0xff] }
 0x7e1   : > { %2790 = vmatmul.msk.f32.gmra.mxu2 %vm437_vm0, %v2065_v10  ;;  %v2067_v4 = vld [vmem:[#allocation2 + $0x128] sm:$0xff] }
 0x7e2   : > { %v1378_v5 = vpop.xlane.xlu2 %1377 }
 0x7e3   : > { %v1379_v58 = vcvt.f32.s32 %v1378_v5 }
 0x7e5   : > { %v1382_v8 = vadd.s32 %v1381_v18, %v1379_v58 }
 0x7e7   : > { %vm1404_vm6 = vcmp.eq.s32.totalorder %v3042_v53, %v1382_v8 }
 0x7e8   : > { %v2729_v62 = vsel %vm1404_vm6, 1.0, %v2919_v21  ;;  %v3873_v15 = vsel %vm1404_vm6, 1e+30, %v3696_v22 }
 0x7e9   : > { %1428 = vst.msk [vmem:[#allocation2 + $0x130] sm:$0xff] %vm437_vm0, %v2729_v62  ;;  %2791 = vmatmul.msk.f32.gmra.mxu2 %vm437_vm0, %v2066_v0  ;;  %v1456_v59 = vsel %vm437_vm0, %v3873_v15, inf }
 0x7ea   : > { %1457 = vmin.xlane.f32.xlu1 %v1456_v59 }
 0x7f0   : > { %v2068_v6 = vld [vmem:[#allocation2 + $0x130] sm:$0xff] }
 0x7f1   : > { %2792 = vmatmul.msk.f32.gmra.mxu2 %vm437_vm0, %v2067_v4 }
 0x7f9   : > { %2793 = vmatmul.msk.f32.gmra.mxu2 %vm437_vm0, %v2068_v6 }
 0x82c   : > { %v1446_v9 = vpop.xlane.xlu2 %1445 }
 0x82d   : > { %vm1464_vm7 = vcmp.le.f32.partialorder %v3813_v14, %v1446_v9 }
 0x82e   : > { %v1472_v22 = vsel %vm1464_vm7, %v3042_v53, 64 }
 0x82f   : > { %v3884_v23 = vsel %vm437_vm0, %v1472_v22, 2147483647 }
 0x830   : > { %v1510_v11 = vshra.s32 %v3884_v23, 16  ;;  %v1509_v0 = vand.u32 65535, %v3884_v23 }
 0x832   : > { %v3887_v29 = vcvt.s32.f32 %v1510_v11  ;;  %v1511_v4 = vcvt.s32.f32 %v1509_v0 }
 0x834   : > { %1513 = vmin.xlane.f32.xlu1 %v3887_v29 }
 0x835   : > { %v1440_v13 = vpop.xlane.xlu1 %1439 }
 0x836   : > { %vm1462_vm8 = vcmp.le.f32.partialorder %v3820_v20, %v1440_v13 }
 0x837   : > { %v1470_v3 = vsel %vm1462_vm8, %v3042_v53, 64 }
 0x838   : > { %v3893_v24 = vsel %vm437_vm0, %v1470_v3, 2147483647 }
 0x839   : > { %v1480_v28 = vshra.s32 %v3893_v24, 16  ;;  %v1479_v9 = vand.u32 65535, %v3893_v24 }
 0x83b   : > { %v3897_v17 = vcvt.s32.f32 %v1480_v28  ;;  %v1481_v11 = vcvt.s32.f32 %v1479_v9 }
 0x83d   : > { %1483 = vmin.xlane.f32.xlu0 %v3897_v17  ;;  %v1393_v31 = vpop.xlane.xlu1 %1392  ;;  %v1443_v42 = vpop.xlane.xlu0 %1442 }
 0x83e   : > { %v1394_v26 = vcvt.f32.s32 %v1393_v31  ;;  %vm1463_vm9 = vcmp.le.f32.partialorder %v3833_v32, %v1443_v42 }
 0x83f   : > { %v1471_v41 = vsel %vm1463_vm9, %v3042_v53, 64 }
 0x840   : > { %v1397_v35 = vadd.s32 %v1396_v37, %v1394_v26  ;;  %v3903_v40 = vsel %vm437_vm0, %v1471_v41, 2147483647 }
 0x841   : > { %v1495_v34 = vshra.s32 %v3903_v40, 16  ;;  %v1494_v3 = vand.u32 65535, %v3903_v40 }
 0x842   : > { %vm1405_vm10 = vcmp.eq.s32.totalorder %v3042_v53, %v1397_v35 }
 0x843   : > { %v3908_v2 = vsel %vm1405_vm10, 1e+30, %v3732_v27  ;;  %v2730_v36 = vsel %vm1405_vm10, 1.0, %v2919_v21  ;;  %v3911_v25 = vcvt.s32.f32 %v1495_v34  ;;  %v1496_v31 = vcvt.s32.f32 %v1494_v3 }
 0x844   : > { %v1459_v38 = vsel %vm437_vm0, %v3908_v2, inf  ;;  %1429 = vst.msk [vmem:[#allocation2 + $0x138] sm:$0xff] %vm437_vm0, %v2730_v36 }
 0x845   : > { %1460 = vmin.xlane.f32.xlu0 %v1459_v38  ;;  %1498 = vmin.xlane.f32.xlu2 %v3911_v25 }
 0x846   : > { %v1449_v39 = vpop.xlane.xlu0 %1448 }
 0x847   : > { %vm1465_vm11 = vcmp.le.f32.partialorder %v3845_v44, %v1449_v39 }
 0x848   : > { %v1473_v43 = vsel %vm1465_vm11, %v3042_v53, 64 }
 0x849   : > { %v3920_v27 = vsel %vm437_vm0, %v1473_v43, 2147483647 }
 0x84a   : > { %v1525_v46 = vshra.s32 %v3920_v27, 16  ;;  %v1452_v48 = vpop.xlane.xlu1 %1451 }
 0x84b   : > { %vm1466_vm12 = vcmp.le.f32.partialorder %v3854_v55, %v1452_v48  ;;  %v2069_v47 = vld [vmem:[#allocation2 + $0x138] sm:$0xff] }
 0x84c   : > { %v1474_v33 = vsel %vm1466_vm12, %v3042_v53, 64  ;;  %v2407_v51 = vpop.f32.mrf.mxu2  ;;  %2794 = vmatmul.msk.f32.gmra.mxu2 %vm437_vm0, %v2069_v47  ;;  %v3926_v57 = vcvt.s32.f32 %v1525_v46 }
 0x84d   : > { %v3929_v45 = vsel %vm437_vm0, %v1474_v33, 2147483647  ;;  %2536 = vst.msk [vmem:[%s3214_s30 + $0x100] sm:$0xff] %vm2503_vm13, %v2407_v51 }
 0x84e   : > { %v1540_v19 = vshra.s32 %v3929_v45, 16  ;;  %1528 = vmin.xlane.f32.xlu2 %v3926_v57  ;;  %v1455_v63 = vpop.xlane.xlu2 %1454  ;;  %v1539_v26 = vand.u32 65535, %v3929_v45 }
 0x84f   : > { %vm1467_vm14 = vcmp.le.f32.partialorder %v3863_v56, %v1455_v63 }
 0x850   : > { %v1475_v60 = vsel %vm1467_vm14, %v3042_v53, 64  ;;  %v1542_v50 = vcvt.s32.f32 %v1540_v19 }
 0x851   : > { %v3938_v52 = vsel %vm437_vm0, %v1475_v60, 2147483647 }
 0x852   : > { %v1555_v54 = vshra.s32 %v3938_v52, 16  ;;  %1543 = vmin.xlane.f32.xlu0 %v1542_v50  ;;  %v1554_v34 = vand.u32 65535, %v3938_v52 }
 0x854   : > { %v2410_v61 = vpop.f32.mrf.mxu2  ;;  %v1557_v1 = vcvt.s32.f32 %v1555_v54  ;;  %v1556_v43 = vcvt.s32.f32 %v1554_v34 }
 0x855   : > { %2537 = vst.msk [vmem:[%s3214_s30 + $0x108] sm:$0xff] %vm2503_vm13, %v2410_v61 }
 0x856   : > { %1558 = vmin.xlane.f32.xlu1 %v1557_v1 }
 0x85c   : > { %v2413_v30 = vpop.f32.mrf.mxu2 }
 0x85d   : > { %2538 = vst.msk [vmem:[%s3214_s30 + $0x110] sm:$0xff] %vm2503_vm13, %v2413_v30  ;;  %v1458_v16 = vpop.xlane.xlu1 %1457 }
 0x85e   : > { %vm1468_vm15 = vcmp.le.f32.partialorder %v3873_v15, %v1458_v16 }
 0x85f   : > { %v1476_v7 = vsel %vm1468_vm15, %v3042_v53, 64 }
 0x860   : > { %v1568_v49 = vsel %vm437_vm0, %v1476_v7, 2147483647 }
 0x861   : > { %v1570_v10 = vshra.s32 %v1568_v49, 16  ;;  %v1569_v48 = vand.u32 65535, %v1568_v49 }
 0x863   : > { %v1572_v5 = vcvt.s32.f32 %v1570_v10  ;;  %v1571_v33 = vcvt.s32.f32 %v1569_v48 }
 0x864   : > { %v2416_v18 = vpop.f32.mrf.mxu2 }
 0x865   : > { %2539 = vst.msk [vmem:[%s3214_s30 + $0x118] sm:$0xff] %vm2503_vm13, %v2416_v18  ;;  %1573 = vmin.xlane.f32.xlu0 %v1572_v5 }
 0x86c   : > { %v2419_v58 = vpop.f32.mrf.mxu2 }
 0x86d   : > { %2540 = vst.msk [vmem:[%s3214_s30 + $0x120] sm:$0xff] %vm2503_vm13, %v2419_v58 }
 0x874   : > { %v2422_v8 = vpop.f32.mrf.mxu2 }
 0x875   : > { %2541 = vst.msk [vmem:[%s3214_s30 + $0x128] sm:$0xff] %vm2503_vm13, %v2422_v8 }
 0x87c   : > { %v2425_v62 = vpop.f32.mrf.mxu2 }
 0x87d   : > { %2542 = vst.msk [vmem:[%s3214_s30 + $0x130] sm:$0xff] %vm2503_vm13, %v2425_v62 }
 0x8a7   : > { %v1514_v59 = vpop.xlane.xlu1 %1513 }
 0x8a8   : > { %vm1515_vm1 = vcmp.eq.f32.partialorder %v3887_v29, %v1514_v59 }
 0x8a9   : > { %v1516_v6 = vsel %vm1515_vm1, %v1511_v4, inf }
 0x8aa   : > { %1517 = vmin.xlane.f32.xlu0 %v1516_v6 }
 0x8b0   : > { %v1484_v22 = vpop.xlane.xlu0 %1483 }
 0x8b1   : > { %vm1485_vm2 = vcmp.eq.f32.partialorder %v3897_v17, %v1484_v22  ;;  %v1524_v17 = vand.u32 65535, %v3920_v27 }
 0x8b2   : > { %v1486_v13 = vsel %vm1485_vm2, %v1481_v11, inf }
 0x8b3   : > { %1487 = vmin.xlane.f32.xlu2 %v1486_v13  ;;  %v1526_v35 = vcvt.s32.f32 %v1524_v17 }
 0x8b8   : > { %v1499_v28 = vpop.xlane.xlu2 %1498  ;;  %v1461_v12 = vpop.xlane.xlu0 %1460 }
 0x8b9   : > { %vm1500_vm3 = vcmp.eq.f32.partialorder %v3911_v25, %v1499_v28  ;;  %vm1469_vm4 = vcmp.le.f32.partialorder %v3908_v2, %v1461_v12  ;;  %v1541_v25 = vcvt.s32.f32 %v1539_v26  ;;  %v1505_v49 = vcvt.f32.s32 %v1499_v28 }
 0x8ba   : > { %v1477_v23 = vsel %vm1469_vm4, %v3042_v53, 64  ;;  %v1501_v29 = vsel %vm1500_vm3, %v1496_v31, inf }
 0x8bb   : > { %v1583_v24 = vsel %vm437_vm0, %v1477_v23, 2147483647  ;;  %1502 = vmin.xlane.f32.xlu1 %v1501_v29  ;;  %v1506_v58 = vshll.u32 %v1505_v49, 16 }
 0x8bc   : > { %v1585_v42 = vshra.s32 %v1583_v24, 16  ;;  %v1584_v8 = vand.u32 65535, %v1583_v24 }
 0x8be   : > { %v3966_v37 = vcvt.s32.f32 %v1585_v42  ;;  %v1586_v4 = vcvt.s32.f32 %v1584_v8 }
 0x8c0   : > { %1588 = vmin.xlane.f32.xlu2 %v3966_v37 }
 0x8c1   : > { %v3970_v41 = vpop.xlane.xlu2 %1528 }
 0x8c2   : > { %vm1530_vm5 = vcmp.eq.f32.partialorder %v3926_v57, %v3970_v41  ;;  %v1520_v57 = vcvt.f32.s32 %v1514_v59  ;;  %v1535_v6 = vcvt.f32.s32 %v3970_v41 }
 0x8c3   : > { %v1531_v40 = vsel %vm1530_vm5, %v1526_v35, inf }
 0x8c4   : > { %1532 = vmin.xlane.f32.xlu1 %v1531_v40  ;;  %v1521_v19 = vshll.u32 %v1520_v57, 16  ;;  %v1536_v28 = vshll.u32 %v1535_v6, 16 }
 0x8c5   : > { %v3975_v36 = vpop.xlane.xlu0 %1543 }
 0x8c6   : > { %vm1545_vm6 = vcmp.eq.f32.partialorder %v1542_v50, %v3975_v36  ;;  %v1490_v50 = vcvt.f32.s32 %v1484_v22  ;;  %v1550_v12 = vcvt.f32.s32 %v3975_v36 }
 0x8c7   : > { %v1546_v38 = vsel %vm1545_vm6, %v1541_v25, inf }
 0x8c8   : > { %1547 = vmin.xlane.f32.xlu2 %v1546_v38  ;;  %v1491_v30 = vshll.u32 %v1490_v50, 16  ;;  %v1551_v24 = vshll.u32 %v1550_v12, 16 }
 0x8c9   : > { %v3978_v39 = vpop.xlane.xlu1 %1558 }
 0x8ca   : > { %vm1560_vm7 = vcmp.eq.f32.partialorder %v1557_v1, %v3978_v39 }
 0x8cb   : > { %v1561_v27 = vsel %vm1560_vm7, %v1556_v43, inf }
 0x8cc   : > { %1562 = vmin.xlane.f32.xlu0 %v1561_v27 }
 0x8cf   : > { %v2428_v46 = vpop.f32.mrf.mxu2 }
 0x8d0   : > { %2543 = vst.msk [vmem:[%s3214_s30 + $0x138] sm:$0xff] %vm2503_vm13, %v2428_v46 }
 0x8d8   : > { %v3983_v47 = vpop.xlane.xlu0 %1573 }
 0x8d9   : > { %vm1575_vm8 = vcmp.eq.f32.partialorder %v1572_v5, %v3983_v47  ;;  %v1580_v48 = vcvt.f32.s32 %v3983_v47 }
 0x8da   : > { %v1576_v51 = vsel %vm1575_vm8, %v1571_v33, inf }
 0x8db   : > { %1577 = vmin.xlane.f32.xlu2 %v1576_v51  ;;  %v1581_v57 = vshll.u32 %v1580_v48, 16 }
 0x91d   : > { %v1518_v45 = vpop.xlane.xlu0 %1517 }
 0x91e   : > { %v1519_v63 = vcvt.f32.s32 %v1518_v45 }
 0x920   : > { %v1522_v60 = vadd.s32 %v1521_v19, %v1519_v63 }
 0x922   : > { %vm1600_vm9 = vcmp.eq.s32.totalorder %v3042_v53, %v1522_v60 }
 0x923   : > { %v2733_v52 = vsel %vm1600_vm9, 1.0, %v2919_v21  ;;  %v3989_v54 = vsel %vm1600_vm9, 1e+30, %v3813_v14 }
 0x924   : > { %1624 = vst.msk [vmem:[#allocation2 + $0x150] sm:$0xff] %vm437_vm0, %v2733_v52  ;;  %v1644_v61 = vsel %vm437_vm0, %v3989_v54, inf }
 0x925   : > { %1645 = vmin.xlane.f32.xlu2 %v1644_v61 }
 0x926   : > { %v1488_v1 = vpop.xlane.xlu2 %1487 }
 0x927   : > { %v1489_v16 = vcvt.f32.s32 %v1488_v1 }
 0x929   : > { %v1492_v7 = vadd.s32 %v1491_v30, %v1489_v16 }
 0x92b   : > { %vm1598_vm10 = vcmp.eq.s32.totalorder %v3042_v53, %v1492_v7  ;;  %v2072_v43 = vld [vmem:[#allocation2 + $0x150] sm:$0xff] }
 0x92c   : > { %v2731_v10 = vsel %vm1598_vm10, 1.0, %v2919_v21  ;;  %v3997_v5 = vsel %vm1598_vm10, 1e+30, %v3820_v20 }
 0x92d   : > { %1622 = vst.msk [vmem:[#allocation2 + $0x140] sm:$0xff] %vm437_vm0, %v2731_v10  ;;  %v1638_v14 = vsel %vm437_vm0, %v3997_v5, inf }
 0x92e   : > { %v1503_v18 = vpop.xlane.xlu1 %1502  ;;  %1639 = vmin.xlane.f32.xlu1 %v1638_v14 }
 0x92f   : > { %v1504_v62 = vcvt.f32.s32 %v1503_v18 }
 0x931   : > { %v1507_v0 = vadd.s32 %v1506_v58, %v1504_v62 }
 0x933   : > { %vm1599_vm11 = vcmp.eq.s32.totalorder %v3042_v53, %v1507_v0  ;;  %v4003_v59 = vpop.xlane.xlu2 %1588 }
 0x934   : > { %v2732_v20 = vsel %vm1599_vm11, 1.0, %v2919_v21  ;;  %vm1590_vm12 = vcmp.eq.f32.partialorder %v3966_v37, %v4003_v59  ;;  %v2070_v9 = vld [vmem:[#allocation2 + $0x140] sm:$0xff]  ;;  %v4010_v22 = vsel %vm1599_vm11, 1e+30, %v3833_v32  ;;  %v1565_v32 = vcvt.f32.s32 %v3978_v39 }
 0x935   : > { %1623 = vst.msk [vmem:[#allocation2 + $0x148] sm:$0xff] %vm437_vm0, %v2732_v20  ;;  %2795 = vmatmul.msk.f32.gmra.mxu2 %vm437_vm0, %v2070_v9  ;;  %v1641_v11 = vsel %vm437_vm0, %v4010_v22, inf  ;;  %v1591_v13 = vsel %vm1590_vm12, %v1586_v4, inf  ;;  %v1595_v18 = vcvt.f32.s32 %v4003_v59 }
 0x936   : > { %1642 = vmin.xlane.f32.xlu0 %v1641_v11  ;;  %1592 = vmin.xlane.f32.xlu1 %v1591_v13  ;;  %v1566_v34 = vshll.u32 %v1565_v32, 16 }
 0x937   : > { %v1533_v3 = vpop.xlane.xlu1 %1532  ;;  %v1596_v0 = vshll.u32 %v1595_v18, 16 }
 0x938   : > { %v1534_v31 = vcvt.f32.s32 %v1533_v3 }
 0x93a   : > { %v1537_v23 = vadd.s32 %v1536_v28, %v1534_v31 }
 0x93b   : > { %v1548_v29 = vpop.xlane.xlu2 %1547 }
 0x93c   : > { %vm1601_vm14 = vcmp.eq.s32.totalorder %v3042_v53, %v1537_v23  ;;  %v1549_v42 = vcvt.f32.s32 %v1548_v29  ;;  %v2071_v17 = vld [vmem:[#allocation2 + $0x148] sm:$0xff] }
 0x93d   : > { %v2734_v37 = vsel %vm1601_vm14, 1.0, %v2919_v21  ;;  %2796 = vmatmul.msk.f32.gmra.mxu2 %vm437_vm0, %v2071_v17  ;;  %v4022_v26 = vsel %vm1601_vm14, 1e+30, %v3845_v44 }
 0x93e   : > { %1625 = vst.msk [vmem:[#allocation2 + $0x158] sm:$0xff] %vm437_vm0, %v2734_v37  ;;  %v1552_v41 = vadd.s32 %v1551_v24, %v1549_v42  ;;  %v1647_v35 = vsel %vm437_vm0, %v4022_v26, inf }
 0x93f   : > { %1648 = vmin.xlane.f32.xlu0 %v1647_v35  ;;  %v1563_v40 = vpop.xlane.xlu0 %1562 }
 0x940   : > { %vm1602_vm15 = vcmp.eq.s32.totalorder %v3042_v53, %v1552_v41  ;;  %v1564_v36 = vcvt.f32.s32 %v1563_v40 }
 0x941   : > { %v2735_v25 = vsel %vm1602_vm15, 1.0, %v2919_v21  ;;  %v4030_v38 = vsel %vm1602_vm15, 1e+30, %v3854_v55 }
 0x942   : > { %1626 = vst.msk [vmem:[#allocation2 + $0x160] sm:$0xff] %vm437_vm0, %v2735_v25  ;;  %v1567_v44 = vadd.s32 %v1566_v34, %v1564_v36  ;;  %v1650_v39 = vsel %vm437_vm0, %v4030_v38, inf }
 0x943   : > { %1651 = vmin.xlane.f32.xlu1 %v1650_v39 }
 0x944   : > { %vm1603_vm1 = vcmp.eq.s32.totalorder %v3042_v53, %v1567_v44 }
 0x945   : > { %v2736_v27 = vsel %vm1603_vm1, 1.0, %v2919_v21  ;;  %2797 = vmatmul.msk.f32.gmra.mxu2 %vm437_vm0, %v2072_v43  ;;  %v4039_v46 = vsel %vm1603_vm1, 1e+30, %v3863_v56  ;;  %v2073_v33 = vld [vmem:[#allocation2 + $0x158] sm:$0xff] }
 0x946   : > { %1627 = vst.msk [vmem:[#allocation2 + $0x168] sm:$0xff] %vm437_vm0, %v2736_v27  ;;  %v1653_v55 = vsel %vm437_vm0, %v4039_v46, inf }
 0x947   : > { %1654 = vmin.xlane.f32.xlu2 %v1653_v55 }
 0x949   : > { %v2074_v63 = vld [vmem:[#allocation2 + $0x160] sm:$0xff] }
 0x94d   : > { %2798 = vmatmul.msk.f32.gmra.mxu2 %vm437_vm0, %v2073_v33  ;;  %v2075_v50 = vld [vmem:[#allocation2 + $0x168] sm:$0xff] }
 0x94e   : > { %v1578_v51 = vpop.xlane.xlu2 %1577 }
 0x94f   : > { %v1579_v45 = vcvt.f32.s32 %v1578_v51 }
 0x951   : > { %v1582_v19 = vadd.s32 %v1581_v57, %v1579_v45 }
 0x953   : > { %vm1604_vm2 = vcmp.eq.s32.totalorder %v3042_v53, %v1582_v19 }
 0x954   : > { %v2737_v56 = vsel %vm1604_vm2, 1.0, %v2919_v21  ;;  %v4049_v60 = vsel %vm1604_vm2, 1e+30, %v3873_v15 }
 0x955   : > { %1628 = vst.msk [vmem:[#allocation2 + $0x170] sm:$0xff] %vm437_vm0, %v2737_v56  ;;  %2799 = vmatmul.msk.f32.gmra.mxu2 %vm437_vm0, %v2074_v63  ;;  %v1656_v47 = vsel %vm437_vm0, %v4049_v60, inf }
 0x956   : > { %1657 = vmin.xlane.f32.xlu1 %v1656_v47 }
 0x95c   : > { %v2076_v52 = vld [vmem:[#allocation2 + $0x170] sm:$0xff] }
 0x95d   : > { %2800 = vmatmul.msk.f32.gmra.mxu2 %vm437_vm0, %v2075_v50 }
 0x965   : > { %2801 = vmatmul.msk.f32.gmra.mxu2 %vm437_vm0, %v2076_v52 }
 0x998   : > { %v1646_v61 = vpop.xlane.xlu2 %1645 }
 0x999   : > { %vm1664_vm3 = vcmp.le.f32.partialorder %v3989_v54, %v1646_v61 }
 0x99a   : > { %v1672_v15 = vsel %vm1664_vm3, %v3042_v53, 64 }
 0x99b   : > { %v4060_v1 = vsel %vm437_vm0, %v1672_v15, 2147483647 }
 0x99c   : > { %v1710_v30 = vshra.s32 %v4060_v1, 16  ;;  %v1709_v63 = vand.u32 65535, %v4060_v1 }
 0x99e   : > { %v4063_v16 = vcvt.s32.f32 %v1710_v30  ;;  %v1711_v50 = vcvt.s32.f32 %v1709_v63 }
 0x9a0   : > { %1713 = vmin.xlane.f32.xlu1 %v4063_v16 }
 0x9a1   : > { %v1640_v7 = vpop.xlane.xlu1 %1639 }
 0x9a2   : > { %vm1662_vm4 = vcmp.le.f32.partialorder %v3997_v5, %v1640_v7 }
 0x9a3   : > { %v1670_v49 = vsel %vm1662_vm4, %v3042_v53, 64 }
 0x9a4   : > { %v4069_v10 = vsel %vm437_vm0, %v1670_v49, 2147483647 }
 0x9a5   : > { %v1680_v14 = vshra.s32 %v4069_v10, 16  ;;  %v1679_v61 = vand.u32 65535, %v4069_v10 }
 0x9a7   : > { %v4073_v58 = vcvt.s32.f32 %v1680_v14  ;;  %v1681_v30 = vcvt.s32.f32 %v1679_v61 }
 0x9a9   : > { %1683 = vmin.xlane.f32.xlu0 %v4073_v58  ;;  %v1593_v8 = vpop.xlane.xlu1 %1592  ;;  %v1643_v62 = vpop.xlane.xlu0 %1642 }
 0x9aa   : > { %v1594_v4 = vcvt.f32.s32 %v1593_v8  ;;  %vm1663_vm5 = vcmp.le.f32.partialorder %v4010_v22, %v1643_v62 }
 0x9ab   : > { %v1671_v6 = vsel %vm1663_vm5, %v3042_v53, 64 }
 0x9ac   : > { %v1597_v20 = vadd.s32 %v1596_v0, %v1594_v4  ;;  %v4079_v9 = vsel %vm437_vm0, %v1671_v6, 2147483647 }
 0x9ad   : > { %v1695_v11 = vshra.s32 %v4079_v9, 16  ;;  %v1694_v49 = vand.u32 65535, %v4079_v9 }
 0x9ae   : > { %vm1605_vm6 = vcmp.eq.s32.totalorder %v3042_v53, %v1597_v20 }
 0x9af   : > { %v2738_v59 = vsel %vm1605_vm6, 1.0, %v2919_v21  ;;  %v4085_v13 = vsel %vm1605_vm6, 1e+30, %v3908_v2  ;;  %v4087_v3 = vcvt.s32.f32 %v1695_v11  ;;  %v1696_v8 = vcvt.s32.f32 %v1694_v49 }
 0x9b0   : > { %1629 = vst.msk [vmem:[#allocation2 + $0x178] sm:$0xff] %vm437_vm0, %v2738_v59  ;;  %v1659_v28 = vsel %vm437_vm0, %v4085_v13, inf }
 0x9b1   : > { %1660 = vmin.xlane.f32.xlu0 %v1659_v28  ;;  %1698 = vmin.xlane.f32.xlu2 %v4087_v3 }
 0x9b2   : > { %v1649_v12 = vpop.xlane.xlu0 %1648 }
 0x9b3   : > { %vm1665_vm7 = vcmp.le.f32.partialorder %v4022_v26, %v1649_v12 }
 0x9b4   : > { %v1673_v31 = vsel %vm1665_vm7, %v3042_v53, 64 }
 0x9b5   : > { %v4096_v23 = vsel %vm437_vm0, %v1673_v31, 2147483647 }
 0x9b6   : > { %v1725_v2 = vshra.s32 %v4096_v23, 16  ;;  %v1652_v29 = vpop.xlane.xlu1 %1651 }
 0x9b7   : > { %vm1666_vm8 = vcmp.le.f32.partialorder %v4030_v38, %v1652_v29  ;;  %v2077_v24 = vld [vmem:[#allocation2 + $0x178] sm:$0xff] }
 0x9b8   : > { %v1674_v32 = vsel %vm1666_vm8, %v3042_v53, 64  ;;  %v2431_v42 = vpop.f32.mrf.mxu2  ;;  %2802 = vmatmul.msk.f32.gmra.mxu2 %vm437_vm0, %v2077_v24  ;;  %v4102_v17 = vcvt.s32.f32 %v1725_v2 }
 0x9b9   : > { %v4105_v37 = vsel %vm437_vm0, %v1674_v32, 2147483647  ;;  %2544 = vst.msk [vmem:[%s3214_s30 + $0x140] sm:$0xff] %vm2503_vm13, %v2431_v42 }
 0x9ba   : > { %v1740_v41 = vshra.s32 %v4105_v37, 16  ;;  %1728 = vmin.xlane.f32.xlu2 %v4102_v17  ;;  %v1655_v35 = vpop.xlane.xlu2 %1654  ;;  %v1739_v4 = vand.u32 65535, %v4105_v37 }
 0x9bb   : > { %vm1667_vm9 = vcmp.le.f32.partialorder %v4039_v46, %v1655_v35 }
 0x9bc   : > { %v1675_v40 = vsel %vm1667_vm9, %v3042_v53, 64  ;;  %v1742_v34 = vcvt.s32.f32 %v1740_v41 }
 0x9bd   : > { %v4114_v36 = vsel %vm437_vm0, %v1675_v40, 2147483647 }
 0x9be   : > { %v1755_v25 = vshra.s32 %v4114_v36, 16  ;;  %1743 = vmin.xlane.f32.xlu0 %v1742_v34  ;;  %v1754_v11 = vand.u32 65535, %v4114_v36 }
 0x9c0   : > { %v2434_v44 = vpop.f32.mrf.mxu2  ;;  %v1757_v39 = vcvt.s32.f32 %v1755_v25  ;;  %v1756_v31 = vcvt.s32.f32 %v1754_v11 }
 0x9c1   : > { %2545 = vst.msk [vmem:[%s3214_s30 + $0x148] sm:$0xff] %vm2503_vm13, %v2434_v44 }
 0x9c2   : > { %1758 = vmin.xlane.f32.xlu1 %v1757_v39 }
 0x9c8   : > { %v2437_v43 = vpop.f32.mrf.mxu2 }
 0x9c9   : > { %2546 = vst.msk [vmem:[%s3214_s30 + $0x150] sm:$0xff] %vm2503_vm13, %v2437_v43  ;;  %v1658_v27 = vpop.xlane.xlu1 %1657 }
 0x9ca   : > { %vm1668_vm10 = vcmp.le.f32.partialorder %v4049_v60, %v1658_v27 }
 0x9cb   : > { %v1676_v55 = vsel %vm1668_vm10, %v3042_v53, 64 }
 0x9cc   : > { %v1768_v48 = vsel %vm437_vm0, %v1676_v55, 2147483647 }
 0x9cd   : > { %v1770_v33 = vshra.s32 %v1768_v48, 16  ;;  %v1769_v29 = vand.u32 65535, %v1768_v48 }
 0x9cf   : > { %v1772_v51 = vcvt.s32.f32 %v1770_v33  ;;  %v1771_v32 = vcvt.s32.f32 %v1769_v29 }
 0x9d0   : > { %v2440_v57 = vpop.f32.mrf.mxu2 }
 0x9d1   : > { %2547 = vst.msk [vmem:[%s3214_s30 + $0x158] sm:$0xff] %vm2503_vm13, %v2440_v57  ;;  %1773 = vmin.xlane.f32.xlu0 %v1772_v51 }
 0x9d8   : > { %v2443_v45 = vpop.f32.mrf.mxu2 }
 0x9d9   : > { %2548 = vst.msk [vmem:[%s3214_s30 + $0x160] sm:$0xff] %vm2503_vm13, %v2443_v45 }
 0x9e0   : > { %v2446_v19 = vpop.f32.mrf.mxu2 }
 0x9e1   : > { %2549 = vst.msk [vmem:[%s3214_s30 + $0x168] sm:$0xff] %vm2503_vm13, %v2446_v19 }
 0x9e8   : > { %v2449_v56 = vpop.f32.mrf.mxu2 }
 0x9e9   : > { %2550 = vst.msk [vmem:[%s3214_s30 + $0x170] sm:$0xff] %vm2503_vm13, %v2449_v56 }
 0xa13   : > { %v1714_v47 = vpop.xlane.xlu1 %1713 }
 0xa14   : > { %vm1715_vm11 = vcmp.eq.f32.partialorder %v4063_v16, %v1714_v47 }
 0xa15   : > { %v1716_v52 = vsel %vm1715_vm11, %v1711_v50, inf }
 0xa16   : > { %1717 = vmin.xlane.f32.xlu0 %v1716_v52 }
 0xa1c   : > { %v1684_v15 = vpop.xlane.xlu0 %1683 }
 0xa1d   : > { %vm1685_vm12 = vcmp.eq.f32.partialorder %v4073_v58, %v1684_v15  ;;  %v1724_v58 = vand.u32 65535, %v4096_v23 }
 0xa1e   : > { %v1686_v7 = vsel %vm1685_vm12, %v1681_v30, inf }
 0xa1f   : > { %1687 = vmin.xlane.f32.xlu2 %v1686_v7  ;;  %v1726_v20 = vcvt.s32.f32 %v1724_v58 }
 0xa24   : > { %v1699_v14 = vpop.xlane.xlu2 %1698  ;;  %v1661_v18 = vpop.xlane.xlu0 %1660 }
 0xa25   : > { %vm1700_vm14 = vcmp.eq.f32.partialorder %v4087_v3, %v1699_v14  ;;  %vm1669_vm15 = vcmp.le.f32.partialorder %v4085_v13, %v1661_v18  ;;  %v1741_v3 = vcvt.s32.f32 %v1739_v4  ;;  %v1705_v48 = vcvt.f32.s32 %v1699_v14 }
 0xa26   : > { %v1677_v1 = vsel %vm1669_vm15, %v3042_v53, 64  ;;  %v1701_v16 = vsel %vm1700_vm14, %v1696_v8, inf }
 0xa27   : > { %v1783_v10 = vsel %vm437_vm0, %v1677_v1, 2147483647  ;;  %1702 = vmin.xlane.f32.xlu1 %v1701_v16  ;;  %v1706_v45 = vshll.u32 %v1705_v48, 16 }
 0xa28   : > { %v1785_v62 = vshra.s32 %v1783_v10, 16  ;;  %v1784_v19 = vand.u32 65535, %v1783_v10 }
 0xa2a   : > { %v4142_v0 = vcvt.s32.f32 %v1785_v62  ;;  %v1786_v50 = vcvt.s32.f32 %v1784_v19 }
 0xa2c   : > { %1788 = vmin.xlane.f32.xlu2 %v4142_v0 }
 0xa2d   : > { %v4146_v6 = vpop.xlane.xlu2 %1728 }
 0xa2e   : > { %vm1730_vm1 = vcmp.eq.f32.partialorder %v4102_v17, %v4146_v6  ;;  %v1720_v17 = vcvt.f32.s32 %v1714_v47 }
 0xa2f   : > { %v1731_v9 = vsel %vm1730_vm1, %v1726_v20, inf }
 0xa30   : > { %1732 = vmin.xlane.f32.xlu1 %v1731_v9  ;;  %v1721_v41 = vshll.u32 %v1720_v17, 16 }
 0xa31   : > { %v4151_v59 = vpop.xlane.xlu0 %1743 }
 0xa32   : > { %vm1745_vm2 = vcmp.eq.f32.partialorder %v1742_v34, %v4151_v59  ;;  %v1690_v34 = vcvt.f32.s32 %v1684_v15  ;;  %v1750_v18 = vcvt.f32.s32 %v4151_v59 }
 0xa33   : > { %v1746_v28 = vsel %vm1745_vm2, %v1741_v3, inf }
 0xa34   : > { %1747 = vmin.xlane.f32.xlu2 %v1746_v28  ;;  %v1691_v43 = vshll.u32 %v1690_v34, 16  ;;  %v1751_v16 = vshll.u32 %v1750_v18, 16 }
 0xa35   : > { %v4154_v12 = vpop.xlane.xlu1 %1758 }
 0xa36   : > { %vm1760_vm3 = vcmp.eq.f32.partialorder %v1757_v39, %v4154_v12  ;;  %v1765_v10 = vcvt.f32.s32 %v4154_v12 }
 0xa37   : > { %v1761_v23 = vsel %vm1760_vm3, %v1756_v31, inf }
 0xa38   : > { %1762 = vmin.xlane.f32.xlu0 %v1761_v23  ;;  %v1766_v11 = vshll.u32 %v1765_v10, 16 }
 0xa3b   : > { %v2452_v2 = vpop.f32.mrf.mxu2 }
 0xa3c   : > { %2551 = vst.msk [vmem:[%s3214_s30 + $0x178] sm:$0xff] %vm2503_vm13, %v2452_v2 }
 0xa44   : > { %v4159_v24 = vpop.xlane.xlu0 %1773 }
 0xa45   : > { %vm1775_vm4 = vcmp.eq.f32.partialorder %v1772_v51, %v4159_v24  ;;  %v1780_v29 = vcvt.f32.s32 %v4159_v24 }
 0xa46   : > { %v1776_v42 = vsel %vm1775_vm4, %v1771_v32, inf }
 0xa47   : > { %1777 = vmin.xlane.f32.xlu2 %v1776_v42  ;;  %v1781_v17 = vshll.u32 %v1780_v29, 16 }
 0xa89   : > { %v1718_v37 = vpop.xlane.xlu0 %1717 }
 0xa8a   : > { %v1719_v35 = vcvt.f32.s32 %v1718_v37 }
 0xa8c   : > { %v1722_v40 = vadd.s32 %v1721_v41, %v1719_v35 }
 0xa8e   : > { %vm1800_vm5 = vcmp.eq.s32.totalorder %v3042_v53, %v1722_v40 }
 0xa8f   : > { %v4164_v36 = vsel %vm1800_vm5, 1e+30, %v3989_v54  ;;  %v2741_v25 = vsel %vm1800_vm5, 1.0, %v2919_v21 }
 0xa90   : > { %v1844_v44 = vsel %vm437_vm0, %v4164_v36, inf  ;;  %1824 = vst.msk [vmem:[#allocation2 + $0x190] sm:$0xff] %vm437_vm0, %v2741_v25 }
 0xa91   : > { %1845 = vmin.xlane.f32.xlu2 %v1844_v44 }
 0xa92   : > { %v1688_v39 = vpop.xlane.xlu2 %1687 }
 0xa93   : > { %v1689_v27 = vcvt.f32.s32 %v1688_v39 }
 0xa95   : > { %v1692_v55 = vadd.s32 %v1691_v43, %v1689_v27 }
 0xa97   : > { %vm1798_vm6 = vcmp.eq.s32.totalorder %v3042_v53, %v1692_v55  ;;  %v2080_v31 = vld [vmem:[#allocation2 + $0x190] sm:$0xff] }
 0xa98   : > { %v4172_v33 = vsel %vm1798_vm6, 1e+30, %v3997_v5  ;;  %v2739_v54 = vsel %vm1798_vm6, 1.0, %v2919_v21  ;;  %v1735_v5 = vcvt.f32.s32 %v4146_v6 }
 0xa99   : > { %v1838_v51 = vsel %vm437_vm0, %v4172_v33, inf  ;;  %1822 = vst.msk [vmem:[#allocation2 + $0x180] sm:$0xff] %vm437_vm0, %v2739_v54 }
 0xa9a   : > { %v1703_v57 = vpop.xlane.xlu1 %1702  ;;  %1839 = vmin.xlane.f32.xlu1 %v1838_v51  ;;  %v1736_v14 = vshll.u32 %v1735_v5, 16 }
 0xa9b   : > { %v1704_v56 = vcvt.f32.s32 %v1703_v57 }
 0xa9d   : > { %v1707_v63 = vadd.s32 %v1706_v45, %v1704_v56 }
 0xa9f   : > { %v4178_v47 = vpop.xlane.xlu2 %1788  ;;  %vm1799_vm7 = vcmp.eq.s32.totalorder %v3042_v53, %v1707_v63 }
 0xaa0   : > { %vm1790_vm8 = vcmp.eq.f32.partialorder %v4142_v0, %v4178_v47  ;;  %v2078_v52 = vld [vmem:[#allocation2 + $0x180] sm:$0xff]  ;;  %v4185_v61 = vsel %vm1799_vm7, 1e+30, %v4010_v22  ;;  %v2740_v15 = vsel %vm1799_vm7, 1.0, %v2919_v21  ;;  %v1795_v51 = vcvt.f32.s32 %v4178_v47 }
 0xaa1   : > { %2803 = vmatmul.msk.f32.vlgmr.msra.gmra.mxu3 %vm437_vm0, %v2078_v52  ;;  %v1841_v30 = vsel %vm437_vm0, %v4185_v61, inf  ;;  %1823 = vst.msk [vmem:[#allocation2 + $0x188] sm:$0xff] %vm437_vm0, %v2740_v15  ;;  %v1791_v7 = vsel %vm1790_vm8, %v1786_v50, inf }
 0xaa2   : > { %1842 = vmin.xlane.f32.xlu0 %v1841_v30  ;;  %1792 = vmin.xlane.f32.xlu1 %v1791_v7  ;;  %v1796_v56 = vshll.u32 %v1795_v51, 16 }
 0xaa3   : > { %v1733_v49 = vpop.xlane.xlu1 %1732 }
 0xaa4   : > { %v1734_v8 = vcvt.f32.s32 %v1733_v49 }
 0xaa6   : > { %v1737_v1 = vadd.s32 %v1736_v14, %v1734_v8 }
 0xaa7   : > { %v1748_v22 = vpop.xlane.xlu2 %1747 }
 0xaa8   : > { %v1749_v62 = vcvt.f32.s32 %v1748_v22  ;;  %v2079_v58 = vld [vmem:[#allocation2 + $0x188] sm:$0xff]  ;;  %vm1801_vm9 = vcmp.eq.s32.totalorder %v3042_v53, %v1737_v1 }
 0xaa9   : > { %2804 = vmatmul.msk.f32.gmra.mxu3 %vm437_vm0, %v2079_v58  ;;  %v4197_v0 = vsel %vm1801_vm9, 1e+30, %v4022_v26  ;;  %v2742_v4 = vsel %vm1801_vm9, 1.0, %v2919_v21 }
 0xaaa   : > { %v1752_v6 = vadd.s32 %v1751_v16, %v1749_v62  ;;  %v1847_v20 = vsel %vm437_vm0, %v4197_v0, inf  ;;  %1825 = vst.msk [vmem:[#allocation2 + $0x198] sm:$0xff] %vm437_vm0, %v2742_v4 }
 0xaab   : > { %1848 = vmin.xlane.f32.xlu0 %v1847_v20  ;;  %v1763_v9 = vpop.xlane.xlu0 %1762 }
 0xaac   : > { %v1764_v59 = vcvt.f32.s32 %v1763_v9  ;;  %vm1802_vm10 = vcmp.eq.s32.totalorder %v3042_v53, %v1752_v6 }
 0xaad   : > { %v4205_v3 = vsel %vm1802_vm10, 1e+30, %v4030_v38  ;;  %v2743_v26 = vsel %vm1802_vm10, 1.0, %v2919_v21 }
 0xaae   : > { %v1767_v28 = vadd.s32 %v1766_v11, %v1764_v59  ;;  %v1850_v12 = vsel %vm437_vm0, %v4205_v3, inf  ;;  %1826 = vst.msk [vmem:[#allocation2 + $0x1a0] sm:$0xff] %vm437_vm0, %v2743_v26 }
 0xaaf   : > { %1851 = vmin.xlane.f32.xlu1 %v1850_v12 }
 0xab0   : > { %vm1803_vm11 = vcmp.eq.s32.totalorder %v3042_v53, %v1767_v28 }
 0xab1   : > { %2805 = vmatmul.msk.f32.gmra.mxu3 %vm437_vm0, %v2080_v31  ;;  %v4214_v23 = vsel %vm1803_vm11, 1e+30, %v4039_v46  ;;  %v2744_v38 = vsel %vm1803_vm11, 1.0, %v2919_v21  ;;  %v2081_v32 = vld [vmem:[#allocation2 + $0x198] sm:$0xff] }
 0xab2   : > { %v1853_v2 = vsel %vm437_vm0, %v4214_v23, inf  ;;  %1827 = vst.msk [vmem:[#allocation2 + $0x1a8] sm:$0xff] %vm437_vm0, %v2744_v38 }
 0xab3   : > { %1854 = vmin.xlane.f32.xlu2 %v1853_v2 }
 0xab5   : > { %v2082_v46 = vld [vmem:[#allocation2 + $0x1a0] sm:$0xff] }
 0xab9   : > { %2806 = vmatmul.msk.f32.gmra.mxu3 %vm437_vm0, %v2081_v32  ;;  %v2083_v34 = vld [vmem:[#allocation2 + $0x1a8] sm:$0xff] }
 0xaba   : > { %v1778_v42 = vpop.xlane.xlu2 %1777 }
 0xabb   : > { %v1779_v37 = vcvt.f32.s32 %v1778_v42 }
 0xabd   : > { %v1782_v41 = vadd.s32 %v1781_v17, %v1779_v37 }
 0xabf   : > { %vm1804_vm12 = vcmp.eq.s32.totalorder %v3042_v53, %v1782_v41 }
 0xac0   : > { %v4224_v35 = vsel %vm1804_vm12, 1e+30, %v4049_v60  ;;  %v2745_v40 = vsel %vm1804_vm12, 1.0, %v2919_v21 }
 0xac1   : > { %2807 = vmatmul.msk.f32.gmra.mxu3 %vm437_vm0, %v2082_v46  ;;  %v1856_v24 = vsel %vm437_vm0, %v4224_v35, inf  ;;  %1828 = vst.msk [vmem:[#allocation2 + $0x1b0] sm:$0xff] %vm437_vm0, %v2745_v40 }
 0xac2   : > { %1857 = vmin.xlane.f32.xlu1 %v1856_v24 }
 0xac8   : > { %v2084_v25 = vld [vmem:[#allocation2 + $0x1b0] sm:$0xff] }
 0xac9   : > { %2808 = vmatmul.msk.f32.gmra.mxu3 %vm437_vm0, %v2083_v34 }
 0xad1   : > { %2809 = vmatmul.msk.f32.gmra.mxu3 %vm437_vm0, %v2084_v25 }
 0xb04   : > { %v1846_v44 = vpop.xlane.xlu2 %1845 }
 0xb05   : > { %vm1864_vm14 = vcmp.le.f32.partialorder %v4164_v36, %v1846_v44 }
 0xb06   : > { %v1872_v60 = vsel %vm1864_vm14, %v3042_v53, 64 }
 0xb07   : > { %v4236_v39 = vsel %vm437_vm0, %v1872_v60, 2147483647 }
 0xb08   : > { %v1910_v43 = vshra.s32 %v4236_v39, 16  ;;  %v1909_v32 = vand.u32 65535, %v4236_v39 }
 0xb0a   : > { %v4239_v27 = vcvt.s32.f32 %v1910_v43  ;;  %v1911_v17 = vcvt.s32.f32 %v1909_v32 }
 0xb0c   : > { %1913 = vmin.xlane.f32.xlu1 %v4239_v27 }
 0xb0d   : > { %v1840_v55 = vpop.xlane.xlu1 %1839 }
 0xb0e   : > { %vm1862_vm15 = vcmp.le.f32.partialorder %v4172_v33, %v1840_v55 }
 0xb0f   : > { %v1870_v48 = vsel %vm1862_vm15, %v3042_v53, 64 }
 0xb10   : > { %v4245_v54 = vsel %vm437_vm0, %v1870_v48, 2147483647 }
 0xb11   : > { %v1880_v36 = vshra.s32 %v4245_v54, 16  ;;  %v1879_v41 = vand.u32 65535, %v4245_v54 }
 0xb13   : > { %v4249_v57 = vcvt.s32.f32 %v1880_v36 }
 0xb15   : > { %1883 = vmin.xlane.f32.xlu0 %v4249_v57  ;;  %v1793_v45 = vpop.xlane.xlu1 %1792  ;;  %v1843_v19 = vpop.xlane.xlu0 %1842 }
 0xb16   : > { %v1794_v63 = vcvt.f32.s32 %v1793_v45  ;;  %vm1863_vm1 = vcmp.le.f32.partialorder %v4185_v61, %v1843_v19 }
 0xb17   : > { %v1871_v33 = vsel %vm1863_vm1, %v3042_v53, 64 }
 0xb18   : > { %v1797_v50 = vadd.s32 %v1796_v56, %v1794_v63  ;;  %v4255_v5 = vsel %vm437_vm0, %v1871_v33, 2147483647 }
 0xb19   : > { %v1895_v52 = vshra.s32 %v4255_v5, 16  ;;  %v1894_v24 = vand.u32 65535, %v4255_v5 }
 0xb1a   : > { %vm1805_vm2 = vcmp.eq.s32.totalorder %v3042_v53, %v1797_v50 }
 0xb1b   : > { %v4260_v47 = vsel %vm1805_vm2, 1e+30, %v4085_v13  ;;  %v2746_v15 = vsel %vm1805_vm2, 1.0, %v2919_v21  ;;  %v4263_v30 = vcvt.s32.f32 %v1895_v52  ;;  %v1896_v44 = vcvt.s32.f32 %v1894_v24 }
 0xb1c   : > { %v1859_v61 = vsel %vm437_vm0, %v4260_v47, inf  ;;  %1829 = vst.msk [vmem:[#allocation2 + $0x1b8] sm:$0xff] %vm437_vm0, %v2746_v15 }
 0xb1d   : > { %1860 = vmin.xlane.f32.xlu0 %v1859_v61  ;;  %1898 = vmin.xlane.f32.xlu2 %v4263_v30 }
 0xb1e   : > { %v1849_v7 = vpop.xlane.xlu0 %1848 }
 0xb1f   : > { %vm1865_vm3 = vcmp.le.f32.partialorder %v4197_v0, %v1849_v7 }
 0xb20   : > { %v1873_v49 = vsel %vm1865_vm3, %v3042_v53, 64 }
 0xb21   : > { %v4272_v13 = vsel %vm437_vm0, %v1873_v49, 2147483647 }
 0xb22   : > { %v1925_v14 = vshra.s32 %v4272_v13, 16  ;;  %v1852_v18 = vpop.xlane.xlu1 %1851  ;;  %v1924_v55 = vand.u32 65535, %v4272_v13 }
 0xb23   : > { %vm1866_vm4 = vcmp.le.f32.partialorder %v4205_v3, %v1852_v18  ;;  %v2085_v8 = vld [vmem:[#allocation2 + $0x1b8] sm:$0xff] }
 0xb24   : > { %v1874_v1 = vsel %vm1866_vm4, %v3042_v53, 64  ;;  %v2455_v22 = vpop.f32.mrf.mxu3  ;;  %2810 = vmatmul.msk.f32.gmra.mxu3 %vm437_vm0, %v2085_v8  ;;  %v4278_v16 = vcvt.s32.f32 %v1925_v14  ;;  %v1926_v51 = vcvt.s32.f32 %v1924_v55 }
 0xb25   : > { %v4281_v10 = vsel %vm437_vm0, %v1874_v1, 2147483647  ;;  %2552 = vst.msk [vmem:[%s3214_s30 + $0x180] sm:$0xff] %vm2503_vm13, %v2455_v22 }
 0xb26   : > { %v1940_v62 = vshra.s32 %v4281_v10, 16  ;;  %1928 = vmin.xlane.f32.xlu2 %v4278_v16  ;;  %v1855_v58 = vpop.xlane.xlu2 %1854  ;;  %v1939_v54 = vand.u32 65535, %v4281_v10 }
 0xb27   : > { %vm1867_vm5 = vcmp.le.f32.partialorder %v4214_v23, %v1855_v58 }
 0xb28   : > { %v1875_v0 = vsel %vm1867_vm5, %v3042_v53, 64  ;;  %v1942_v4 = vcvt.s32.f32 %v1940_v62  ;;  %v1941_v56 = vcvt.s32.f32 %v1939_v54 }
 0xb29   : > { %v4290_v6 = vsel %vm437_vm0, %v1875_v0, 2147483647 }
 0xb2a   : > { %v1955_v20 = vshra.s32 %v4290_v6, 16  ;;  %1943 = vmin.xlane.f32.xlu0 %v1942_v4  ;;  %v1954_v45 = vand.u32 65535, %v4290_v6 }
 0xb2c   : > { %v2458_v9 = vpop.f32.mrf.mxu3  ;;  %v1957_v11 = vcvt.s32.f32 %v1955_v20  ;;  %v1956_v50 = vcvt.s32.f32 %v1954_v45 }
 0xb2d   : > { %2553 = vst.msk [vmem:[%s3214_s30 + $0x188] sm:$0xff] %vm2503_vm13, %v2458_v9 }
 0xb2e   : > { %1958 = vmin.xlane.f32.xlu1 %v1957_v11 }
 0xb34   : > { %v2461_v59 = vpop.f32.mrf.mxu3 }
 0xb35   : > { %2554 = vst.msk [vmem:[%s3214_s30 + $0x190] sm:$0xff] %vm2503_vm13, %v2461_v59  ;;  %v1858_v3 = vpop.xlane.xlu1 %1857 }
 0xb36   : > { %vm1868_vm6 = vcmp.le.f32.partialorder %v4224_v35, %v1858_v3  ;;  %v1881_v35 = vcvt.s32.f32 %v1879_v41 }
 0xb37   : > { %v1876_v26 = vsel %vm1868_vm6, %v3042_v53, 64 }
 0xb38   : > { %v1968_v28 = vsel %vm437_vm0, %v1876_v26, 2147483647 }
 0xb39   : > { %v1970_v12 = vshra.s32 %v1968_v28, 16 }
 0xb3b   : > { %v1972_v31 = vcvt.s32.f32 %v1970_v12 }
 0xb3c   : > { %v2464_v23 = vpop.f32.mrf.mxu3 }
 0xb3d   : > { %2555 = vst.msk [vmem:[%s3214_s30 + $0x198] sm:$0xff] %vm2503_vm13, %v2464_v23  ;;  %1973 = vmin.xlane.f32.xlu0 %v1972_v31 }
 0xb44   : > { %v2467_v38 = vpop.f32.mrf.mxu3 }
 0xb45   : > { %2556 = vst.msk [vmem:[%s3214_s30 + $0x1a0] sm:$0xff] %vm2503_vm13, %v2467_v38 }
 0xb4c   : > { %v2470_v2 = vpop.f32.mrf.mxu3 }
 0xb4d   : > { %2557 = vst.msk [vmem:[%s3214_s30 + $0x1a8] sm:$0xff] %vm2503_vm13, %v2470_v2 }
 0xb54   : > { %v2473_v29 = vpop.f32.mrf.mxu3 }
 0xb55   : > { %2558 = vst.msk [vmem:[%s3214_s30 + $0x1b0] sm:$0xff] %vm2503_vm13, %v2473_v29 }
 0xb7f   : > { %v1914_v42 = vpop.xlane.xlu1 %1913 }
 0xb80   : > { %vm1915_vm7 = vcmp.eq.f32.partialorder %v4239_v27, %v1914_v42  ;;  %v1920_v7 = vcvt.f32.s32 %v1914_v42 }
 0xb81   : > { %v1916_v37 = vsel %vm1915_vm7, %v1911_v17, inf }
 0xb82   : > { %1917 = vmin.xlane.f32.xlu0 %v1916_v37  ;;  %v1921_v13 = vshll.u32 %v1920_v7, 16 }
 0xb88   : > { %v1884_v46 = vpop.xlane.xlu0 %1883 }
 0xb89   : > { %vm1885_vm8 = vcmp.eq.f32.partialorder %v4249_v57, %v1884_v46  ;;  %v1890_v8 = vcvt.f32.s32 %v1884_v46 }
 0xb8a   : > { %v1886_v40 = vsel %vm1885_vm8, %v1881_v35, inf }
 0xb8b   : > { %1887 = vmin.xlane.f32.xlu2 %v1886_v40 }
 0xb90   : > { %v1899_v34 = vpop.xlane.xlu2 %1898  ;;  %v1861_v25 = vpop.xlane.xlu0 %1860 }
 0xb91   : > { %vm1900_vm9 = vcmp.eq.f32.partialorder %v4263_v30, %v1899_v34  ;;  %vm1869_vm10 = vcmp.le.f32.partialorder %v4260_v47, %v1861_v25  ;;  %v1969_v47 = vand.u32 65535, %v1968_v28  ;;  %v1905_v58 = vcvt.f32.s32 %v1899_v34 }
 0xb92   : > { %v1877_v60 = vsel %vm1869_vm10, %v3042_v53, 64  ;;  %v1901_v39 = vsel %vm1900_vm9, %v1896_v44, inf }
 0xb93   : > { %v1983_v43 = vsel %vm437_vm0, %v1877_v60, 2147483647  ;;  %1902 = vmin.xlane.f32.xlu1 %v1901_v39  ;;  %v1971_v30 = vcvt.s32.f32 %v1969_v47  ;;  %v1906_v6 = vshll.u32 %v1905_v58, 16 }
 0xb94   : > { %v1985_v27 = vshra.s32 %v1983_v43, 16  ;;  %v1984_v20 = vand.u32 65535, %v1983_v43 }
 0xb96   : > { %v1987_v48 = vcvt.s32.f32 %v1985_v27  ;;  %v1986_v3 = vcvt.s32.f32 %v1984_v20 }
 0xb98   : > { %1988 = vmin.xlane.f32.xlu2 %v1987_v48 }
 0xb99   : > { %v1929_v36 = vpop.xlane.xlu2 %1928 }
 0xb9a   : > { %vm1930_vm11 = vcmp.eq.f32.partialorder %v4278_v16, %v1929_v36  ;;  %v1891_v16 = vshll.u32 %v1890_v8, 16  ;;  %v1935_v26 = vcvt.f32.s32 %v1929_v36 }
 0xb9b   : > { %v1931_v57 = vsel %vm1930_vm11, %v1926_v51, inf }
 0xb9c   : > { %1932 = vmin.xlane.f32.xlu1 %v1931_v57  ;;  %v1936_v38 = vshll.u32 %v1935_v26, 16 }
 0xb9d   : > { %v1944_v19 = vpop.xlane.xlu0 %1943 }
 0xb9e   : > { %vm1945_vm12 = vcmp.eq.f32.partialorder %v1942_v4, %v1944_v19  ;;  %v1950_v2 = vcvt.f32.s32 %v1944_v19 }
 0xb9f   : > { %v1946_v63 = vsel %vm1945_vm12, %v1941_v56, inf }
 0xba0   : > { %1947 = vmin.xlane.f32.xlu2 %v1946_v63  ;;  %v1951_v17 = vshll.u32 %v1950_v2, 16 }
 0xba1   : > { %v1959_v33 = vpop.xlane.xlu1 %1958 }
 0xba2   : > { %vm1960_vm14 = vcmp.eq.f32.partialorder %v1957_v11, %v1959_v33  ;;  %v1965_v37 = vcvt.f32.s32 %v1959_v33 }
 0xba3   : > { %v1961_v5 = vsel %vm1960_vm14, %v1956_v50, inf }
 0xba4   : > { %1962 = vmin.xlane.f32.xlu0 %v1961_v5  ;;  %v1966_v34 = vshll.u32 %v1965_v37, 16 }
 0xba7   : > { %v2476_v52 = vpop.f32.mrf.mxu3 }
 0xba8   : > { %2559 = vst.msk [vmem:[%s3214_s30 + $0x1b8] sm:$0xff] %vm2503_vm13, %v2476_v52 }
 0xbb0   : > { %v4323_v15 = vpop.xlane.xlu0 %1973 }
 0xbb1   : > { %vm1975_vm15 = vcmp.eq.f32.partialorder %v1972_v31, %v4323_v15  ;;  %v1980_v27 = vcvt.f32.s32 %v4323_v15 }
 0xbb2   : > { %v1976_v61 = vsel %vm1975_vm15, %v1971_v30, inf }
 0xbb3   : > { %1977 = vmin.xlane.f32.xlu1 %v1976_v61  ;;  %v1981_v54 = vshll.u32 %v1980_v27, 16 }
 0xbf5   : > { %v1918_v49 = vpop.xlane.xlu0 %1917 }
 0xbf6   : > { %v1919_v14 = vcvt.f32.s32 %v1918_v49 }
 0xbf8   : > { %v1922_v18 = vadd.s32 %v1921_v13, %v1919_v14 }
 0xbfa   : > { %vm2000_vm1 = vcmp.eq.s32.totalorder %v3042_v53, %v1922_v18 }
 0xbfb   : > { %v2749_v1 = vsel %vm2000_vm1, 1.0, %v2919_v21 }
 0xbfc   : > { %2024 = vst.msk [vmem:[#allocation2 + $0x1d0] sm:$0xff] %vm437_vm0, %v2749_v1 }
 0xbfe   : > { %v1888_v22 = vpop.xlane.xlu2 %1887 }
 0xbff   : > { %v1889_v10 = vcvt.f32.s32 %v1888_v22 }
 0xc01   : > { %v1892_v62 = vadd.s32 %v1891_v16, %v1889_v10 }
 0xc03   : > { %vm1998_vm2 = vcmp.eq.s32.totalorder %v3042_v53, %v1892_v62  ;;  %v2088_v39 = vld [vmem:[#allocation2 + $0x1d0] sm:$0xff] }
 0xc04   : > { %v2747_v0 = vsel %vm1998_vm2, 1.0, %v2919_v21 }
 0xc05   : > { %2022 = vst.msk [vmem:[#allocation2 + $0x1c0] sm:$0xff] %vm437_vm0, %v2747_v0 }
 0xc06   : > { %v1903_v4 = vpop.xlane.xlu1 %1902 }
 0xc07   : > { %v1904_v9 = vcvt.f32.s32 %v1903_v4 }
 0xc09   : > { %v1907_v11 = vadd.s32 %v1906_v6, %v1904_v9 }
 0xc0b   : > { %vm1999_vm3 = vcmp.eq.s32.totalorder %v3042_v53, %v1907_v11  ;;  %v1989_v59 = vpop.xlane.xlu2 %1988 }
 0xc0c   : > { %v2748_v28 = vsel %vm1999_vm3, 1.0, %v2919_v21  ;;  %vm1990_vm4 = vcmp.eq.f32.partialorder %v1987_v48, %v1989_v59  ;;  %v2086_v12 = vld [vmem:[#allocation2 + $0x1c0] sm:$0xff]  ;;  %v1995_v63 = vcvt.f32.s32 %v1989_v59 }
 0xc0d   : > { %2023 = vst.msk [vmem:[#allocation2 + $0x1c8] sm:$0xff] %vm437_vm0, %v2748_v28  ;;  %2811 = vmatmul.msk.f32.gmra.mxu3 %vm437_vm0, %v2086_v12  ;;  %v1991_v31 = vsel %vm1990_vm4, %v1986_v3, inf }
 0xc0e   : > { %1992 = vmin.xlane.f32.xlu2 %v1991_v31  ;;  %v1996_v50 = vshll.u32 %v1995_v63, 16 }
 0xc0f   : > { %v1933_v23 = vpop.xlane.xlu1 %1932 }
 0xc10   : > { %v1934_v29 = vcvt.f32.s32 %v1933_v23 }
 0xc12   : > { %v1937_v32 = vadd.s32 %v1936_v38, %v1934_v29 }
 0xc13   : > { %v1948_v42 = vpop.xlane.xlu2 %1947 }
 0xc14   : > { %vm2001_vm5 = vcmp.eq.s32.totalorder %v3042_v53, %v1937_v32  ;;  %v1949_v41 = vcvt.f32.s32 %v1948_v42  ;;  %v2087_v46 = vld [vmem:[#allocation2 + $0x1c8] sm:$0xff] }
 0xc15   : > { %v2750_v35 = vsel %vm2001_vm5, 1.0, %v2919_v21  ;;  %2812 = vmatmul.msk.f32.gmra.mxu3 %vm437_vm0, %v2087_v46 }
 0xc16   : > { %2025 = vst.msk [vmem:[#allocation2 + $0x1d8] sm:$0xff] %vm437_vm0, %v2750_v35  ;;  %v1952_v40 = vadd.s32 %v1951_v17, %v1949_v41 }
 0xc17   : > { %v1963_v24 = vpop.xlane.xlu0 %1962 }
 0xc18   : > { %vm2002_vm6 = vcmp.eq.s32.totalorder %v3042_v53, %v1952_v40  ;;  %v1964_v25 = vcvt.f32.s32 %v1963_v24 }
 0xc19   : > { %v2751_v44 = vsel %vm2002_vm6, 1.0, %v2919_v21 }
 0xc1a   : > { %2026 = vst.msk [vmem:[#allocation2 + $0x1e0] sm:$0xff] %vm437_vm0, %v2751_v44  ;;  %v1967_v60 = vadd.s32 %v1966_v34, %v1964_v25 }
 0xc1c   : > { %vm2003_vm7 = vcmp.eq.s32.totalorder %v3042_v53, %v1967_v60 }
 0xc1d   : > { %v2752_v43 = vsel %vm2003_vm7, 1.0, %v2919_v21  ;;  %2813 = vmatmul.msk.f32.gmra.mxu3 %vm437_vm0, %v2088_v39  ;;  %v2089_v55 = vld [vmem:[#allocation2 + $0x1d8] sm:$0xff] }
 0xc1e   : > { %2027 = vst.msk [vmem:[#allocation2 + $0x1e8] sm:$0xff] %vm437_vm0, %v2752_v43 }
 0xc21   : > { %v2090_v45 = vld [vmem:[#allocation2 + $0x1e0] sm:$0xff] }
 0xc25   : > { %2814 = vmatmul.msk.f32.gmra.mxu3 %vm437_vm0, %v2089_v55  ;;  %v2091_v19 = vld [vmem:[#allocation2 + $0x1e8] sm:$0xff] }
 0xc26   : > { %v1978_v48 = vpop.xlane.xlu1 %1977 }
 0xc27   : > { %v1979_v36 = vcvt.f32.s32 %v1978_v48 }
 0xc29   : > { %v1982_v51 = vadd.s32 %v1981_v54, %v1979_v36 }
 0xc2b   : > { %vm2004_vm8 = vcmp.eq.s32.totalorder %v3042_v53, %v1982_v51 }
 0xc2c   : > { %v2753_v57 = vsel %vm2004_vm8, 1.0, %v2919_v21 }
 0xc2d   : > { %2028 = vst.msk [vmem:[#allocation2 + $0x1f0] sm:$0xff] %vm437_vm0, %v2753_v57  ;;  %2815 = vmatmul.msk.f32.gmra.mxu3 %vm437_vm0, %v2090_v45 }
 0xc34   : > { %v2092_v56 = vld [vmem:[#allocation2 + $0x1f0] sm:$0xff] }
 0xc35   : > { %2816 = vmatmul.msk.f32.gmra.mxu3 %vm437_vm0, %v2091_v19 }
 0xc3d   : > { %2817 = vmatmul.msk.f32.gmra.mxu3 %vm437_vm0, %v2092_v56 }
 0xc81   : > { %v1993_v33 = vpop.xlane.xlu2 %1992 }
 0xc82   : > { %v1994_v5 = vcvt.f32.s32 %v1993_v33 }
 0xc84   : > { %v1997_v52 = vadd.s32 %v1996_v50, %v1994_v5 }
 0xc86   : > { %vm2005_vm9 = vcmp.eq.s32.totalorder %v3042_v53, %v1997_v52 }
 0xc87   : > { %v2754_v47 = vsel %vm2005_vm9, 1.0, %v2919_v21 }
 0xc88   : > { %2029 = vst.msk [vmem:[#allocation2 + $0x1f8] sm:$0xff] %vm437_vm0, %v2754_v47 }
 0xc8f   : > { %v2093_v15 = vld [vmem:[#allocation2 + $0x1f8] sm:$0xff] }
 0xc90   : > { %v2479_v30 = vpop.f32.mrf.mxu3  ;;  %2818 = vmatmul.msk.f32.gmra.mxu3 %vm437_vm0, %v2093_v15 }
 0xc91   : > { %2560 = vst.msk [vmem:[%s3214_s30 + $0x1c0] sm:$0xff] %vm2503_vm13, %v2479_v30 }
 0xc98   : > { %v2482_v61 = vpop.f32.mrf.mxu3 }
 0xc99   : > { %2561 = vst.msk [vmem:[%s3214_s30 + $0x1c8] sm:$0xff] %vm2503_vm13, %v2482_v61 }
 0xca0   : > { %v2485_v7 = vpop.f32.mrf.mxu3 }
 0xca1   : > { %2562 = vst.msk [vmem:[%s3214_s30 + $0x1d0] sm:$0xff] %vm2503_vm13, %v2485_v7 }
 0xca8   : > { %v2488_v53 = vpop.f32.mrf.mxu3 }
 0xca9   : > { %2563 = vst.msk [vmem:[%s3214_s30 + $0x1d8] sm:$0xff] %vm2503_vm13, %v2488_v53 }
 0xcb0   : > { %v2491_v21 = vpop.f32.mrf.mxu3 }
 0xcb1   : > { %2564 = vst.msk [vmem:[%s3214_s30 + $0x1e0] sm:$0xff] %vm2503_vm13, %v2491_v21 }
 0xcb8   : > { %v2494_v49 = vpop.f32.mrf.mxu3 }
 0xcb9   : > { %2565 = vst.msk [vmem:[%s3214_s30 + $0x1e8] sm:$0xff] %vm2503_vm13, %v2494_v49 }
 0xcc0   : > { %v2497_v13 = vpop.f32.mrf.mxu3 }
 0xcc1   : > { %2566 = vst.msk [vmem:[%s3214_s30 + $0x1f0] sm:$0xff] %vm2503_vm13, %v2497_v13 }
 0xd13   : > { %v2500_v14 = vpop.f32.mrf.mxu3 }
 0xd14   : > { %2567 = vst.msk [vmem:[%s3214_s30 + $0x1f8] sm:$0xff] %vm2503_vm13, %v2500_v14 }
 0xd15 PF: > { %s13_s14 = sadd.s32 1, %s2914_s14   ;;  %s4388_s12 = smov %s2910_s13 }
 0xd16   : > { %p10_p5 = scmp.ge.s32.totalorder %s13_s14, 4   ;;  %s4389_s13 = smov %s4391_s15 }
 0xd18   :  { %12 = sbr.rel (!%p10_p5) target bundleno = 2 (0x2), region = 68 }

</bundles_post_ra>
